<compile_context>
chip_gen: v6e
topology: v6e:2x2x1
jax: 0.10.0
libtpu: 0.0.40
codegen_flags: <defaults>
</compile_context>

<pallas_src>
import functools

import jax
import jax.numpy as jnp
from jax.experimental import pallas as pl
from jax.experimental.pallas import tpu as pltpu

# ------------------------- scaled-down BERT config -------------------------
HIDDEN = 256                       # (bert-base: 768)
N_HEADS = 4                        # (bert-base: 12)
HEAD_DIM = HIDDEN // N_HEADS       # 64
HEAD_BLK = 128                     # per-head block padded to a full 128-lane tile
QKV_WIDTH = N_HEADS * 3 * HEAD_BLK # fused, lane-aligned [q|k|v] layout per head
N_LAYERS = 2                       # (bert-base: 12)
INTERMEDIATE = 512                 # (bert-base: 3072)
VOCAB = 128                        # (bert-base-japanese: 32000)
MAX_POS = 16
NUM_CLASSES = 9
CLS_PAD = 128                      # lane-dense padded classifier width
LN_EPS = 1e-12

BATCH = 2
SEQ = 8


# --------------------------- in-kernel helpers ------------------------------
def _layernorm(h, g, b, eps):
    mu = jnp.mean(h, axis=-1, keepdims=True)
    var = jnp.mean(jnp.square(h - mu), axis=-1, keepdims=True)
    return (h - mu) * jax.lax.rsqrt(var + eps) * g + b


def _gelu(y):
    # TODO(synk): HF BERT uses exact erf-GELU; tanh approximation used for
    # Mosaic-safe lowering (numerically ~1e-3 close).
    c = jnp.float32(0.7978845608028654)  # sqrt(2/pi)
    return 0.5 * y * (1.0 + jnp.tanh(c * (y + 0.044715 * y * y * y)))


# ------------------------------ fused kernel --------------------------------
def _encoder_kernel(emb_ref, eg_ref, eb_ref,
                    wqkv_ref, bqkv_ref, wo_ref, bo_ref, g1_ref, be1_ref,
                    w1_ref, bi1_ref, w2_ref, bi2_ref, g2_ref, be2_ref,
                    clsw_ref, clsb_ref,
                    logits_ref,
                    h_ref, ctx_ref,
                    *, batch, seq, n_heads, head_dim, head_blk, eps):
    layer = pl.program_id(0)
    scale = 1.0 / float(head_dim) ** 0.5

    # ---- embedding LayerNorm prologue (layer 0 only) ----
    @pl.when(layer == 0)
    def _():
        h_ref[...] = _layernorm(emb_ref[...], eg_ref[...], eb_ref[...], eps)

    h = h_ref[...]                                                 # (M, H) f32

    # ---- fused QKV projection (bf16 weights, f32 accumulation) ----
    qkv = jnp.dot(h.astype(jnp.bfloat16), wqkv_ref[...],
                  preferred_element_type=jnp.float32) + bqkv_ref[...]   # (M, 3*nh*128)

    # ---- multi-head attention: heads land in a VMEM slab, then one out-proj ----
    for hd in range(n_heads):                                      # static unroll (tiny)
        base = hd * 3 * head_blk                                   # 128-lane aligned
        for b in range(batch):
            r0 = b * seq                                           # sublane aligned (8)
            q = qkv[r0:r0 + seq, base:base + head_blk]             # (S, 128), pad cols = 0
            k = qkv[r0:r0 + seq, base + head_blk:base + 2 * head_blk]
            v = qkv[r0:r0 + seq, base + 2 * head_blk:base + 3 * head_blk]
            s = jax.lax.dot_general(q, k, (((1,), (1,)), ((), ())),
                                    preferred_element_type=jnp.float32) * scale
            s = s - jnp.max(s, axis=-1, keepdims=True)
            p = jnp.exp(s)
            p = p / jnp.sum(p, axis=-1, keepdims=True)             # exact softmax
            ctx_ref[pl.ds(r0, seq), pl.ds(hd * head_blk, head_blk)] = (
                jnp.dot(p, v, preferred_element_type=jnp.float32))
    attn = jnp.dot(ctx_ref[...].astype(jnp.bfloat16), wo_ref[...],
                   preferred_element_type=jnp.float32) + bo_ref[...]
    h1 = _layernorm(attn + h, g1_ref[...], be1_ref[...], eps)

    # ---- feed-forward ----
    inter = _gelu(jnp.dot(h1.astype(jnp.bfloat16), w1_ref[...],
                          preferred_element_type=jnp.float32) + bi1_ref[...])
    y = jnp.dot(inter.astype(jnp.bfloat16), w2_ref[...],
                preferred_element_type=jnp.float32) + bi2_ref[...]
    h2 = _layernorm(y + h1, g2_ref[...], be2_ref[...], eps)
    h_ref[...] = h2                                                # carry to layer+1

    # ---- classifier epilogue (last layer only): lane-dense (M, 128) logits ----
    @pl.when(layer == pl.num_programs(0) - 1)
    def _():
        logits_ref[...] = jnp.dot(h2.astype(jnp.bfloat16), clsw_ref[...],
                                  preferred_element_type=jnp.float32) + clsb_ref[...]


# ---------------------------- pallas_call wrapper ----------------------------
def _full2(rows, cols):
    return pl.BlockSpec((rows, cols), lambda l: (0, 0))


def _per_layer(rows, cols):
    # leading N_LAYERS axis squeezed away inside the kernel
    return pl.BlockSpec((None, rows, cols), lambda l: (l, 0, 0))


def encoder_classify(emb, params, *, batch, seq):
    """Runs the full encoder + classifier in one pallas_call. emb: (M, H) f32."""
    M, H = emb.shape
    kernel = functools.partial(
        _encoder_kernel, batch=batch, seq=seq, n_heads=N_HEADS,
        head_dim=HEAD_DIM, head_blk=HEAD_BLK, eps=LN_EPS)
    in_specs = [
        _full2(M, H),                        # emb (only read at layer 0)
        _full2(1, H), _full2(1, H),          # embedding LN gamma / beta
        _per_layer(H, QKV_WIDTH),            # wqkv (bf16, head-block padded)
        _per_layer(1, QKV_WIDTH),            # bqkv
        _per_layer(N_HEADS * HEAD_BLK, H),   # wo   (bf16, row padded per head)
        _per_layer(1, H),                    # bo
        _per_layer(1, H), _per_layer(1, H),  # ln1 gamma / beta
        _per_layer(H, INTERMEDIATE),         # w1 (bf16)
        _per_layer(1, INTERMEDIATE),         # b1
        _per_layer(INTERMEDIATE, H),         # w2 (bf16)
        _per_layer(1, H),                    # b2
        _per_layer(1, H), _per_layer(1, H),  # ln2 gamma / beta
        _full2(H, CLS_PAD),                  # classifier weight (bf16, padded)
        _full2(1, CLS_PAD),                  # classifier bias
    ]
    return pl.pallas_call(
        kernel,
        out_shape=jax.ShapeDtypeStruct((M, CLS_PAD), jnp.float32),
        grid=(N_LAYERS,),
        in_specs=in_specs,
        out_specs=_full2(M, CLS_PAD),
        scratch_shapes=[
            pltpu.VMEM((M, H), jnp.float32),                    # hidden-state carry
            pltpu.VMEM((M, N_HEADS * HEAD_BLK), jnp.float32),   # per-head ctx slab
        ],
        compiler_params=pltpu.CompilerParams(
            dimension_semantics=("arbitrary",)),                # layer axis carries state
    )(emb,
      params["emb_ln_g"], params["emb_ln_b"],
      params["wqkv"], params["bqkv"], params["wo"], params["bo"],
      params["ln1_g"], params["ln1_b"],
      params["w1"], params["b1"], params["w2"], params["b2"],
      params["ln2_g"], params["ln2_b"],
      params["cls_w"], params["cls_b"])


# ------------------------------ parameters ---------------------------------
def init_params(key):
    kit = iter(jax.random.split(key, 4 + 6 * N_LAYERS))

    def nrm(shape):
        return 0.02 * jax.random.normal(next(kit), shape, jnp.float32)

    word_emb = nrm((VOCAB, HIDDEN))
    pos_emb = nrm((MAX_POS, HIDDEN))
    type_emb = nrm((2, HIDDEN))

    cls_w = jnp.zeros((HIDDEN, CLS_PAD), jnp.float32)
    cls_w = cls_w.at[:, :NUM_CLASSES].set(nrm((HIDDEN, NUM_CLASSES)))

    wqkv_l, wo_l, w1_l, w2_l = [], [], [], []
    for _ in range(N_LAYERS):
        wq = nrm((HIDDEN, HIDDEN))
        wk = nrm((HIDDEN, HIDDEN))
        wv = nrm((HIDDEN, HIDDEN))
        wo = nrm((HIDDEN, HIDDEN))
        w1 = nrm((HIDDEN, INTERMEDIATE))
        w2 = nrm((INTERMEDIATE, HIDDEN))

        # Lane-aligned padded layouts: each head's q/k/v occupy the first 64
        # columns of a 128-wide block; wo is row-padded to match, so the padded
        # math is exactly equal to the unpadded math (pad weights are zero).
        wqkv_pad = jnp.zeros((HIDDEN, QKV_WIDTH), jnp.float32)
        wo_pad = jnp.zeros((N_HEADS * HEAD_BLK, HIDDEN), jnp.float32)
        for hd in range(N_HEADS):
            src = slice(hd * HEAD_DIM, (hd + 1) * HEAD_DIM)
            base = hd * 3 * HEAD_BLK
            wqkv_pad = wqkv_pad.at[:, base:base + HEAD_DIM].set(wq[:, src])
            wqkv_pad = wqkv_pad.at[:, base + HEAD_BLK:
                                   base + HEAD_BLK + HEAD_DIM].set(wk[:, src])
            wqkv_pad = wqkv_pad.at[:, base + 2 * HEAD_BLK:
                                   base + 2 * HEAD_BLK + HEAD_DIM].set(wv[:, src])
            wo_pad = wo_pad.at[hd * HEAD_BLK:hd * HEAD_BLK + HEAD_DIM, :].set(wo[src, :])
        wqkv_l.append(wqkv_pad)
        wo_l.append(wo_pad)
        w1_l.append(w1)
        w2_l.append(w2)

    def stack_bf16(xs):
        return jnp.stack(xs).astype(jnp.bfloat16)

    return {
        "word_emb": word_emb,
        "pos_emb": pos_emb,
        "type_emb": type_emb,
        "emb_ln_g": jnp.ones((1, HIDDEN), jnp.float32),
        "emb_ln_b": jnp.zeros((1, HIDDEN), jnp.float32),
        # per-layer weights stacked on a leading [N_LAYERS, ...] axis
        "wqkv": stack_bf16(wqkv_l),
        "bqkv": jnp.zeros((N_LAYERS, 1, QKV_WIDTH), jnp.float32),
        "wo": stack_bf16(wo_l),
        "bo": jnp.zeros((N_LAYERS, 1, HIDDEN), jnp.float32),
        "ln1_g": jnp.ones((N_LAYERS, 1, HIDDEN), jnp.float32),
        "ln1_b": jnp.zeros((N_LAYERS, 1, HIDDEN), jnp.float32),
        "w1": stack_bf16(w1_l),
        "b1": jnp.zeros((N_LAYERS, 1, INTERMEDIATE), jnp.float32),
        "w2": stack_bf16(w2_l),
        "b2": jnp.zeros((N_LAYERS, 1, HIDDEN), jnp.float32),
        "ln2_g": jnp.ones((N_LAYERS, 1, HIDDEN), jnp.float32),
        "ln2_b": jnp.zeros((N_LAYERS, 1, HIDDEN), jnp.float32),
        "cls_w": cls_w.astype(jnp.bfloat16),
        "cls_b": jnp.zeros((1, CLS_PAD), jnp.float32),
    }


# ------------------------------- forward -----------------------------------
def doc_cls_forward(params, input_ids):
    """Equivalent of: logits = self.cls(self.bert(x)[0][:, 0])."""
    B, S = input_ids.shape
    M = B * S

    # Embeddings (row gather is JAX glue; everything after runs in the kernel).
    # token_type_ids assumed all-zero (single-segment DocCls).
    tok = jnp.take(params["word_emb"], input_ids, axis=0)           # (B,S,H)
    pos = params["pos_emb"][:S][None, :, :]                         # (1,S,H)
    typ = params["type_emb"][0][None, None, :]                      # (1,1,H)
    emb = (tok + pos + typ).reshape(M, HIDDEN)

    logits_pad = encoder_classify(emb, params, batch=B, seq=S)      # (M, 128)

    # h0 = stack([bout[0][i][0] for i in range(bs)]) -> last_hidden[:, 0, :]
    # (classifier already applied to every row in-kernel; pick [CLS] rows + 9 cols)
    return logits_pad.reshape(B, S, CLS_PAD)[:, 0, :NUM_CLASSES]    # (B, 9)


# --------------------------------- main -------------------------------------
if __name__ == "__main__":
    root = jax.random.PRNGKey(0)
    k_params, k_ids = jax.random.split(root)

    params = init_params(k_params)
    input_ids = jax.random.randint(k_ids, (BATCH, SEQ), 0, VOCAB, dtype=jnp.int32)

    fwd = jax.jit(doc_cls_forward)
    logits = fwd(params, input_ids)
    logits = jax.block_until_ready(logits)

    assert logits.shape == (BATCH, NUM_CLASSES)
    assert logits.dtype == jnp.float32
    assert bool(jnp.all(jnp.isfinite(logits)))
    print("KERNEL_OK")
</pallas_src>

<mosaic_0001>
module attributes {stable_mosaic.version = 11 : i64} {
  func.func @_encoder_kernel(%arg0: i32, %arg1: memref<16x256xf32, #tpu.memory_space<vmem>>, %arg2: memref<1x256xf32, #tpu.memory_space<vmem>>, %arg3: memref<1x256xf32, #tpu.memory_space<vmem>>, %arg4: memref<1x256x1536xbf16, #tpu.memory_space<vmem>>, %arg5: memref<1x1x1536xf32, #tpu.memory_space<vmem>>, %arg6: memref<1x512x256xbf16, #tpu.memory_space<vmem>>, %arg7: memref<1x1x256xf32, #tpu.memory_space<vmem>>, %arg8: memref<1x1x256xf32, #tpu.memory_space<vmem>>, %arg9: memref<1x1x256xf32, #tpu.memory_space<vmem>>, %arg10: memref<1x256x512xbf16, #tpu.memory_space<vmem>>, %arg11: memref<1x1x512xf32, #tpu.memory_space<vmem>>, %arg12: memref<1x512x256xbf16, #tpu.memory_space<vmem>>, %arg13: memref<1x1x256xf32, #tpu.memory_space<vmem>>, %arg14: memref<1x1x256xf32, #tpu.memory_space<vmem>>, %arg15: memref<1x1x256xf32, #tpu.memory_space<vmem>>, %arg16: memref<256x128xbf16, #tpu.memory_space<vmem>>, %arg17: memref<1x128xf32, #tpu.memory_space<vmem>>, %arg18: memref<16x128xf32, #tpu.memory_space<vmem>>, %arg19: memref<16x256xf32, #tpu.memory_space<vmem>>, %arg20: memref<16x512xf32, #tpu.memory_space<vmem>>) attributes {dimension_semantics = [#tpu.dimension_semantics<arbitrary>], iteration_bounds = array<i64: 2>, scalar_prefetch = 0 : i64, scratch_operands = 2 : i64, tpu.core_type = #tpu.core_type<tc>, window_params = [{pipeline_mode = #tpu.pipeline_mode<synchronous>, transform_indices = @transform_0, window_bounds = array<i64: 16, 256>}, {pipeline_mode = #tpu.pipeline_mode<synchronous>, transform_indices = @transform_1, window_bounds = array<i64: 1, 256>}, {pipeline_mode = #tpu.pipeline_mode<synchronous>, transform_indices = @transform_2, window_bounds = array<i64: 1, 256>}, {transform_indices = @transform_3, window_bounds = array<i64: 1, 256, 1536>}, {transform_indices = @transform_4, window_bounds = array<i64: 1, 1, 1536>}, {transform_indices = @transform_5, window_bounds = array<i64: 1, 512, 256>}, {transform_indices = @transform_6, window_bounds = array<i64: 1, 1, 256>}, {transform_indices = @transform_7, window_bounds = array<i64: 1, 1, 256>}, {transform_indices = @transform_8, window_bounds = array<i64: 1, 1, 256>}, {transform_indices = @transform_9, window_bounds = array<i64: 1, 256, 512>}, {transform_indices = @transform_10, window_bounds = array<i64: 1, 1, 512>}, {transform_indices = @transform_11, window_bounds = array<i64: 1, 512, 256>}, {transform_indices = @transform_12, window_bounds = array<i64: 1, 1, 256>}, {transform_indices = @transform_13, window_bounds = array<i64: 1, 1, 256>}, {transform_indices = @transform_14, window_bounds = array<i64: 1, 1, 256>}, {pipeline_mode = #tpu.pipeline_mode<synchronous>, transform_indices = @transform_15, window_bounds = array<i64: 256, 128>}, {pipeline_mode = #tpu.pipeline_mode<synchronous>, transform_indices = @transform_16, window_bounds = array<i64: 1, 128>}, {pipeline_mode = #tpu.pipeline_mode<synchronous>, transform_indices = @transform_17, window_bounds = array<i64: 16, 128>}]} {
    %c0_i32 = arith.constant 0 : i32
    %0 = arith.cmpi eq, %arg0, %c0_i32 : i32
    %1 = arith.extui %0 : i1 to i32
    %c0_i32_0 = arith.constant 0 : i32
    %2 = arith.cmpi ne, %1, %c0_i32_0 : i32
    scf.if %2 {
      %c0_112 = arith.constant 0 : index
      %c0_113 = arith.constant 0 : index
      %244 = vector.load %arg1[%c0_112, %c0_113] : memref<16x256xf32, #tpu.memory_space<vmem>>, vector<16x256xf32>
      %c0_114 = arith.constant 0 : index
      %c0_115 = arith.constant 0 : index
      %245 = vector.load %arg2[%c0_114, %c0_115] : memref<1x256xf32, #tpu.memory_space<vmem>>, vector<1x256xf32>
      %c0_116 = arith.constant 0 : index
      %c0_117 = arith.constant 0 : index
      %246 = vector.load %arg3[%c0_116, %c0_117] : memref<1x256xf32, #tpu.memory_space<vmem>>, vector<1x256xf32>
      %cst_118 = arith.constant dense<0.000000e+00> : vector<16xf32>
      %247 = vector.multi_reduction <add>, %244, %cst_118 [1] : vector<16x256xf32> to vector<16xf32>
      %248 = vector.shape_cast %247 : vector<16xf32> to vector<16x1xf32>
      %cst_119 = arith.constant 2.560000e+02 : f32
      %249 = vector.broadcast %cst_119 : f32 to vector<16x1xf32>
      %250 = arith.divf %248, %249 : vector<16x1xf32>
      %251 = vector.broadcast %250 : vector<16x1xf32> to vector<16x256xf32>
      %252 = arith.subf %244, %251 : vector<16x256xf32>
      %253 = arith.mulf %252, %252 : vector<16x256xf32>
      %cst_120 = arith.constant dense<0.000000e+00> : vector<16xf32>
      %254 = vector.multi_reduction <add>, %253, %cst_120 [1] : vector<16x256xf32> to vector<16xf32>
      %255 = vector.shape_cast %254 : vector<16xf32> to vector<16x1xf32>
      %cst_121 = arith.constant 2.560000e+02 : f32
      %256 = vector.broadcast %cst_121 : f32 to vector<16x1xf32>
      %257 = arith.divf %255, %256 : vector<16x1xf32>
      %258 = vector.broadcast %250 : vector<16x1xf32> to vector<16x256xf32>
      %259 = arith.subf %244, %258 : vector<16x256xf32>
      %cst_122 = arith.constant 9.99999996E-13 : f32
      %260 = vector.broadcast %cst_122 : f32 to vector<16x1xf32>
      %261 = arith.addf %257, %260 : vector<16x1xf32>
      %262 = math.rsqrt %261 : vector<16x1xf32>
      %263 = vector.broadcast %262 : vector<16x1xf32> to vector<16x256xf32>
      %264 = arith.mulf %259, %263 : vector<16x256xf32>
      %265 = vector.broadcast %245 : vector<1x256xf32> to vector<16x256xf32>
      %266 = arith.mulf %264, %265 : vector<16x256xf32>
      %267 = vector.broadcast %246 : vector<1x256xf32> to vector<16x256xf32>
      %268 = arith.addf %266, %267 : vector<16x256xf32>
      %c0_123 = arith.constant 0 : index
      %c0_124 = arith.constant 0 : index
      %269 = vector.load %arg19[%c0_123, %c0_124] : memref<16x256xf32, #tpu.memory_space<vmem>>, vector<16x256xf32>
      tpu.vector_store %arg19[%c0_123, %c0_124], %268 {strides = array<i32>} : memref<16x256xf32, #tpu.memory_space<vmem>>, vector<16x256xf32>,
    } else {
    }
    %c0 = arith.constant 0 : index
    %c0_1 = arith.constant 0 : index
    %3 = vector.load %arg19[%c0, %c0_1] : memref<16x256xf32, #tpu.memory_space<vmem>>, vector<16x256xf32>
    %4 = arith.truncf %3 : vector<16x256xf32> to vector<16x256xbf16>
    %c0_2 = arith.constant 0 : index
    %c0_3 = arith.constant 0 : index
    %c0_4 = arith.constant 0 : index
    %5 = vector.load %arg4[%c0_2, %c0_3, %c0_4] : memref<1x256x1536xbf16, #tpu.memory_space<vmem>>, vector<1x256x1536xbf16>
    %6 = vector.shape_cast %5 : vector<1x256x1536xbf16> to vector<256x1536xbf16>
    %cst = arith.constant dense<0.000000e+00> : vector<16x1536xf32>
    %7 = tpu.matmul %4, %6, %cst {dimension_numbers = #tpu.dot_dimension_numbers<[1], [0], [0], [1], [0, 0, 1, 1], [], []>} : vector<16x256xbf16>, vector<256x1536xbf16>, vector<16x1536xf32> -> vector<16x1536xf32>
    %c0_5 = arith.constant 0 : index
    %c0_6 = arith.constant 0 : index
    %c0_7 = arith.constant 0 : index
    %8 = vector.load %arg5[%c0_5, %c0_6, %c0_7] : memref<1x1x1536xf32, #tpu.memory_space<vmem>>, vector<1x1x1536xf32>
    %9 = vector.shape_cast %8 : vector<1x1x1536xf32> to vector<1x1536xf32>
    %10 = vector.broadcast %9 : vector<1x1536xf32> to vector<16x1536xf32>
    %11 = arith.addf %7, %10 : vector<16x1536xf32>
    %12 = vector.extract_strided_slice %11 {offsets = [0, 0], sizes = [8, 128], strides = [1, 1]} : vector<16x1536xf32> to vector<8x128xf32>
    %13 = vector.extract_strided_slice %11 {offsets = [0, 128], sizes = [8, 128], strides = [1, 1]} : vector<16x1536xf32> to vector<8x128xf32>
    %14 = vector.extract_strided_slice %11 {offsets = [0, 256], sizes = [8, 128], strides = [1, 1]} : vector<16x1536xf32> to vector<8x128xf32>
    %cst_8 = arith.constant dense<0.000000e+00> : vector<8x8xf32>
    %15 = tpu.matmul %12, %13, %cst_8 {dimension_numbers = #tpu.dot_dimension_numbers<[1], [1], [0], [0], [0, 0, 1, 0], [], []>} : vector<8x128xf32>, vector<8x128xf32>, vector<8x8xf32> -> vector<8x8xf32>
    %cst_9 = arith.constant 1.250000e-01 : f32
    %16 = vector.broadcast %cst_9 : f32 to vector<8x8xf32>
    %17 = arith.mulf %15, %16 : vector<8x8xf32>
    %cst_10 = arith.constant dense<0xFF800000> : vector<8xf32>
    %18 = vector.multi_reduction <maximumf>, %17, %cst_10 [1] : vector<8x8xf32> to vector<8xf32>
    %19 = vector.shape_cast %18 : vector<8xf32> to vector<8x1xf32>
    %20 = vector.broadcast %19 : vector<8x1xf32> to vector<8x8xf32>
    %21 = arith.subf %17, %20 : vector<8x8xf32>
    %22 = math.exp %21 : vector<8x8xf32>
    %cst_11 = arith.constant dense<0.000000e+00> : vector<8xf32>
    %23 = vector.multi_reduction <add>, %22, %cst_11 [1] : vector<8x8xf32> to vector<8xf32>
    %24 = vector.shape_cast %23 : vector<8xf32> to vector<8x1xf32>
    %25 = vector.broadcast %24 : vector<8x1xf32> to vector<8x8xf32>
    %26 = arith.divf %22, %25 : vector<8x8xf32>
    %cst_12 = arith.constant dense<0.000000e+00> : vector<8x128xf32>
    %27 = tpu.matmul %26, %14, %cst_12 {dimension_numbers = #tpu.dot_dimension_numbers<[1], [0], [0], [1], [0, 0, 1, 1], [], []>} : vector<8x8xf32>, vector<8x128xf32>, vector<8x128xf32> -> vector<8x128xf32>
    %c0_13 = arith.constant 0 : index
    %c0_14 = arith.constant 0 : index
    %28 = vector.load %arg20[%c0_13, %c0_14] : memref<16x512xf32, #tpu.memory_space<vmem>>, vector<8x128xf32>
    tpu.vector_store %arg20[%c0_13, %c0_14], %27 {strides = array<i32>} : memref<16x512xf32, #tpu.memory_space<vmem>>, vector<8x128xf32>,
    %29 = vector.extract_strided_slice %11 {offsets = [8, 0], sizes = [8, 128], strides = [1, 1]} : vector<16x1536xf32> to vector<8x128xf32>
    %30 = vector.extract_strided_slice %11 {offsets = [8, 128], sizes = [8, 128], strides = [1, 1]} : vector<16x1536xf32> to vector<8x128xf32>
    %31 = vector.extract_strided_slice %11 {offsets = [8, 256], sizes = [8, 128], strides = [1, 1]} : vector<16x1536xf32> to vector<8x128xf32>
    %cst_15 = arith.constant dense<0.000000e+00> : vector<8x8xf32>
    %32 = tpu.matmul %29, %30, %cst_15 {dimension_numbers = #tpu.dot_dimension_numbers<[1], [1], [0], [0], [0, 0, 1, 0], [], []>} : vector<8x128xf32>, vector<8x128xf32>, vector<8x8xf32> -> vector<8x8xf32>
    %cst_16 = arith.constant 1.250000e-01 : f32
    %33 = vector.broadcast %cst_16 : f32 to vector<8x8xf32>
    %34 = arith.mulf %32, %33 : vector<8x8xf32>
    %cst_17 = arith.constant dense<0xFF800000> : vector<8xf32>
    %35 = vector.multi_reduction <maximumf>, %34, %cst_17 [1] : vector<8x8xf32> to vector<8xf32>
    %36 = vector.shape_cast %35 : vector<8xf32> to vector<8x1xf32>
    %37 = vector.broadcast %36 : vector<8x1xf32> to vector<8x8xf32>
    %38 = arith.subf %34, %37 : vector<8x8xf32>
    %39 = math.exp %38 : vector<8x8xf32>
    %cst_18 = arith.constant dense<0.000000e+00> : vector<8xf32>
    %40 = vector.multi_reduction <add>, %39, %cst_18 [1] : vector<8x8xf32> to vector<8xf32>
    %41 = vector.shape_cast %40 : vector<8xf32> to vector<8x1xf32>
    %42 = vector.broadcast %41 : vector<8x1xf32> to vector<8x8xf32>
    %43 = arith.divf %39, %42 : vector<8x8xf32>
    %cst_19 = arith.constant dense<0.000000e+00> : vector<8x128xf32>
    %44 = tpu.matmul %43, %31, %cst_19 {dimension_numbers = #tpu.dot_dimension_numbers<[1], [0], [0], [1], [0, 0, 1, 1], [], []>} : vector<8x8xf32>, vector<8x128xf32>, vector<8x128xf32> -> vector<8x128xf32>
    %c8 = arith.constant 8 : index
    %c0_20 = arith.constant 0 : index
    %45 = vector.load %arg20[%c8, %c0_20] : memref<16x512xf32, #tpu.memory_space<vmem>>, vector<8x128xf32>
    tpu.vector_store %arg20[%c8, %c0_20], %44 {strides = array<i32>} : memref<16x512xf32, #tpu.memory_space<vmem>>, vector<8x128xf32>,
    %46 = vector.extract_strided_slice %11 {offsets = [0, 384], sizes = [8, 128], strides = [1, 1]} : vector<16x1536xf32> to vector<8x128xf32>
    %47 = vector.extract_strided_slice %11 {offsets = [0, 512], sizes = [8, 128], strides = [1, 1]} : vector<16x1536xf32> to vector<8x128xf32>
    %48 = vector.extract_strided_slice %11 {offsets = [0, 640], sizes = [8, 128], strides = [1, 1]} : vector<16x1536xf32> to vector<8x128xf32>
    %cst_21 = arith.constant dense<0.000000e+00> : vector<8x8xf32>
    %49 = tpu.matmul %46, %47, %cst_21 {dimension_numbers = #tpu.dot_dimension_numbers<[1], [1], [0], [0], [0, 0, 1, 0], [], []>} : vector<8x128xf32>, vector<8x128xf32>, vector<8x8xf32> -> vector<8x8xf32>
    %cst_22 = arith.constant 1.250000e-01 : f32
    %50 = vector.broadcast %cst_22 : f32 to vector<8x8xf32>
    %51 = arith.mulf %49, %50 : vector<8x8xf32>
    %cst_23 = arith.constant dense<0xFF800000> : vector<8xf32>
    %52 = vector.multi_reduction <maximumf>, %51, %cst_23 [1] : vector<8x8xf32> to vector<8xf32>
    %53 = vector.shape_cast %52 : vector<8xf32> to vector<8x1xf32>
    %54 = vector.broadcast %53 : vector<8x1xf32> to vector<8x8xf32>
    %55 = arith.subf %51, %54 : vector<8x8xf32>
    %56 = math.exp %55 : vector<8x8xf32>
    %cst_24 = arith.constant dense<0.000000e+00> : vector<8xf32>
    %57 = vector.multi_reduction <add>, %56, %cst_24 [1] : vector<8x8xf32> to vector<8xf32>
    %58 = vector.shape_cast %57 : vector<8xf32> to vector<8x1xf32>
    %59 = vector.broadcast %58 : vector<8x1xf32> to vector<8x8xf32>
    %60 = arith.divf %56, %59 : vector<8x8xf32>
    %cst_25 = arith.constant dense<0.000000e+00> : vector<8x128xf32>
    %61 = tpu.matmul %60, %48, %cst_25 {dimension_numbers = #tpu.dot_dimension_numbers<[1], [0], [0], [1], [0, 0, 1, 1], [], []>} : vector<8x8xf32>, vector<8x128xf32>, vector<8x128xf32> -> vector<8x128xf32>
    %c0_26 = arith.constant 0 : index
    %c128 = arith.constant 128 : index
    %62 = vector.load %arg20[%c0_26, %c128] : memref<16x512xf32, #tpu.memory_space<vmem>>, vector<8x128xf32>
    tpu.vector_store %arg20[%c0_26, %c128], %61 {strides = array<i32>} : memref<16x512xf32, #tpu.memory_space<vmem>>, vector<8x128xf32>,
    %63 = vector.extract_strided_slice %11 {offsets = [8, 384], sizes = [8, 128], strides = [1, 1]} : vector<16x1536xf32> to vector<8x128xf32>
    %64 = vector.extract_strided_slice %11 {offsets = [8, 512], sizes = [8, 128], strides = [1, 1]} : vector<16x1536xf32> to vector<8x128xf32>
    %65 = vector.extract_strided_slice %11 {offsets = [8, 640], sizes = [8, 128], strides = [1, 1]} : vector<16x1536xf32> to vector<8x128xf32>
    %cst_27 = arith.constant dense<0.000000e+00> : vector<8x8xf32>
    %66 = tpu.matmul %63, %64, %cst_27 {dimension_numbers = #tpu.dot_dimension_numbers<[1], [1], [0], [0], [0, 0, 1, 0], [], []>} : vector<8x128xf32>, vector<8x128xf32>, vector<8x8xf32> -> vector<8x8xf32>
    %cst_28 = arith.constant 1.250000e-01 : f32
    %67 = vector.broadcast %cst_28 : f32 to vector<8x8xf32>
    %68 = arith.mulf %66, %67 : vector<8x8xf32>
    %cst_29 = arith.constant dense<0xFF800000> : vector<8xf32>
    %69 = vector.multi_reduction <maximumf>, %68, %cst_29 [1] : vector<8x8xf32> to vector<8xf32>
    %70 = vector.shape_cast %69 : vector<8xf32> to vector<8x1xf32>
    %71 = vector.broadcast %70 : vector<8x1xf32> to vector<8x8xf32>
    %72 = arith.subf %68, %71 : vector<8x8xf32>
    %73 = math.exp %72 : vector<8x8xf32>
    %cst_30 = arith.constant dense<0.000000e+00> : vector<8xf32>
    %74 = vector.multi_reduction <add>, %73, %cst_30 [1] : vector<8x8xf32> to vector<8xf32>
    %75 = vector.shape_cast %74 : vector<8xf32> to vector<8x1xf32>
    %76 = vector.broadcast %75 : vector<8x1xf32> to vector<8x8xf32>
    %77 = arith.divf %73, %76 : vector<8x8xf32>
    %cst_31 = arith.constant dense<0.000000e+00> : vector<8x128xf32>
    %78 = tpu.matmul %77, %65, %cst_31 {dimension_numbers = #tpu.dot_dimension_numbers<[1], [0], [0], [1], [0, 0, 1, 1], [], []>} : vector<8x8xf32>, vector<8x128xf32>, vector<8x128xf32> -> vector<8x128xf32>
    %c8_32 = arith.constant 8 : index
    %c128_33 = arith.constant 128 : index
    %79 = vector.load %arg20[%c8_32, %c128_33] : memref<16x512xf32, #tpu.memory_space<vmem>>, vector<8x128xf32>
    tpu.vector_store %arg20[%c8_32, %c128_33], %78 {strides = array<i32>} : memref<16x512xf32, #tpu.memory_space<vmem>>, vector<8x128xf32>,
    %80 = vector.extract_strided_slice %11 {offsets = [0, 768], sizes = [8, 128], strides = [1, 1]} : vector<16x1536xf32> to vector<8x128xf32>
    %81 = vector.extract_strided_slice %11 {offsets = [0, 896], sizes = [8, 128], strides = [1, 1]} : vector<16x1536xf32> to vector<8x128xf32>
    %82 = vector.extract_strided_slice %11 {offsets = [0, 1024], sizes = [8, 128], strides = [1, 1]} : vector<16x1536xf32> to vector<8x128xf32>
    %cst_34 = arith.constant dense<0.000000e+00> : vector<8x8xf32>
    %83 = tpu.matmul %80, %81, %cst_34 {dimension_numbers = #tpu.dot_dimension_numbers<[1], [1], [0], [0], [0, 0, 1, 0], [], []>} : vector<8x128xf32>, vector<8x128xf32>, vector<8x8xf32> -> vector<8x8xf32>
    %cst_35 = arith.constant 1.250000e-01 : f32
    %84 = vector.broadcast %cst_35 : f32 to vector<8x8xf32>
    %85 = arith.mulf %83, %84 : vector<8x8xf32>
    %cst_36 = arith.constant dense<0xFF800000> : vector<8xf32>
    %86 = vector.multi_reduction <maximumf>, %85, %cst_36 [1] : vector<8x8xf32> to vector<8xf32>
    %87 = vector.shape_cast %86 : vector<8xf32> to vector<8x1xf32>
    %88 = vector.broadcast %87 : vector<8x1xf32> to vector<8x8xf32>
    %89 = arith.subf %85, %88 : vector<8x8xf32>
    %90 = math.exp %89 : vector<8x8xf32>
    %cst_37 = arith.constant dense<0.000000e+00> : vector<8xf32>
    %91 = vector.multi_reduction <add>, %90, %cst_37 [1] : vector<8x8xf32> to vector<8xf32>
    %92 = vector.shape_cast %91 : vector<8xf32> to vector<8x1xf32>
    %93 = vector.broadcast %92 : vector<8x1xf32> to vector<8x8xf32>
    %94 = arith.divf %90, %93 : vector<8x8xf32>
    %cst_38 = arith.constant dense<0.000000e+00> : vector<8x128xf32>
    %95 = tpu.matmul %94, %82, %cst_38 {dimension_numbers = #tpu.dot_dimension_numbers<[1], [0], [0], [1], [0, 0, 1, 1], [], []>} : vector<8x8xf32>, vector<8x128xf32>, vector<8x128xf32> -> vector<8x128xf32>
    %c0_39 = arith.constant 0 : index
    %c256 = arith.constant 256 : index
    %96 = vector.load %arg20[%c0_39, %c256] : memref<16x512xf32, #tpu.memory_space<vmem>>, vector<8x128xf32>
    tpu.vector_store %arg20[%c0_39, %c256], %95 {strides = array<i32>} : memref<16x512xf32, #tpu.memory_space<vmem>>, vector<8x128xf32>,
    %97 = vector.extract_strided_slice %11 {offsets = [8, 768], sizes = [8, 128], strides = [1, 1]} : vector<16x1536xf32> to vector<8x128xf32>
    %98 = vector.extract_strided_slice %11 {offsets = [8, 896], sizes = [8, 128], strides = [1, 1]} : vector<16x1536xf32> to vector<8x128xf32>
    %99 = vector.extract_strided_slice %11 {offsets = [8, 1024], sizes = [8, 128], strides = [1, 1]} : vector<16x1536xf32> to vector<8x128xf32>
    %cst_40 = arith.constant dense<0.000000e+00> : vector<8x8xf32>
    %100 = tpu.matmul %97, %98, %cst_40 {dimension_numbers = #tpu.dot_dimension_numbers<[1], [1], [0], [0], [0, 0, 1, 0], [], []>} : vector<8x128xf32>, vector<8x128xf32>, vector<8x8xf32> -> vector<8x8xf32>
    %cst_41 = arith.constant 1.250000e-01 : f32
    %101 = vector.broadcast %cst_41 : f32 to vector<8x8xf32>
    %102 = arith.mulf %100, %101 : vector<8x8xf32>
    %cst_42 = arith.constant dense<0xFF800000> : vector<8xf32>
    %103 = vector.multi_reduction <maximumf>, %102, %cst_42 [1] : vector<8x8xf32> to vector<8xf32>
    %104 = vector.shape_cast %103 : vector<8xf32> to vector<8x1xf32>
    %105 = vector.broadcast %104 : vector<8x1xf32> to vector<8x8xf32>
    %106 = arith.subf %102, %105 : vector<8x8xf32>
    %107 = math.exp %106 : vector<8x8xf32>
    %cst_43 = arith.constant dense<0.000000e+00> : vector<8xf32>
    %108 = vector.multi_reduction <add>, %107, %cst_43 [1] : vector<8x8xf32> to vector<8xf32>
    %109 = vector.shape_cast %108 : vector<8xf32> to vector<8x1xf32>
    %110 = vector.broadcast %109 : vector<8x1xf32> to vector<8x8xf32>
    %111 = arith.divf %107, %110 : vector<8x8xf32>
    %cst_44 = arith.constant dense<0.000000e+00> : vector<8x128xf32>
    %112 = tpu.matmul %111, %99, %cst_44 {dimension_numbers = #tpu.dot_dimension_numbers<[1], [0], [0], [1], [0, 0, 1, 1], [], []>} : vector<8x8xf32>, vector<8x128xf32>, vector<8x128xf32> -> vector<8x128xf32>
    %c8_45 = arith.constant 8 : index
    %c256_46 = arith.constant 256 : index
    %113 = vector.load %arg20[%c8_45, %c256_46] : memref<16x512xf32, #tpu.memory_space<vmem>>, vector<8x128xf32>
    tpu.vector_store %arg20[%c8_45, %c256_46], %112 {strides = array<i32>} : memref<16x512xf32, #tpu.memory_space<vmem>>, vector<8x128xf32>,
    %114 = vector.extract_strided_slice %11 {offsets = [0, 1152], sizes = [8, 128], strides = [1, 1]} : vector<16x1536xf32> to vector<8x128xf32>
    %115 = vector.extract_strided_slice %11 {offsets = [0, 1280], sizes = [8, 128], strides = [1, 1]} : vector<16x1536xf32> to vector<8x128xf32>
    %116 = vector.extract_strided_slice %11 {offsets = [0, 1408], sizes = [8, 128], strides = [1, 1]} : vector<16x1536xf32> to vector<8x128xf32>
    %cst_47 = arith.constant dense<0.000000e+00> : vector<8x8xf32>
    %117 = tpu.matmul %114, %115, %cst_47 {dimension_numbers = #tpu.dot_dimension_numbers<[1], [1], [0], [0], [0, 0, 1, 0], [], []>} : vector<8x128xf32>, vector<8x128xf32>, vector<8x8xf32> -> vector<8x8xf32>
    %cst_48 = arith.constant 1.250000e-01 : f32
    %118 = vector.broadcast %cst_48 : f32 to vector<8x8xf32>
    %119 = arith.mulf %117, %118 : vector<8x8xf32>
    %cst_49 = arith.constant dense<0xFF800000> : vector<8xf32>
    %120 = vector.multi_reduction <maximumf>, %119, %cst_49 [1] : vector<8x8xf32> to vector<8xf32>
    %121 = vector.shape_cast %120 : vector<8xf32> to vector<8x1xf32>
    %122 = vector.broadcast %121 : vector<8x1xf32> to vector<8x8xf32>
    %123 = arith.subf %119, %122 : vector<8x8xf32>
    %124 = math.exp %123 : vector<8x8xf32>
    %cst_50 = arith.constant dense<0.000000e+00> : vector<8xf32>
    %125 = vector.multi_reduction <add>, %124, %cst_50 [1] : vector<8x8xf32> to vector<8xf32>
    %126 = vector.shape_cast %125 : vector<8xf32> to vector<8x1xf32>
    %127 = vector.broadcast %126 : vector<8x1xf32> to vector<8x8xf32>
    %128 = arith.divf %124, %127 : vector<8x8xf32>
    %cst_51 = arith.constant dense<0.000000e+00> : vector<8x128xf32>
    %129 = tpu.matmul %128, %116, %cst_51 {dimension_numbers = #tpu.dot_dimension_numbers<[1], [0], [0], [1], [0, 0, 1, 1], [], []>} : vector<8x8xf32>, vector<8x128xf32>, vector<8x128xf32> -> vector<8x128xf32>
    %c0_52 = arith.constant 0 : index
    %c384 = arith.constant 384 : index
    %130 = vector.load %arg20[%c0_52, %c384] : memref<16x512xf32, #tpu.memory_space<vmem>>, vector<8x128xf32>
    tpu.vector_store %arg20[%c0_52, %c384], %129 {strides = array<i32>} : memref<16x512xf32, #tpu.memory_space<vmem>>, vector<8x128xf32>,
    %131 = vector.extract_strided_slice %11 {offsets = [8, 1152], sizes = [8, 128], strides = [1, 1]} : vector<16x1536xf32> to vector<8x128xf32>
    %132 = vector.extract_strided_slice %11 {offsets = [8, 1280], sizes = [8, 128], strides = [1, 1]} : vector<16x1536xf32> to vector<8x128xf32>
    %133 = vector.extract_strided_slice %11 {offsets = [8, 1408], sizes = [8, 128], strides = [1, 1]} : vector<16x1536xf32> to vector<8x128xf32>
    %cst_53 = arith.constant dense<0.000000e+00> : vector<8x8xf32>
    %134 = tpu.matmul %131, %132, %cst_53 {dimension_numbers = #tpu.dot_dimension_numbers<[1], [1], [0], [0], [0, 0, 1, 0], [], []>} : vector<8x128xf32>, vector<8x128xf32>, vector<8x8xf32> -> vector<8x8xf32>
    %cst_54 = arith.constant 1.250000e-01 : f32
    %135 = vector.broadcast %cst_54 : f32 to vector<8x8xf32>
    %136 = arith.mulf %134, %135 : vector<8x8xf32>
    %cst_55 = arith.constant dense<0xFF800000> : vector<8xf32>
    %137 = vector.multi_reduction <maximumf>, %136, %cst_55 [1] : vector<8x8xf32> to vector<8xf32>
    %138 = vector.shape_cast %137 : vector<8xf32> to vector<8x1xf32>
    %139 = vector.broadcast %138 : vector<8x1xf32> to vector<8x8xf32>
    %140 = arith.subf %136, %139 : vector<8x8xf32>
    %141 = math.exp %140 : vector<8x8xf32>
    %cst_56 = arith.constant dense<0.000000e+00> : vector<8xf32>
    %142 = vector.multi_reduction <add>, %141, %cst_56 [1] : vector<8x8xf32> to vector<8xf32>
    %143 = vector.shape_cast %142 : vector<8xf32> to vector<8x1xf32>
    %144 = vector.broadcast %143 : vector<8x1xf32> to vector<8x8xf32>
    %145 = arith.divf %141, %144 : vector<8x8xf32>
    %cst_57 = arith.constant dense<0.000000e+00> : vector<8x128xf32>
    %146 = tpu.matmul %145, %133, %cst_57 {dimension_numbers = #tpu.dot_dimension_numbers<[1], [0], [0], [1], [0, 0, 1, 1], [], []>} : vector<8x8xf32>, vector<8x128xf32>, vector<8x128xf32> -> vector<8x128xf32>
    %c8_58 = arith.constant 8 : index
    %c384_59 = arith.constant 384 : index
    %147 = vector.load %arg20[%c8_58, %c384_59] : memref<16x512xf32, #tpu.memory_space<vmem>>, vector<8x128xf32>
    tpu.vector_store %arg20[%c8_58, %c384_59], %146 {strides = array<i32>} : memref<16x512xf32, #tpu.memory_space<vmem>>, vector<8x128xf32>,
    %c0_60 = arith.constant 0 : index
    %c0_61 = arith.constant 0 : index
    %148 = vector.load %arg20[%c0_60, %c0_61] : memref<16x512xf32, #tpu.memory_space<vmem>>, vector<16x512xf32>
    %149 = arith.truncf %148 : vector<16x512xf32> to vector<16x512xbf16>
    %c0_62 = arith.constant 0 : index
    %c0_63 = arith.constant 0 : index
    %c0_64 = arith.constant 0 : index
    %150 = vector.load %arg6[%c0_62, %c0_63, %c0_64] : memref<1x512x256xbf16, #tpu.memory_space<vmem>>, vector<1x512x256xbf16>
    %151 = vector.shape_cast %150 : vector<1x512x256xbf16> to vector<512x256xbf16>
    %cst_65 = arith.constant dense<0.000000e+00> : vector<16x256xf32>
    %152 = tpu.matmul %149, %151, %cst_65 {dimension_numbers = #tpu.dot_dimension_numbers<[1], [0], [0], [1], [0, 0, 1, 1], [], []>} : vector<16x512xbf16>, vector<512x256xbf16>, vector<16x256xf32> -> vector<16x256xf32>
    %c0_66 = arith.constant 0 : index
    %c0_67 = arith.constant 0 : index
    %c0_68 = arith.constant 0 : index
    %153 = vector.load %arg7[%c0_66, %c0_67, %c0_68] : memref<1x1x256xf32, #tpu.memory_space<vmem>>, vector<1x1x256xf32>
    %154 = vector.shape_cast %153 : vector<1x1x256xf32> to vector<1x256xf32>
    %155 = vector.broadcast %154 : vector<1x256xf32> to vector<16x256xf32>
    %156 = arith.addf %152, %155 : vector<16x256xf32>
    %157 = arith.addf %156, %3 : vector<16x256xf32>
    %c0_69 = arith.constant 0 : index
    %c0_70 = arith.constant 0 : index
    %c0_71 = arith.constant 0 : index
    %158 = vector.load %arg8[%c0_69, %c0_70, %c0_71] : memref<1x1x256xf32, #tpu.memory_space<vmem>>, vector<1x1x256xf32>
    %159 = vector.shape_cast %158 : vector<1x1x256xf32> to vector<1x256xf32>
    %c0_72 = arith.constant 0 : index
    %c0_73 = arith.constant 0 : index
    %c0_74 = arith.constant 0 : index
    %160 = vector.load %arg9[%c0_72, %c0_73, %c0_74] : memref<1x1x256xf32, #tpu.memory_space<vmem>>, vector<1x1x256xf32>
    %161 = vector.shape_cast %160 : vector<1x1x256xf32> to vector<1x256xf32>
    %cst_75 = arith.constant dense<0.000000e+00> : vector<16xf32>
    %162 = vector.multi_reduction <add>, %157, %cst_75 [1] : vector<16x256xf32> to vector<16xf32>
    %163 = vector.shape_cast %162 : vector<16xf32> to vector<16x1xf32>
    %cst_76 = arith.constant 2.560000e+02 : f32
    %164 = vector.broadcast %cst_76 : f32 to vector<16x1xf32>
    %165 = arith.divf %163, %164 : vector<16x1xf32>
    %166 = vector.broadcast %165 : vector<16x1xf32> to vector<16x256xf32>
    %167 = arith.subf %157, %166 : vector<16x256xf32>
    %168 = arith.mulf %167, %167 : vector<16x256xf32>
    %cst_77 = arith.constant dense<0.000000e+00> : vector<16xf32>
    %169 = vector.multi_reduction <add>, %168, %cst_77 [1] : vector<16x256xf32> to vector<16xf32>
    %170 = vector.shape_cast %169 : vector<16xf32> to vector<16x1xf32>
    %cst_78 = arith.constant 2.560000e+02 : f32
    %171 = vector.broadcast %cst_78 : f32 to vector<16x1xf32>
    %172 = arith.divf %170, %171 : vector<16x1xf32>
    %173 = vector.broadcast %165 : vector<16x1xf32> to vector<16x256xf32>
    %174 = arith.subf %157, %173 : vector<16x256xf32>
    %cst_79 = arith.constant 9.99999996E-13 : f32
    %175 = vector.broadcast %cst_79 : f32 to vector<16x1xf32>
    %176 = arith.addf %172, %175 : vector<16x1xf32>
    %177 = math.rsqrt %176 : vector<16x1xf32>
    %178 = vector.broadcast %177 : vector<16x1xf32> to vector<16x256xf32>
    %179 = arith.mulf %174, %178 : vector<16x256xf32>
    %180 = vector.broadcast %159 : vector<1x256xf32> to vector<16x256xf32>
    %181 = arith.mulf %179, %180 : vector<16x256xf32>
    %182 = vector.broadcast %161 : vector<1x256xf32> to vector<16x256xf32>
    %183 = arith.addf %181, %182 : vector<16x256xf32>
    %184 = arith.truncf %183 : vector<16x256xf32> to vector<16x256xbf16>
    %c0_80 = arith.constant 0 : index
    %c0_81 = arith.constant 0 : index
    %c0_82 = arith.constant 0 : index
    %185 = vector.load %arg10[%c0_80, %c0_81, %c0_82] : memref<1x256x512xbf16, #tpu.memory_space<vmem>>, vector<1x256x512xbf16>
    %186 = vector.shape_cast %185 : vector<1x256x512xbf16> to vector<256x512xbf16>
    %cst_83 = arith.constant dense<0.000000e+00> : vector<16x512xf32>
    %187 = tpu.matmul %184, %186, %cst_83 {dimension_numbers = #tpu.dot_dimension_numbers<[1], [0], [0], [1], [0, 0, 1, 1], [], []>} : vector<16x256xbf16>, vector<256x512xbf16>, vector<16x512xf32> -> vector<16x512xf32>
    %c0_84 = arith.constant 0 : index
    %c0_85 = arith.constant 0 : index
    %c0_86 = arith.constant 0 : index
    %188 = vector.load %arg11[%c0_84, %c0_85, %c0_86] : memref<1x1x512xf32, #tpu.memory_space<vmem>>, vector<1x1x512xf32>
    %189 = vector.shape_cast %188 : vector<1x1x512xf32> to vector<1x512xf32>
    %190 = vector.broadcast %189 : vector<1x512xf32> to vector<16x512xf32>
    %191 = arith.addf %187, %190 : vector<16x512xf32>
    %cst_87 = arith.constant 5.000000e-01 : f32
    %192 = vector.broadcast %cst_87 : f32 to vector<16x512xf32>
    %193 = arith.mulf %192, %191 : vector<16x512xf32>
    %cst_88 = arith.constant 4.471500e-02 : f32
    %194 = vector.broadcast %cst_88 : f32 to vector<16x512xf32>
    %195 = arith.mulf %194, %191 : vector<16x512xf32>
    %196 = arith.mulf %195, %191 : vector<16x512xf32>
    %197 = arith.mulf %196, %191 : vector<16x512xf32>
    %198 = arith.addf %191, %197 : vector<16x512xf32>
    %cst_89 = arith.constant 0.797884583 : f32
    %199 = vector.broadcast %cst_89 : f32 to vector<16x512xf32>
    %200 = arith.mulf %199, %198 : vector<16x512xf32>
    %201 = math.tanh %200 : vector<16x512xf32>
    %cst_90 = arith.constant 1.000000e+00 : f32
    %202 = vector.broadcast %cst_90 : f32 to vector<16x512xf32>
    %203 = arith.addf %202, %201 : vector<16x512xf32>
    %204 = arith.mulf %193, %203 : vector<16x512xf32>
    %205 = arith.truncf %204 : vector<16x512xf32> to vector<16x512xbf16>
    %c0_91 = arith.constant 0 : index
    %c0_92 = arith.constant 0 : index
    %c0_93 = arith.constant 0 : index
    %206 = vector.load %arg12[%c0_91, %c0_92, %c0_93] : memref<1x512x256xbf16, #tpu.memory_space<vmem>>, vector<1x512x256xbf16>
    %207 = vector.shape_cast %206 : vector<1x512x256xbf16> to vector<512x256xbf16>
    %cst_94 = arith.constant dense<0.000000e+00> : vector<16x256xf32>
    %208 = tpu.matmul %205, %207, %cst_94 {dimension_numbers = #tpu.dot_dimension_numbers<[1], [0], [0], [1], [0, 0, 1, 1], [], []>} : vector<16x512xbf16>, vector<512x256xbf16>, vector<16x256xf32> -> vector<16x256xf32>
    %c0_95 = arith.constant 0 : index
    %c0_96 = arith.constant 0 : index
    %c0_97 = arith.constant 0 : index
    %209 = vector.load %arg13[%c0_95, %c0_96, %c0_97] : memref<1x1x256xf32, #tpu.memory_space<vmem>>, vector<1x1x256xf32>
    %210 = vector.shape_cast %209 : vector<1x1x256xf32> to vector<1x256xf32>
    %211 = vector.broadcast %210 : vector<1x256xf32> to vector<16x256xf32>
    %212 = arith.addf %208, %211 : vector<16x256xf32>
    %213 = arith.addf %212, %183 : vector<16x256xf32>
    %c0_98 = arith.constant 0 : index
    %c0_99 = arith.constant 0 : index
    %c0_100 = arith.constant 0 : index
    %214 = vector.load %arg14[%c0_98, %c0_99, %c0_100] : memref<1x1x256xf32, #tpu.memory_space<vmem>>, vector<1x1x256xf32>
    %215 = vector.shape_cast %214 : vector<1x1x256xf32> to vector<1x256xf32>
    %c0_101 = arith.constant 0 : index
    %c0_102 = arith.constant 0 : index
    %c0_103 = arith.constant 0 : index
    %216 = vector.load %arg15[%c0_101, %c0_102, %c0_103] : memref<1x1x256xf32, #tpu.memory_space<vmem>>, vector<1x1x256xf32>
    %217 = vector.shape_cast %216 : vector<1x1x256xf32> to vector<1x256xf32>
    %cst_104 = arith.constant dense<0.000000e+00> : vector<16xf32>
    %218 = vector.multi_reduction <add>, %213, %cst_104 [1] : vector<16x256xf32> to vector<16xf32>
    %219 = vector.shape_cast %218 : vector<16xf32> to vector<16x1xf32>
    %cst_105 = arith.constant 2.560000e+02 : f32
    %220 = vector.broadcast %cst_105 : f32 to vector<16x1xf32>
    %221 = arith.divf %219, %220 : vector<16x1xf32>
    %222 = vector.broadcast %221 : vector<16x1xf32> to vector<16x256xf32>
    %223 = arith.subf %213, %222 : vector<16x256xf32>
    %224 = arith.mulf %223, %223 : vector<16x256xf32>
    %cst_106 = arith.constant dense<0.000000e+00> : vector<16xf32>
    %225 = vector.multi_reduction <add>, %224, %cst_106 [1] : vector<16x256xf32> to vector<16xf32>
    %226 = vector.shape_cast %225 : vector<16xf32> to vector<16x1xf32>
    %cst_107 = arith.constant 2.560000e+02 : f32
    %227 = vector.broadcast %cst_107 : f32 to vector<16x1xf32>
    %228 = arith.divf %226, %227 : vector<16x1xf32>
    %229 = vector.broadcast %221 : vector<16x1xf32> to vector<16x256xf32>
    %230 = arith.subf %213, %229 : vector<16x256xf32>
    %cst_108 = arith.constant 9.99999996E-13 : f32
    %231 = vector.broadcast %cst_108 : f32 to vector<16x1xf32>
    %232 = arith.addf %228, %231 : vector<16x1xf32>
    %233 = math.rsqrt %232 : vector<16x1xf32>
    %234 = vector.broadcast %233 : vector<16x1xf32> to vector<16x256xf32>
    %235 = arith.mulf %230, %234 : vector<16x256xf32>
    %236 = vector.broadcast %215 : vector<1x256xf32> to vector<16x256xf32>
    %237 = arith.mulf %235, %236 : vector<16x256xf32>
    %238 = vector.broadcast %217 : vector<1x256xf32> to vector<16x256xf32>
    %239 = arith.addf %237, %238 : vector<16x256xf32>
    %c0_109 = arith.constant 0 : index
    %c0_110 = arith.constant 0 : index
    %240 = vector.load %arg19[%c0_109, %c0_110] : memref<16x256xf32, #tpu.memory_space<vmem>>, vector<16x256xf32>
    tpu.vector_store %arg19[%c0_109, %c0_110], %239 {strides = array<i32>} : memref<16x256xf32, #tpu.memory_space<vmem>>, vector<16x256xf32>,
    %c1_i32 = arith.constant 1 : i32
    %241 = arith.cmpi eq, %arg0, %c1_i32 : i32
    %242 = arith.extui %241 : i1 to i32
    %c0_i32_111 = arith.constant 0 : i32
    %243 = arith.cmpi ne, %242, %c0_i32_111 : i32
    scf.if %243 {
      %244 = arith.truncf %239 : vector<16x256xf32> to vector<16x256xbf16>
      %c0_112 = arith.constant 0 : index
      %c0_113 = arith.constant 0 : index
      %245 = vector.load %arg16[%c0_112, %c0_113] : memref<256x128xbf16, #tpu.memory_space<vmem>>, vector<256x128xbf16>
      %cst_114 = arith.constant dense<0.000000e+00> : vector<16x128xf32>
      %246 = tpu.matmul %244, %245, %cst_114 {dimension_numbers = #tpu.dot_dimension_numbers<[1], [0], [0], [1], [0, 0, 1, 1], [], []>} : vector<16x256xbf16>, vector<256x128xbf16>, vector<16x128xf32> -> vector<16x128xf32>
      %c0_115 = arith.constant 0 : index
      %c0_116 = arith.constant 0 : index
      %247 = vector.load %arg17[%c0_115, %c0_116] : memref<1x128xf32, #tpu.memory_space<vmem>>, vector<1x128xf32>
      %248 = vector.broadcast %247 : vector<1x128xf32> to vector<16x128xf32>
      %249 = arith.addf %246, %248 : vector<16x128xf32>
      %c0_117 = arith.constant 0 : index
      %c0_118 = arith.constant 0 : index
      %250 = vector.load %arg18[%c0_117, %c0_118] : memref<16x128xf32, #tpu.memory_space<vmem>>, vector<16x128xf32>
      tpu.vector_store %arg18[%c0_117, %c0_118], %249 {strides = array<i32>} : memref<16x128xf32, #tpu.memory_space<vmem>>, vector<16x128xf32>,
    } else {
    }
    return
  }
  func.func @transform_0(%arg0: i32) -> (i32, i32) {
    %c0_i32 = arith.constant 0 : i32
    %c0_i32_0 = arith.constant 0 : i32
    %c0_i32_1 = arith.constant 0 : i32
    return %c0_i32, %c0_i32_0 : i32, i32
  }
  func.func @transform_1(%arg0: i32) -> (i32, i32) {
    %c0_i32 = arith.constant 0 : i32
    %c0_i32_0 = arith.constant 0 : i32
    %c0_i32_1 = arith.constant 0 : i32
    return %c0_i32, %c0_i32_0 : i32, i32
  }
  func.func @transform_2(%arg0: i32) -> (i32, i32) {
    %c0_i32 = arith.constant 0 : i32
    %c0_i32_0 = arith.constant 0 : i32
    %c0_i32_1 = arith.constant 0 : i32
    return %c0_i32, %c0_i32_0 : i32, i32
  }
  func.func @transform_3(%arg0: i32) -> (i32, i32, i32) {
    %c0_i32 = arith.constant 0 : i32
    %c0_i32_0 = arith.constant 0 : i32
    %c0_i32_1 = arith.constant 0 : i32
    return %arg0, %c0_i32, %c0_i32_0 : i32, i32, i32
  }
  func.func @transform_4(%arg0: i32) -> (i32, i32, i32) {
    %c0_i32 = arith.constant 0 : i32
    %c0_i32_0 = arith.constant 0 : i32
    %c0_i32_1 = arith.constant 0 : i32
    return %arg0, %c0_i32, %c0_i32_0 : i32, i32, i32
  }
  func.func @transform_5(%arg0: i32) -> (i32, i32, i32) {
    %c0_i32 = arith.constant 0 : i32
    %c0_i32_0 = arith.constant 0 : i32
    %c0_i32_1 = arith.constant 0 : i32
    return %arg0, %c0_i32, %c0_i32_0 : i32, i32, i32
  }
  func.func @transform_6(%arg0: i32) -> (i32, i32, i32) {
    %c0_i32 = arith.constant 0 : i32
    %c0_i32_0 = arith.constant 0 : i32
    %c0_i32_1 = arith.constant 0 : i32
    return %arg0, %c0_i32, %c0_i32_0 : i32, i32, i32
  }
  func.func @transform_7(%arg0: i32) -> (i32, i32, i32) {
    %c0_i32 = arith.constant 0 : i32
    %c0_i32_0 = arith.constant 0 : i32
    %c0_i32_1 = arith.constant 0 : i32
    return %arg0, %c0_i32, %c0_i32_0 : i32, i32, i32
  }
  func.func @transform_8(%arg0: i32) -> (i32, i32, i32) {
    %c0_i32 = arith.constant 0 : i32
    %c0_i32_0 = arith.constant 0 : i32
    %c0_i32_1 = arith.constant 0 : i32
    return %arg0, %c0_i32, %c0_i32_0 : i32, i32, i32
  }
  func.func @transform_9(%arg0: i32) -> (i32, i32, i32) {
    %c0_i32 = arith.constant 0 : i32
    %c0_i32_0 = arith.constant 0 : i32
    %c0_i32_1 = arith.constant 0 : i32
    return %arg0, %c0_i32, %c0_i32_0 : i32, i32, i32
  }
  func.func @transform_10(%arg0: i32) -> (i32, i32, i32) {
    %c0_i32 = arith.constant 0 : i32
    %c0_i32_0 = arith.constant 0 : i32
    %c0_i32_1 = arith.constant 0 : i32
    return %arg0, %c0_i32, %c0_i32_0 : i32, i32, i32
  }
  func.func @transform_11(%arg0: i32) -> (i32, i32, i32) {
    %c0_i32 = arith.constant 0 : i32
    %c0_i32_0 = arith.constant 0 : i32
    %c0_i32_1 = arith.constant 0 : i32
    return %arg0, %c0_i32, %c0_i32_0 : i32, i32, i32
  }
  func.func @transform_12(%arg0: i32) -> (i32, i32, i32) {
    %c0_i32 = arith.constant 0 : i32
    %c0_i32_0 = arith.constant 0 : i32
    %c0_i32_1 = arith.constant 0 : i32
    return %arg0, %c0_i32, %c0_i32_0 : i32, i32, i32
  }
  func.func @transform_13(%arg0: i32) -> (i32, i32, i32) {
    %c0_i32 = arith.constant 0 : i32
    %c0_i32_0 = arith.constant 0 : i32
    %c0_i32_1 = arith.constant 0 : i32
    return %arg0, %c0_i32, %c0_i32_0 : i32, i32, i32
  }
  func.func @transform_14(%arg0: i32) -> (i32, i32, i32) {
    %c0_i32 = arith.constant 0 : i32
    %c0_i32_0 = arith.constant 0 : i32
    %c0_i32_1 = arith.constant 0 : i32
    return %arg0, %c0_i32, %c0_i32_0 : i32, i32, i32
  }
  func.func @transform_15(%arg0: i32) -> (i32, i32) {
    %c0_i32 = arith.constant 0 : i32
    %c0_i32_0 = arith.constant 0 : i32
    %c0_i32_1 = arith.constant 0 : i32
    return %c0_i32, %c0_i32_0 : i32, i32
  }
  func.func @transform_16(%arg0: i32) -> (i32, i32) {
    %c0_i32 = arith.constant 0 : i32
    %c0_i32_0 = arith.constant 0 : i32
    %c0_i32_1 = arith.constant 0 : i32
    return %c0_i32, %c0_i32_0 : i32, i32
  }
  func.func @transform_17(%arg0: i32) -> (i32, i32) {
    %c0_i32 = arith.constant 0 : i32
    %c0_i32_0 = arith.constant 0 : i32
    %c0_i32_1 = arith.constant 0 : i32
    return %c0_i32, %c0_i32_0 : i32, i32
  }
}

</mosaic_0001>

<bundles_post_ra>
// kernel: doc_cls_forward.1
= control target key start
LH: loop header
LB: loop body
LE: loop exit
PB: predicated region body
PF: predicated region fallthrough
CT: control target
= control target key end

     0   :  { %s9164_s0 = inlined_call_operand.vmem [shape: f32[16,256], index: 0, kind: input, shape index: {}]   ;;  %s9165_s1 = inlined_call_operand.hbm [shape: f32[1,256], index: 1, kind: input, shape index: {}]   ;;  %s9166_s2 = inlined_call_operand.hbm [shape: f32[1,256], index: 2, kind: input, shape index: {}]   ;;  %s9167_s3 = inlined_call_operand.hbm [shape: bf16[2,256,1536], index: 3, kind: input, shape index: {}]   ;;  %s9168_s4 = inlined_call_operand.hbm [shape: f32[2,1,1536], index: 4, kind: input, shape index: {}]   ;;  %s9169_s5 = inlined_call_operand.hbm [shape: bf16[2,512,256], index: 5, kind: input, shape index: {}]   ;;  %s9170_s6 = inlined_call_operand.hbm [shape: f32[2,1,256], index: 6, kind: input, shape index: {}]   ;;  %s9171_s7 = inlined_call_operand.hbm [shape: f32[2,1,256], index: 7, kind: input, shape index: {}]   ;;  %s9172_s8 = inlined_call_operand.hbm [shape: f32[2,1,256], index: 8, kind: input, shape index: {}]   ;;  %s9173_s9 = inlined_call_operand.hbm [shape: bf16[2,256,512], index: 9, kind: input, shape index: {}]   ;;  %s9174_s10 = inlined_call_operand.hbm [shape: f32[2,1,512], index: 10, kind: input, shape index: {}]   ;;  %s9175_s11 = inlined_call_operand.hbm [shape: bf16[2,512,256], index: 11, kind: input, shape index: {}]   ;;  %s9176_s12 = inlined_call_operand.hbm [shape: f32[2,1,256], index: 12, kind: input, shape index: {}]   ;;  %s9177_s13 = inlined_call_operand.hbm [shape: f32[2,1,256], index: 13, kind: input, shape index: {}]   ;;  %s9178_s14 = inlined_call_operand.hbm [shape: f32[2,1,256], index: 14, kind: input, shape index: {}]   ;;  %s9179_s15 = inlined_call_operand.hbm [shape: bf16[256,128], index: 15, kind: input, shape index: {}]   ;;  %s9180_s16 = inlined_call_operand.hbm [shape: f32[1,128], index: 16, kind: input, shape index: {}]   ;;  %s9181_s17 = inlined_call_operand.vmem [shape: f32[16,128], index: 17, kind: output, shape index: {}]  }
   0x1   :  { %9207 = sst [smem:[#allocation35_spill]] %s9164_s0 }
   0x2   :  { %9208 = sst [smem:[#allocation36_spill]] %s9165_s1 }
   0x3   :  { %9209 = sst [smem:[#allocation37_spill]] %s9167_s3 }
   0x4   :  { %9210 = sst [smem:[#allocation38_spill]] %s9168_s4 }
   0x5   :  { %9211 = sst [smem:[#allocation39_spill]] %s9169_s5 }
   0x6   :  { %9212 = sst [smem:[#allocation40_spill]] %s9170_s6 }
   0x7   :  { %9213 = sst [smem:[#allocation41_spill]] %s9171_s7 }
   0x8   :  { %9214 = sst [smem:[#allocation42_spill]] %s9177_s13 }
   0x9   :  { %9215 = sst [smem:[#allocation43_spill]] %s9178_s14 }
   0xa   :  { %9216 = sst [smem:[#allocation44_spill]] %s9179_s15 }
   0xb   :  { %9217 = sst [smem:[#allocation45_spill]] %s9180_s16 }
   0xc   :  { %9218 = sst [smem:[#allocation46_spill]] %s9181_s17 }
   0xd   :  { %22 = vsyncpa [#allocation5], 0 }
   0xe   :  { %23 = vsyncpa [#allocation7], 0 }
   0xf   :  { %24 = vsyncpa [#allocation22], 0  ;;  %s7996_s24 = smov 0   ;;  %s7998_s25 = smov 0  }
  0x10   :  { %s8000_s26 = smov 0   ;;  %s8002_s27 = smov 0  }
  0x11 LB: > { %9219 = sst [smem:[#allocation28_spill]] %s7870_s25  ;;  %s8015_s28 = sadd.s32 4294967295, %s7878_s27   ;;  %s7878_s27 = sphi %s8002_s27, %s9269_s27   ;;  %s7874_s26 = sphi %s8000_s26, %s9272_s26   ;;  %s7870_s25 = sphi %s7998_s25, %s9271_s25   ;;  %s7866_s24 = sphi %s7996_s24, %s9270_s24  }
  0x12   : > { %9220 = sst [smem:[#allocation29_spill]] %s7874_s26  ;;  %s8018_s29 = sadd.s32 1, %s7878_s27  }
  0x13   : > { %9221 = sst [smem:[#allocation30_spill]] %s8015_s28  ;;  %s97_s0 = ssub.s32 %s7878_s27, %s8018_s29 }
  0x14   : > { %9222 = sst [smem:[#allocation31_spill]] %s8018_s29  ;;  %s100_s30 = sadd.s32 1, %s7874_s26 }
  0x15   : > { %p98_p0 = scmp.eq.s32.totalorder %s97_s0, 0  ;;  %p107_p1 = scmp.ne.s32.totalorder %s7874_s26, %s7870_s25 }
  0x16   : > { %p108_p2 = scmp.eq.s32.totalorder %s7878_s27, 0  ;;  %p113_p3 = scmp.ne.s32.totalorder %s7870_s25, %s7866_s24 }
  0x17   : > { %s8028_s18 = scalar_select %p98_p0, %s7874_s26, %s100_s30  }
  0x18   : > { %p8030_p4 = por %p108_p2, %p107_p1  ;;  %p9183_p5 = scmp.eq.s32.totalorder %s8015_s28, 0 }
  0x19   : > { %9223 = sst [smem:[#allocation32_spill]] %s8028_s18  ;;  %p5971_p6 = scmp.ge.s32.totalorder %s7878_s27, 1 }
  0x1a   : > { %p473_p7 = scmp.lt.s32.totalorder %s7878_s27, 3  ;;  %p8039_p8 = por %p9183_p5, %p113_p3 }
  0x1b   : > { %s7880_s21 = smov [#allocation4]   ;;  %p6681_p12 = scmp.lt.s32.totalorder %s7878_s27, 2 }
  0x1c   : > { %s9225_s1 = scalar_select %p8039_p8, 1, 0 }
  0x1d   : > { %p8044_p10 = pnand %p5971_p6, %p473_p7  ;;  %s489_s22 = sshll.u32 %s7880_s21, 4  ;;  %s490_s22 = int_to_ptr.vmem [resolvable:$true] %s489_s22 }
  0x1e   : > { %9226 = sst [smem:[#allocation33_spill]] %s9225_s1  ;;  %s535_s23 = sand.u32 1, %s7878_s27  }
  0x1f   : > { %s9227_s20 = scalar_select %p8044_p10, 1, 0 }
  0x20   : > { %p6627_p11 = pneg %p8044_p10  ;;  %p8060_p0 = pnand %p6681_p12, %p8030_p4 }
  0x21   : > { %9228 = sst [smem:[#allocation34_spill]] %s9227_s20  ;;  %s8065_s30 = sand.u32 1, %s7874_s26  }
  0x22   : > { %p8054_p13 = pnand %p6627_p11, %p9183_p5  ;;  %s6581_s21 = smul.u32 1536, %s8065_s30 }
  0x23   : > { %s7399_s18 = scalar_lea.vmem %s490_s22, 32  ;;  %p7407_p7 = scmp.lt.s32.totalorder %s490_s22, %s490_s22 }
  0x24   : > { %s9229_s24 = scalar_select %p8054_p13, 1, 0 }
  0x25   : > { %p9195_p1 = pneg %p8054_p13  ;;  %p7400_p2 = scmp.ne.s32.totalorder %s490_s22, %s7399_s18 }
  0x26   : > { %p7408_p11 = scmp.lt.s32.totalorder %s7399_s18, %s7399_s18 }
  0x27   : > { %p7402_p3 = pnand %p7400_p2, %p9195_p1 }
  0x28   : > { %p7409_p9 = por %p7408_p11, %p7407_p7 }
  0x29   : > { %p7403_p6 = pneg %p7402_p3 }
  0x2b   : > { %p7410_p5 = pnand %p7409_p9, %p7403_p6 }
  0x2d   : > { %7413 = shalt.err (!%p7410_p5)
}
  0x2e   : > { %s9231_s29 = sld [smem:[#allocation36_spill]]  ;;  %s6582_s17 = smul.u32 24576, %s7878_s27 }
  0x2f   : > { %s539_s1 = scalar_lea.vmem [#allocation8], %s6581_s21  ;;  %s9232_s3 = sld [smem:[#allocation37_spill]] }
  0x30   : > { %s546_s25 = sshll.u32 %s539_s1, 4  ;;  %s8086_s16 = scalar_lea.sflag [#allocation5], %s535_s23  ;;  %s8079_s25 = int_to_ptr.vmem [resolvable:$true] %s546_s25 }
  0x31   : > { %p8092_p5 = pneg %p8060_p0 }
  0x33   : > { %s9233_s26 = scalar_select %p8092_p5, 1, 0 }
  0x34   : > { %6630 = dma.hbm_to_vmem [thread:$0]  (!%p8054_p13), %s9231_s29, 32, %s490_s22, [#allocation5]  }
  0x35   : > { %s8084_s18 = scalar_lea.hbm %s9232_s3, %s6582_s17  ;;  %s7419_s17 = scalar_lea.hbm %s9232_s3, 49152 }
  0x36   : > { %s7414_s14 = scalar_lea.hbm %s8084_s18, 24576  ;;  %p7420_p2 = scmp.lt.s32.totalorder %s8084_s18, %s9232_s3 }
  0x37   : > { %p7415_p4 = scmp.ne.s32.totalorder %s8084_s18, %s7414_s14  ;;  %p7421_p3 = scmp.lt.s32.totalorder %s7419_s17, %s7414_s14 }
  0x39   : > { %p7417_p9 = pnand %p8092_p5, %p7415_p4  ;;  %p7422_p6 = por %p7421_p3, %p7420_p2 }
  0x3b   : > { %p7418_p12 = pneg %p7417_p9 }
  0x3d   : > { %p7423_p7 = pnand %p7422_p6, %p7418_p12 }
  0x3f   : > { %7426 = shalt.err (!%p7423_p7)
}
  0x40   : > { %s7427_s22 = scalar_lea.vmem %s8079_s25, 24576  ;;  %s7881_s23 = smov [#allocation8]  }
  0x41   : > { %p7428_p11 = scmp.ne.s32.totalorder %s8079_s25, %s7427_s22  ;;  %s7432_s21 = sshll.u32 %s7881_s23, 4  ;;  %s7433_s21 = int_to_ptr.vmem [resolvable:$false] %s7432_s21 }
  0x42   : > { %s7434_s19 = scalar_lea.vmem %s7433_s21, 49152  ;;  %p7435_p1 = scmp.lt.s32.totalorder %s8079_s25, %s7433_s21 }
  0x43   : > { %p7430_p4 = pnand %p7428_p11, %p8092_p5  ;;  %p7436_p8 = scmp.lt.s32.totalorder %s7434_s19, %s7427_s22 }
  0x45   : > { %p7431_p9 = pneg %p7430_p4  ;;  %p7437_p10 = por %p7436_p8, %p7435_p1 }
  0x47   : > { %p7438_p13 = pnand %p7437_p10, %p7431_p9 }
  0x49   : > { %7441 = shalt.err (!%p7438_p13)
}
  0x4a   : > { %s7882_s14 = smov 768   ;;  %s7883_s29 = smov 48  }
  0x4b   : > { %6643 = dma.hbm_to_vmem [thread:$0]  (!%p8060_p0), %s8084_s18, 24576, %s8079_s25, %s8086_s16, %s7882_s14, %s7882_s14, %s7883_s29  }
  0x4c   : > { %s6583_s28 = smul.u32 12, %s8065_s30  ;;  %s8117_s17 = sshll.u32 %s8065_s30, 9 }
  0x4d   : > { %s6584_s1 = smul.u32 192, %s7878_s27  ;;  %s8121_s20 = sshll.u32 %s7878_s27, 13 }
  0x4e   : > { %s9234_s4 = sld [smem:[#allocation38_spill]]  ;;  %s560_s19 = scalar_lea.vmem [#allocation9], %s6583_s28 }
  0x4f   : > { %s568_s3 = sshll.u32 %s560_s19, 4  ;;  %s9235_s5 = sld [smem:[#allocation39_spill]]  ;;  %s569_s3 = int_to_ptr.vmem [resolvable:$true] %s568_s3 }
  0x54   : > { %s8126_s21 = scalar_lea.hbm %s9234_s4, %s6584_s1  ;;  %s7447_s1 = scalar_lea.hbm %s9234_s4, 384 }
  0x55   : > { %s8132_s18 = scalar_lea.hbm %s9235_s5, %s8121_s20  ;;  %s7442_s14 = scalar_lea.hbm %s8126_s21, 192 }
  0x56   : > { %p7443_p8 = scmp.ne.s32.totalorder %s8126_s21, %s7442_s14  ;;  %p7448_p1 = scmp.lt.s32.totalorder %s8126_s21, %s9234_s4 }
  0x57   : > { %p7449_p12 = scmp.lt.s32.totalorder %s7447_s1, %s7442_s14 }
  0x58   : > { %p7445_p10 = pnand %p7443_p8, %p8092_p5 }
  0x59   : > { %p7450_p2 = por %p7449_p12, %p7448_p1 }
  0x5a   : > { %p7446_p13 = pneg %p7445_p10 }
  0x5c   : > { %p7451_p3 = pnand %p7450_p2, %p7446_p13 }
  0x5e   : > { %7454 = shalt.err (!%p7451_p3)
}
  0x5f   : > { %s7455_s15 = scalar_lea.vmem %s569_s3, 192  ;;  %s7884_s28 = smov [#allocation9]  }
  0x60   : > { %p7456_p6 = scmp.ne.s32.totalorder %s569_s3, %s7455_s15  ;;  %s7460_s19 = sshll.u32 %s7884_s28, 4  ;;  %s7461_s19 = int_to_ptr.vmem [resolvable:$false] %s7460_s19 }
  0x61   : > { %s7462_s25 = scalar_lea.vmem %s7461_s19, 384  ;;  %p7463_p4 = scmp.lt.s32.totalorder %s569_s3, %s7461_s19 }
  0x62   : > { %p7458_p7 = pnand %p7456_p6, %p8092_p5  ;;  %p7464_p9 = scmp.lt.s32.totalorder %s7462_s25, %s7455_s15 }
  0x64   : > { %p7459_p11 = pneg %p7458_p7  ;;  %p7465_p8 = por %p7464_p9, %p7463_p4 }
  0x66   : > { %p7466_p10 = pnand %p7465_p8, %p7459_p11 }
  0x68   : > { %7469 = shalt.err (!%p7466_p10)
}
  0x69   : > { %6646 = dma.hbm_to_vmem [thread:$0]  (!%p8060_p0), %s8126_s21, 192, %s569_s3, %s8086_s16  }
  0x6a   : > { %s579_s13 = scalar_lea.vmem [#allocation10], %s8117_s17  ;;  %s7470_s29 = scalar_lea.hbm %s8132_s18, 8192 }
  0x6b   : > { %s586_s14 = sshll.u32 %s579_s13, 4  ;;  %p7471_p13 = scmp.ne.s32.totalorder %s8132_s18, %s7470_s29  ;;  %s8152_s14 = int_to_ptr.vmem [resolvable:$true] %s586_s14 }
  0x6c   : > { %s7475_s23 = scalar_lea.hbm %s9235_s5, 16384  ;;  %p7476_p2 = scmp.lt.s32.totalorder %s8132_s18, %s9235_s5 }
  0x6d   : > { %p7473_p1 = pnand %p7471_p13, %p8092_p5  ;;  %p7477_p3 = scmp.lt.s32.totalorder %s7475_s23, %s7470_s29 }
  0x6f   : > { %p7474_p12 = pneg %p7473_p1  ;;  %p7478_p6 = por %p7477_p3, %p7476_p2 }
  0x71   : > { %p7479_p7 = pnand %p7478_p6, %p7474_p12 }
  0x73   : > { %7482 = shalt.err (!%p7479_p7)
}
  0x74   : > { %s7483_s3 = scalar_lea.vmem %s8152_s14, 8192  ;;  %s7885_s21 = smov [#allocation10]  }
  0x75   : > { %p7484_p11 = scmp.ne.s32.totalorder %s8152_s14, %s7483_s3  ;;  %s7488_s19 = sshll.u32 %s7885_s21, 4  ;;  %s7489_s19 = int_to_ptr.vmem [resolvable:$false] %s7488_s19 }
  0x76   : > { %s7490_s25 = scalar_lea.vmem %s7489_s19, 16384  ;;  %p7491_p8 = scmp.lt.s32.totalorder %s8152_s14, %s7489_s19 }
  0x77   : > { %p7486_p4 = pnand %p7484_p11, %p8092_p5  ;;  %p7492_p10 = scmp.lt.s32.totalorder %s7490_s25, %s7483_s3 }
  0x79   : > { %p7487_p9 = pneg %p7486_p4  ;;  %p7493_p13 = por %p7492_p10, %p7491_p8 }
  0x7b   : > { %p7494_p1 = pnand %p7493_p13, %p7487_p9 }
  0x7d   : > { %7497 = shalt.err (!%p7494_p1)
}
  0x7e   : > { %s9201_s13 = smov 128   ;;  %s9202_s29 = smov 8  }
  0x7f   : > { %6649 = dma.hbm_to_vmem [thread:$0]  (!%p8060_p0), %s8132_s18, 8192, %s8152_s14, %s8086_s16, %s9201_s13, %s9201_s13, %s9202_s29  }
  0x80   : > { %s8179_s22 = sshll.u32 %s8065_s30, 1  ;;  %s8182_s1 = sshll.u32 %s7878_s27, 5 }
  0x81   : > { %s9236_s6 = sld [smem:[#allocation40_spill]]  ;;  %s600_s3 = scalar_lea.vmem [#allocation11], %s8179_s22 }
  0x82   : > { %s608_s21 = sshll.u32 %s600_s3, 4  ;;  %s9237_s7 = sld [smem:[#allocation41_spill]]  ;;  %s609_s21 = int_to_ptr.vmem [resolvable:$true] %s608_s21 }
  0x87   : > { %s8188_s28 = scalar_lea.hbm %s9236_s6, %s8182_s1  ;;  %s7503_s13 = scalar_lea.hbm %s9236_s6, 64 }
  0x88   : > { %s8195_s14 = scalar_lea.hbm %s9237_s7, %s8182_s1  ;;  %s7498_s25 = scalar_lea.hbm %s8188_s28, 32 }
  0x89   : > { %p7499_p12 = scmp.ne.s32.totalorder %s8188_s28, %s7498_s25  ;;  %p7504_p6 = scmp.lt.s32.totalorder %s8188_s28, %s9236_s6 }
  0x8a   : > { %p7505_p7 = scmp.lt.s32.totalorder %s7503_s13, %s7498_s25 }
  0x8b   : > { %p7501_p2 = pnand %p7499_p12, %p8092_p5 }
  0x8c   : > { %p7506_p11 = por %p7505_p7, %p7504_p6 }
  0x8d   : > { %p7502_p3 = pneg %p7501_p2 }
  0x8f   : > { %p7507_p4 = pnand %p7506_p11, %p7502_p3 }
  0x91   : > { %7510 = shalt.err (!%p7507_p4)
}
  0x92   : > { %s7511_s3 = scalar_lea.vmem %s609_s21, 32  ;;  %s7888_s19 = smov [#allocation11]  }
  0x93   : > { %p7512_p9 = scmp.ne.s32.totalorder %s609_s21, %s7511_s3  ;;  %s7516_s18 = sshll.u32 %s7888_s19, 4  ;;  %s7517_s18 = int_to_ptr.vmem [resolvable:$false] %s7516_s18 }
  0x94   : > { %s7518_s5 = scalar_lea.vmem %s7517_s18, 64  ;;  %p7519_p13 = scmp.lt.s32.totalorder %s609_s21, %s7517_s18 }
  0x95   : > { %p7514_p8 = pnand %p7512_p9, %p8092_p5  ;;  %p7520_p1 = scmp.lt.s32.totalorder %s7518_s5, %s7511_s3 }
  0x97   : > { %p7515_p10 = pneg %p7514_p8  ;;  %p7521_p12 = por %p7520_p1, %p7519_p13 }
  0x99   : > { %p7522_p2 = pnand %p7521_p12, %p7515_p10 }
  0x9b   : > { %7525 = shalt.err (!%p7522_p2)
}
  0x9c   : > { %6652 = dma.hbm_to_vmem [thread:$0]  (!%p8060_p0), %s8188_s28, 32, %s609_s21, %s8086_s16  }
  0x9d   : > { %s619_s4 = scalar_lea.vmem [#allocation12], %s8179_s22  ;;  %s8219_s5 = scalar_lea.hbm %s9172_s8, %s8182_s1 }
  0x9e   : > { %s627_s13 = sshll.u32 %s619_s4, 4  ;;  %s7526_s23 = scalar_lea.hbm %s8195_s14, 32  ;;  %s628_s13 = int_to_ptr.vmem [resolvable:$true] %s627_s13 }
  0x9f   : > { %p7527_p3 = scmp.ne.s32.totalorder %s8195_s14, %s7526_s23  ;;  %s7531_s19 = scalar_lea.hbm %s9237_s7, 64 }
  0xa0   : > { %p7532_p11 = scmp.lt.s32.totalorder %s8195_s14, %s9237_s7  ;;  %p7533_p4 = scmp.lt.s32.totalorder %s7531_s19, %s7526_s23 }
  0xa1   : > { %p7529_p6 = pnand %p7527_p3, %p8092_p5 }
  0xa2   : > { %p7534_p9 = por %p7533_p4, %p7532_p11 }
  0xa3   : > { %p7530_p7 = pneg %p7529_p6 }
  0xa5   : > { %p7535_p8 = pnand %p7534_p9, %p7530_p7 }
  0xa7   : > { %7538 = shalt.err (!%p7535_p8)
}
  0xa8   : > { %s7539_s28 = scalar_lea.vmem %s628_s13, 32  ;;  %s7889_s21 = smov [#allocation12]  }
  0xa9   : > { %p7540_p10 = scmp.ne.s32.totalorder %s628_s13, %s7539_s28  ;;  %s7544_s4 = sshll.u32 %s7889_s21, 4  ;;  %s7545_s4 = int_to_ptr.vmem [resolvable:$false] %s7544_s4 }
  0xaa   : > { %s7546_s29 = scalar_lea.vmem %s7545_s4, 64  ;;  %p7547_p12 = scmp.lt.s32.totalorder %s628_s13, %s7545_s4 }
  0xab   : > { %p7542_p13 = pnand %p7540_p10, %p8092_p5  ;;  %p7548_p2 = scmp.lt.s32.totalorder %s7546_s29, %s7539_s28 }
  0xad   : > { %p7543_p1 = pneg %p7542_p13  ;;  %p7549_p3 = por %p7548_p2, %p7547_p12 }
  0xaf   : > { %p7550_p6 = pnand %p7549_p3, %p7543_p1 }
  0xb1   : > { %7553 = shalt.err (!%p7550_p6)
}
  0xb2   : > { %6655 = dma.hbm_to_vmem [thread:$0]  (!%p8060_p0), %s8195_s14, 32, %s628_s13, %s8086_s16  }
  0xb3   : > { %s638_s6 = scalar_lea.vmem [#allocation13], %s8179_s22  ;;  %s8243_s3 = scalar_lea.hbm %s9173_s9, %s8121_s20 }
  0xb4   : > { %s646_s25 = sshll.u32 %s638_s6, 4  ;;  %s7554_s19 = scalar_lea.hbm %s8219_s5, 32  ;;  %s647_s25 = int_to_ptr.vmem [resolvable:$true] %s646_s25 }
  0xb5   : > { %p7555_p7 = scmp.ne.s32.totalorder %s8219_s5, %s7554_s19  ;;  %s7559_s21 = scalar_lea.hbm %s9172_s8, 64 }
  0xb6   : > { %p7560_p9 = scmp.lt.s32.totalorder %s8219_s5, %s9172_s8  ;;  %p7561_p8 = scmp.lt.s32.totalorder %s7559_s21, %s7554_s19 }
  0xb7   : > { %p7557_p11 = pnand %p7555_p7, %p8092_p5 }
  0xb8   : > { %p7562_p10 = por %p7561_p8, %p7560_p9 }
  0xb9   : > { %p7558_p4 = pneg %p7557_p11 }
  0xbb   : > { %p7563_p13 = pnand %p7562_p10, %p7558_p4 }
  0xbd   : > { %7566 = shalt.err (!%p7563_p13)
}
  0xbe   : > { %s7567_s14 = scalar_lea.vmem %s647_s25, 32  ;;  %s7890_s13 = smov [#allocation13]  }
  0xbf   : > { %p7568_p1 = scmp.ne.s32.totalorder %s647_s25, %s7567_s14  ;;  %s7572_s6 = sshll.u32 %s7890_s13, 4  ;;  %s7573_s6 = int_to_ptr.vmem [resolvable:$false] %s7572_s6 }
  0xc0   : > { %s7574_s23 = scalar_lea.vmem %s7573_s6, 64  ;;  %p7575_p3 = scmp.lt.s32.totalorder %s647_s25, %s7573_s6 }
  0xc1   : > { %p7570_p12 = pnand %p7568_p1, %p8092_p5  ;;  %p7576_p6 = scmp.lt.s32.totalorder %s7574_s23, %s7567_s14 }
  0xc3   : > { %p7571_p2 = pneg %p7570_p12  ;;  %p7577_p7 = por %p7576_p6, %p7575_p3 }
  0xc5   : > { %p7578_p11 = pnand %p7577_p7, %p7571_p2 }
  0xc7   : > { %7581 = shalt.err (!%p7578_p11)
}
  0xc8   : > { %6658 = dma.hbm_to_vmem [thread:$0]  (!%p8060_p0), %s8219_s5, 32, %s647_s25, %s8086_s16  }
  0xc9   : > { %s657_s15 = scalar_lea.vmem [#allocation14], %s8117_s17  ;;  %s7582_s18 = scalar_lea.hbm %s8243_s3, 8192 }
  0xca   : > { %s664_s19 = sshll.u32 %s657_s15, 4  ;;  %p7583_p4 = scmp.ne.s32.totalorder %s8243_s3, %s7582_s18  ;;  %s8263_s19 = int_to_ptr.vmem [resolvable:$true] %s664_s19 }
  0xcb   : > { %s7587_s4 = scalar_lea.hbm %s9173_s9, 16384  ;;  %p7588_p10 = scmp.lt.s32.totalorder %s8243_s3, %s9173_s9 }
  0xcc   : > { %p7585_p9 = pnand %p7583_p4, %p8092_p5  ;;  %p7589_p13 = scmp.lt.s32.totalorder %s7587_s4, %s7582_s18 }
  0xce   : > { %p7586_p8 = pneg %p7585_p9  ;;  %p7590_p1 = por %p7589_p13, %p7588_p10 }
  0xd0   : > { %p7591_p12 = pnand %p7590_p1, %p7586_p8 }
  0xd2   : > { %7594 = shalt.err (!%p7591_p12)
}
  0xd3   : > { %s7595_s5 = scalar_lea.vmem %s8263_s19, 8192  ;;  %s7891_s25 = smov [#allocation14]  }
  0xd4   : > { %p7596_p2 = scmp.ne.s32.totalorder %s8263_s19, %s7595_s5  ;;  %s7600_s13 = sshll.u32 %s7891_s25, 4  ;;  %s7601_s13 = int_to_ptr.vmem [resolvable:$false] %s7600_s13 }
  0xd5   : > { %s7602_s6 = scalar_lea.vmem %s7601_s13, 16384  ;;  %p7603_p7 = scmp.lt.s32.totalorder %s8263_s19, %s7601_s13 }
  0xd6   : > { %p7598_p3 = pnand %p7596_p2, %p8092_p5  ;;  %p7604_p11 = scmp.lt.s32.totalorder %s7602_s6, %s7595_s5 }
  0xd8   : > { %p7599_p6 = pneg %p7598_p3  ;;  %p7605_p4 = por %p7604_p11, %p7603_p7 }
  0xda   : > { %p7606_p9 = pnand %p7605_p4, %p7599_p6 }
  0xdc   : > { %7609 = shalt.err (!%p7606_p9)
}
  0xdd   : > { %s7892_s23 = smov 256   ;;  %s7893_s15 = smov 16  }
  0xde   : > { %6661 = dma.hbm_to_vmem [thread:$0]  (!%p8060_p0), %s8243_s3, 8192, %s8263_s19, %s8086_s16, %s7892_s23, %s7892_s23, %s7893_s15  }
  0xdf   : > { %s5994_s18 = sshll.u32 %s8065_s30, 2  ;;  %s6442_s28 = sshll.u32 %s7878_s27, 6 }
  0xe0   : > { %s8291_s29 = scalar_lea.hbm %s9174_s10, %s6442_s28  ;;  %s678_s14 = scalar_lea.vmem [#allocation15], %s5994_s18 }
  0xe1   : > { %s686_s5 = sshll.u32 %s678_s14, 4  ;;  %s8297_s6 = scalar_lea.hbm %s9175_s11, %s8121_s20  ;;  %s687_s5 = int_to_ptr.vmem [resolvable:$true] %s686_s5 }
  0xe2   : > { %s7610_s7 = scalar_lea.hbm %s8291_s29, 64  ;;  %s7615_s3 = scalar_lea.hbm %s9174_s10, 128 }
  0xe3   : > { %p7611_p8 = scmp.ne.s32.totalorder %s8291_s29, %s7610_s7  ;;  %p7616_p1 = scmp.lt.s32.totalorder %s8291_s29, %s9174_s10 }
  0xe4   : > { %p7617_p12 = scmp.lt.s32.totalorder %s7615_s3, %s7610_s7 }
  0xe5   : > { %p7613_p10 = pnand %p7611_p8, %p8092_p5 }
  0xe6   : > { %p7618_p2 = por %p7617_p12, %p7616_p1 }
  0xe7   : > { %p7614_p13 = pneg %p7613_p10 }
  0xe9   : > { %p7619_p3 = pnand %p7618_p2, %p7614_p13 }
  0xeb   : > { %7622 = shalt.err (!%p7619_p3)
}
  0xec   : > { %s7623_s15 = scalar_lea.vmem %s687_s5, 64  ;;  %s7894_s20 = smov [#allocation15]  }
  0xed   : > { %p7624_p6 = scmp.ne.s32.totalorder %s687_s5, %s7623_s15  ;;  %s7628_s18 = sshll.u32 %s7894_s20, 4  ;;  %s7629_s18 = int_to_ptr.vmem [resolvable:$false] %s7628_s18 }
  0xee   : > { %s7630_s28 = scalar_lea.vmem %s7629_s18, 128  ;;  %p7631_p4 = scmp.lt.s32.totalorder %s687_s5, %s7629_s18 }
  0xef   : > { %p7626_p7 = pnand %p7624_p6, %p8092_p5  ;;  %p7632_p9 = scmp.lt.s32.totalorder %s7630_s28, %s7623_s15 }
  0xf1   : > { %p7627_p11 = pneg %p7626_p7  ;;  %p7633_p8 = por %p7632_p9, %p7631_p4 }
  0xf3   : > { %p7634_p10 = pnand %p7633_p8, %p7627_p11 }
  0xf5   : > { %7637 = shalt.err (!%p7634_p10)
}
  0xf6   : > { %6664 = dma.hbm_to_vmem [thread:$0]  (!%p8060_p0), %s8291_s29, 64, %s687_s5, %s8086_s16  }
  0xf7   : > { %s697_s7 = scalar_lea.vmem [#allocation16], %s8117_s17  ;;  %s8323_s25 = scalar_lea.hbm %s9176_s12, %s8182_s1 }
  0xf8   : > { %s704_s21 = sshll.u32 %s697_s7, 4  ;;  %s7638_s13 = scalar_lea.hbm %s8297_s6, 8192  ;;  %s8317_s21 = int_to_ptr.vmem [resolvable:$true] %s704_s21 }
  0xf9   : > { %p7639_p13 = scmp.ne.s32.totalorder %s8297_s6, %s7638_s13  ;;  %s7643_s3 = scalar_lea.hbm %s9175_s11, 16384 }
  0xfa   : > { %p7644_p2 = scmp.lt.s32.totalorder %s8297_s6, %s9175_s11  ;;  %p7645_p3 = scmp.lt.s32.totalorder %s7643_s3, %s7638_s13 }
  0xfb   : > { %p7641_p1 = pnand %p7639_p13, %p8092_p5 }
  0xfc   : > { %p7646_p6 = por %p7645_p3, %p7644_p2 }
  0xfd   : > { %p7642_p12 = pneg %p7641_p1 }
  0xff   : > { %p7647_p7 = pnand %p7646_p6, %p7642_p12 }
 0x101   : > { %7650 = shalt.err (!%p7647_p7)
}
 0x102   : > { %s7651_s17 = scalar_lea.vmem %s8317_s21, 8192  ;;  %s7895_s5 = smov [#allocation16]  }
 0x103   : > { %p7652_p11 = scmp.ne.s32.totalorder %s8317_s21, %s7651_s17  ;;  %s7656_s23 = sshll.u32 %s7895_s5, 4  ;;  %s7657_s23 = int_to_ptr.vmem [resolvable:$false] %s7656_s23 }
 0x104   : > { %s7658_s15 = scalar_lea.vmem %s7657_s23, 16384  ;;  %p7659_p8 = scmp.lt.s32.totalorder %s8317_s21, %s7657_s23 }
 0x105   : > { %p7654_p4 = pnand %p7652_p11, %p8092_p5  ;;  %p7660_p10 = scmp.lt.s32.totalorder %s7658_s15, %s7651_s17 }
 0x107   : > { %p7655_p9 = pneg %p7654_p4  ;;  %p7661_p13 = por %p7660_p10, %p7659_p8 }
 0x109   : > { %p7662_p1 = pnand %p7661_p13, %p7655_p9 }
 0x10b   : > { %7665 = shalt.err (!%p7662_p1)
}
 0x10c   : > { %s9238_s20 = smov 8   ;;  %s9239_s18 = smov 128  }
 0x10d   : > { %6667 = dma.hbm_to_vmem [thread:$0]  (!%p8060_p0), %s8297_s6, 8192, %s8317_s21, %s8086_s16, %s9239_s18, %s9239_s18, %s9238_s20  }
 0x10e   : > { %s718_s28 = scalar_lea.vmem [#allocation17], %s8179_s22  ;;  %s7896_s4 = smov [#allocation6]  }
 0x10f   : > { %s726_s7 = sshll.u32 %s718_s28, 4  ;;  %s500_s14 = sshll.u32 %s7896_s4, 4  ;;  %s727_s7 = int_to_ptr.vmem [resolvable:$true] %s726_s7  ;;  %s501_s14 = int_to_ptr.vmem [resolvable:$true] %s500_s14 }
 0x110   : > { %s7666_s13 = scalar_lea.hbm %s8323_s25, 32  ;;  %s7671_s3 = scalar_lea.hbm %s9176_s12, 64 }
 0x111   : > { %p7667_p12 = scmp.ne.s32.totalorder %s8323_s25, %s7666_s13  ;;  %p7672_p6 = scmp.lt.s32.totalorder %s8323_s25, %s9176_s12 }
 0x112   : > { %p7673_p7 = scmp.lt.s32.totalorder %s7671_s3, %s7666_s13 }
 0x113   : > { %p7669_p2 = pnand %p7667_p12, %p8092_p5 }
 0x114   : > { %p7674_p11 = por %p7673_p7, %p7672_p6 }
 0x115   : > { %p7670_p3 = pneg %p7669_p2 }
 0x117   : > { %p7675_p4 = pnand %p7674_p11, %p7670_p3 }
 0x119   : > { %7678 = shalt.err (!%p7675_p4)
}
 0x11a   : > { %s7679_s6 = scalar_lea.vmem %s727_s7, 32  ;;  %s7897_s21 = smov [#allocation17]  }
 0x11b   : > { %p7680_p9 = scmp.ne.s32.totalorder %s727_s7, %s7679_s6  ;;  %s7684_s17 = sshll.u32 %s7897_s21, 4  ;;  %s7685_s17 = int_to_ptr.vmem [resolvable:$false] %s7684_s17 }
 0x11c   : > { %s7686_s5 = scalar_lea.vmem %s7685_s17, 64  ;;  %p7687_p13 = scmp.lt.s32.totalorder %s727_s7, %s7685_s17 }
 0x11d   : > { %p7682_p8 = pnand %p7680_p9, %p8092_p5  ;;  %p7688_p1 = scmp.lt.s32.totalorder %s7686_s5, %s7679_s6 }
 0x11f   : > { %p7683_p10 = pneg %p7682_p8  ;;  %p7689_p12 = por %p7688_p1, %p7687_p13 }
 0x121   : > { %p7690_p2 = pnand %p7689_p12, %p7683_p10 }
 0x123   : > { %7693 = shalt.err (!%p7690_p2)
}
 0x124   : > { %6670 = dma.hbm_to_vmem [thread:$0]  (!%p8060_p0), %s8323_s25, 32, %s727_s7, %s8086_s16  }
 0x125   : > { %s7705_s23 = scalar_lea.vmem %s501_s14, 32  ;;  %p9240_p6 = scmp.ne.s32.totalorder %s9229_s24, 0 }
 0x126   : > { %p7706_p3 = scmp.ne.s32.totalorder %s501_s14, %s7705_s23  ;;  %p7713_p9 = scmp.lt.s32.totalorder %s501_s14, %s501_s14 }
 0x127   : > { %p9241_p7 = pneg %p9240_p6  ;;  %p7714_p8 = scmp.lt.s32.totalorder %s7705_s23, %s7705_s23 }
 0x129   : > { %p7708_p11 = pnand %p7706_p3, %p9241_p7  ;;  %p7715_p5 = por %p7714_p8, %p7713_p9 }
 0x12b   : > { %p7709_p4 = pneg %p7708_p11 }
 0x12d   : > { %p7716_p1 = pnand %p7715_p5, %p7709_p4 }
 0x12f   : > { %7719 = shalt.err (!%p7716_p1)
}
 0x130   : > { %6633 = dma.hbm_to_vmem [thread:$0]  (!%p9240_p6), %s9166_s2, 32, %s501_s14, [#allocation7]  }
 0x131   : > { %s9242_s28 = sld [smem:[#allocation42_spill]]  ;;  %s737_s4 = scalar_lea.vmem [#allocation18], %s8179_s22 }
 0x132   : > { %s745_s13 = sshll.u32 %s737_s4, 4  ;;  %p9243_p5 = scmp.ne.s32.totalorder %s9233_s26, 0  ;;  %s746_s13 = int_to_ptr.vmem [resolvable:$true] %s745_s13 }
 0x137   : > { %s743_s7 = scalar_lea.hbm %s9242_s28, %s8182_s1  ;;  %s7725_s19 = scalar_lea.hbm %s9242_s28, 64 }
 0x138   : > { %s7720_s27 = scalar_lea.hbm %s743_s7, 32  ;;  %p7726_p2 = scmp.lt.s32.totalorder %s743_s7, %s9242_s28 }
 0x139   : > { %p7721_p10 = scmp.ne.s32.totalorder %s743_s7, %s7720_s27  ;;  %p7727_p3 = scmp.lt.s32.totalorder %s7725_s19, %s7720_s27 }
 0x13b   : > { %p7723_p13 = pnand %p7721_p10, %p9243_p5  ;;  %p7728_p7 = por %p7727_p3, %p7726_p2 }
 0x13d   : > { %p7724_p12 = pneg %p7723_p13 }
 0x13f   : > { %p7729_p11 = pnand %p7728_p7, %p7724_p12 }
 0x141   : > { %7732 = shalt.err (!%p7729_p11)
}
 0x142   : > { %s7733_s14 = scalar_lea.vmem %s746_s13, 32  ;;  %s7898_s21 = smov [#allocation18]  }
 0x143   : > { %p7734_p4 = scmp.ne.s32.totalorder %s746_s13, %s7733_s14  ;;  %s7738_s17 = sshll.u32 %s7898_s21, 4  ;;  %s7739_s17 = int_to_ptr.vmem [resolvable:$false] %s7738_s17 }
 0x144   : > { %s7740_s5 = scalar_lea.vmem %s7739_s17, 64  ;;  %p7741_p1 = scmp.lt.s32.totalorder %s746_s13, %s7739_s17 }
 0x145   : > { %p7736_p9 = pnand %p7734_p4, %p9243_p5  ;;  %p7742_p10 = scmp.lt.s32.totalorder %s7740_s5, %s7733_s14 }
 0x147   : > { %p7737_p8 = pneg %p7736_p9  ;;  %p7743_p13 = por %p7742_p10, %p7741_p1 }
 0x149   : > { %p7744_p6 = pnand %p7743_p13, %p7737_p8 }
 0x14b   : > { %7747 = shalt.err (!%p7744_p6)
}
 0x14c   : > { %6673 = dma.hbm_to_vmem [thread:$0]  (!%p8060_p0), %s743_s7, 32, %s746_s13, %s8086_s16  }
 0x14d   : > { %s7899_s23 = smov [#allocation20]   ;;  %p9244_p2 = scmp.ne.s32.totalorder %s9229_s24, 0 }
 0x14e   : > { %s510_s15 = sshll.u32 %s7899_s23, 4  ;;  %s511_s15 = int_to_ptr.vmem [resolvable:$true] %s510_s15 }
 0x14f   : > { %s7759_s20 = scalar_lea.vmem %s511_s15, 2048  ;;  %p9245_p3 = pneg %p9244_p2 }
 0x150   : > { %p7760_p12 = scmp.ne.s32.totalorder %s511_s15, %s7759_s20  ;;  %p7767_p4 = scmp.lt.s32.totalorder %s511_s15, %s511_s15 }
 0x151   : > { %p7768_p9 = scmp.lt.s32.totalorder %s7759_s20, %s7759_s20 }
 0x152   : > { %p7762_p7 = pnand %p7760_p12, %p9245_p3 }
 0x153   : > { %p7769_p5 = por %p7768_p9, %p7767_p4 }
 0x154   : > { %p7763_p11 = pneg %p7762_p7 }
 0x156   : > { %p7770_p1 = pnand %p7769_p5, %p7763_p11 }
 0x158   : > { %7773 = shalt.err (!%p7770_p1)
}
 0x159   : > { %s7900_s25 = smov 64   ;;  %s7901_s18 = smov 4  }
 0x15a   : > { %s9246_s13 = sld [smem:[#allocation44_spill]]  ;;  %s7902_s27 = smov [#allocation21]  }
 0x15b   : > { %s524_s30 = sshll.u32 %s7902_s27, 4  ;;  %s9247_s29 = sld [smem:[#allocation43_spill]]  ;;  %s525_s30 = int_to_ptr.vmem [resolvable:$true] %s524_s30 }
 0x15c   : > { %s756_s14 = scalar_lea.vmem [#allocation19], %s8179_s22  ;;  %s7785_s17 = scalar_lea.vmem %s525_s30, 16 }
 0x15d   : > { %s764_s21 = sshll.u32 %s756_s14, 4  ;;  %p7786_p6 = scmp.ne.s32.totalorder %s525_s30, %s7785_s17  ;;  %s765_s21 = int_to_ptr.vmem [resolvable:$true] %s764_s21 }
 0x15e   : > { %p9248_p5 = pmov %p9245_p3  ;;  %s7792_s5 = scalar_lea.vmem %s525_s30, 32 }
 0x15f   : > { %p7793_p13 = scmp.lt.s32.totalorder %s525_s30, %s525_s30  ;;  %p7794_p12 = scmp.lt.s32.totalorder %s7792_s5, %s7785_s17 }
 0x160   : > { %6636 = dma.hbm_to_vmem [thread:$0]  (!%p9244_p2), %s9246_s13, 2048, %s511_s15, [#allocation7], %s7900_s25, %s7900_s25, %s7901_s18  }
 0x161   : > { %s8405_s6 = scalar_lea.hbm %s9247_s29, %s8182_s1  ;;  %p7788_p8 = pnand %p7786_p6, %p9248_p5 }
 0x162   : > { %p7795_p3 = por %p7794_p12, %p7793_p13 }
 0x163   : > { %p7789_p10 = pneg %p7788_p8 }
 0x165   : > { %p7796_p7 = pnand %p7795_p3, %p7789_p10 }
 0x167   : > { %7799 = shalt.err (!%p7796_p7)
}
 0x168   : > { %s9249_s15 = sld [smem:[#allocation45_spill]]  ;;  %s7800_s22 = scalar_lea.hbm %s8405_s6, 32 }
 0x169   : > { %p7801_p11 = scmp.ne.s32.totalorder %s8405_s6, %s7800_s22  ;;  %p9250_p4 = scmp.ne.s32.totalorder %s9233_s26, 0 }
 0x16a   : > { %s7805_s18 = scalar_lea.hbm %s9247_s29, 64  ;;  %p7806_p6 = scmp.lt.s32.totalorder %s8405_s6, %s9247_s29 }
 0x16b   : > { %p7803_p9 = pnand %p7801_p11, %p9250_p4  ;;  %p7807_p5 = scmp.lt.s32.totalorder %s7805_s18, %s7800_s22 }
 0x16d   : > { %p7804_p1 = pneg %p7803_p9  ;;  %p7808_p8 = por %p7807_p5, %p7806_p6 }
 0x16e   : > { %6639 = dma.hbm_to_vmem [thread:$0]  (!%p9244_p2), %s9249_s15, 16, %s525_s30, [#allocation22]  }
 0x16f   : > { %p7809_p10 = pnand %p7808_p8, %p7804_p1 }
 0x171   : > { %7812 = shalt.err (!%p7809_p10)
}
 0x172   : > { %s7813_s4 = scalar_lea.vmem %s765_s21, 32  ;;  %s7903_s13 = smov [#allocation19]  }
 0x173   : > { %p7814_p2 = scmp.ne.s32.totalorder %s765_s21, %s7813_s4  ;;  %s7818_s27 = sshll.u32 %s7903_s13, 4  ;;  %s7819_s27 = int_to_ptr.vmem [resolvable:$false] %s7818_s27 }
 0x174   : > { %s7820_s30 = scalar_lea.vmem %s7819_s27, 64  ;;  %p7821_p3 = scmp.lt.s32.totalorder %s765_s21, %s7819_s27 }
 0x175   : > { %p7816_p13 = pnand %p7814_p2, %p9250_p4  ;;  %p7822_p7 = scmp.lt.s32.totalorder %s7820_s30, %s7813_s4 }
 0x177   : > { %p7817_p12 = pneg %p7816_p13  ;;  %p7823_p11 = por %p7822_p7, %p7821_p3 }
 0x179   : > { %p7824_p9 = pnand %p7823_p11, %p7817_p12 }
 0x17b   : > { %7827 = shalt.err (!%p7824_p9)
}
 0x17c   : > { %6676 = dma.hbm_to_vmem [thread:$0]  (!%p8060_p0), %s8405_s6, 32, %s765_s21, %s8086_s16  }
 0x17d   : > { %s9251_s3 = sld [smem:[#allocation34_spill]] }
 0x183   : > { %p9252_p1 = scmp.ne.s32.totalorder %s9251_s3, 0 }
 0x184   : > { %s9253_s26 = sld [smem:[#allocation30_spill]] (!%p9252_p1) }
 0x185   : > { %773 = sbr.rel (%p9252_p1) target bundleno = 3347 (0xd13), region = 88 }
 0x18a   : > { %p9254_p4 = scmp.eq.s32.totalorder %s9253_s26, 0 }
 0x18c   : > { %7845 = dma.done.wait (%p9254_p4), [#allocation5], 32   ;;  %p9255_p6 = pmov %p9254_p4 }
 0x18d   : > { %p9256_p5 = pmov %p9254_p4 }
 0x18e   : > { %7847 = vsyncadd (%p9255_p6), [#allocation5], 4294967264 }
 0x18f   : > { %7849 = dma.done.wait (%p9256_p5), [#allocation7], 32   ;;  %p9257_p8 = pmov %p9254_p4 }
 0x190   : > { %s9258_s0 = sld [smem:[#allocation28_spill]]  ;;  %s783_s14 = sand.u32 1, %s9253_s26  }
 0x191   : > { %7851 = vsyncadd (%p9257_p8), [#allocation7], 4294967264  ;;  %s9259_s19 = sld [smem:[#allocation33_spill]]  ;;  %s784_s21 = scalar_lea.sflag [#allocation5], %s783_s14 }
 0x196   : > { %s785_s16 = sand.u32 1, %s9258_s0  }
 0x197   : > { %s6585_s6 = smul.u32 1536, %s785_s16  ;;  %p9260_p0 = scmp.ne.s32.totalorder %s9259_s19, 0 }
 0x199   : > { %s8445_s17 = scalar_lea.vmem [#allocation8], %s6585_s6 }
 0x19a   : > { %7853 = dma.done.wait (%p9260_p0), %s784_s21, 49600  }
 0x19b   : > { %7855 = vsyncadd (%p9260_p0), %s784_s21, 4294917696  ;;  %s6586_s5 = smul.u32 12, %s785_s16  ;;  %s6012_s23 = sshll.u32 %s785_s16, 9 }
 0x19c   : > { %s8451_s1 = sshll.u32 %s785_s16, 1  ;;  %s6017_s15 = sshll.u32 %s785_s16, 2 }
 0x19d   : > { %s8453_s22 = scalar_lea.vmem [#allocation9], %s6586_s5  ;;  %s8455_s20 = scalar_lea.vmem [#allocation10], %s6012_s23 }
 0x19e   : > { %s814_s25 = scalar_lea.vmem [#allocation11], %s8451_s1  ;;  %s823_s18 = scalar_lea.vmem [#allocation12], %s8451_s1 }
 0x19f   : > { %s832_s7 = scalar_lea.vmem [#allocation13], %s8451_s1  ;;  %s8460_s24 = scalar_lea.vmem [#allocation14], %s6012_s23 }
 0x1a0   : > { %s8462_s4 = scalar_lea.vmem [#allocation15], %s6017_s15  ;;  %s8464_s13 = scalar_lea.vmem [#allocation16], %s6012_s23 }
 0x1a1   : > { %s868_s27 = scalar_lea.vmem [#allocation17], %s8451_s1  ;;  %s877_s30 = scalar_lea.vmem [#allocation18], %s8451_s1 }
 0x1a2   : > { %s886_s3 = scalar_lea.vmem [#allocation19], %s8451_s1  ;;  %p9261_p10 = pmov %p9254_p4 }
 0x1a3   : > { %p9262_p2 = pmov %p9254_p4 }
 0x1a4   : > { %7857 = dma.done.wait (%p9261_p10), [#allocation7], 2048  }
 0x1a5   : > { %7859 = vsyncadd (%p9262_p2), [#allocation7], 4294965248  ;;  %p9263_p13 = pmov %p9262_p2 }
 0x1a6   : > { %p9264_p12 = pmov %p9262_p2 }
 0x1a7   : > { %7861 = dma.done.wait (%p9263_p13), [#allocation22], 16  }
 0x1a8   : > { %7863 = vsyncadd (%p9264_p12), [#allocation22], 4294967280  ;;  %p9265_p3 = scmp.ne.s32.totalorder %s9253_s26, 0 }
 0x1a9   : > { %s9266_s14 = sld [smem:[#allocation35_spill]] (!%p9265_p3) }
 0x1aa   : > { %999 = sbr.rel (%p9265_p3) target bundleno = 747 (0x2eb), region = 156 }
 0x1af   : > { %v1000_v0 = vld [vmem:[%s9266_s14] sm:$0xff]  ;;  %v1001_v1 = vld [vmem:[%s9266_s14 + $0x8] sm:$0xff]  ;;  %v1002_v2 = vld [vmem:[%s9266_s14 + $0x10] sm:$0xff]  ;;  %v1040_v24 = vlaneseq }
 0x1b0   : > { %v1006_v3 = vadd.f32 %v1001_v1, %v1000_v0  ;;  %v1003_v4 = vld [vmem:[%s9266_s14 + $0x18] sm:$0xff]  ;;  %v1004_v30 = vld [vmem:[#allocation4] sm:$0x3]  ;;  %v1005_v31 = vld [vmem:[#allocation6] sm:$0x3] }
 0x1b1   : > { %v1009_v5 = vadd.f32 %v1003_v4, %v1002_v2  ;;  %v1041_v27 = vshrl.u32 %v1040_v24, 7 }
 0x1b2   : > { %1007 = vadd.xlane.f32.xlu0 %v1006_v3 }
 0x1b3   : > { %v1042_v28 = vsub.s32 0, %v1041_v27  ;;  %v1046_v29 = vsub.s32 1, %v1041_v27 }
 0x1b5   : > { %v1043_v32 = vrot.slane %v1004_v30, %v1042_v28  ;;  %v1047_v33 = vrot.slane %v1004_v30, %v1046_v29  ;;  %v1058_v35 = vrot.slane %v1005_v31, %v1042_v28  ;;  %v1062_v36 = vrot.slane %v1005_v31, %v1046_v29 }
 0x1b6   : > { %1010 = vadd.xlane.f32.xlu0 %v1009_v5 }
 0x23b   : > { %v1008_v6 = vpop.xlane.xlu0 %1007 }
 0x23c   : > { %v1013_v7 = vmul.f32 0.00390625, %v1008_v6 }
 0x23e   : > { %v1015_v8 = vsub.f32 %v1000_v0, %v1013_v7  ;;  %v1016_v9 = vsub.f32 %v1001_v1, %v1013_v7 }
 0x23f   : > { %v1011_v10 = vpop.xlane.xlu0 %1010 }
 0x240   : > { %v1014_v11 = vmul.f32 0.00390625, %v1011_v10  ;;  %v1019_v12 = vmul.f32 %v1015_v8, %v1015_v8  ;;  %v1020_v13 = vmul.f32 %v1016_v9, %v1016_v9 }
 0x242   : > { %v1017_v14 = vsub.f32 %v1002_v2, %v1014_v11  ;;  %v1018_v15 = vsub.f32 %v1003_v4, %v1014_v11  ;;  %v1023_v16 = vadd.f32 %v1020_v13, %v1019_v12 }
 0x244   : > { %1024 = vadd.xlane.f32.xlu1 %v1023_v16  ;;  %v1021_v17 = vmul.f32 %v1017_v14, %v1017_v14  ;;  %v1022_v18 = vmul.f32 %v1018_v15, %v1018_v15 }
 0x246   : > { %v1026_v19 = vadd.f32 %v1022_v18, %v1021_v17 }
 0x248   : > { %1027 = vadd.xlane.f32.xlu1 %v1026_v19 }
 0x2cd   : > { %v1025_v20 = vpop.xlane.xlu1 %1024 }
 0x2ce   : > { %v1029_v21 = vmul.f32 0.00390625, %v1025_v20 }
 0x2d0   : > { %v1031_v22 = vadd.f32 1e-12, %v1029_v21 }
 0x2d1   : > { %v1028_v23 = vpop.xlane.xlu1 %1027 }
 0x2d2   : > { %6732 = vrsqrt.f32 %v1031_v22  ;;  %v1030_v25 = vmul.f32 0.00390625, %v1028_v23 }
 0x2d4   : > { %v1032_v26 = vadd.f32 1e-12, %v1030_v25 }
 0x2d6   : > { %6734 = vrsqrt.f32 %v1032_v26 }
 0x2df   : > { %v6733_v34 = vpop.eup %6732 }
 0x2e0   : > { %v1035_v37 = vmul.f32 %v6733_v34, %v1015_v8  ;;  %v1036_v38 = vmul.f32 %v6733_v34, %v1016_v9 }
 0x2e2   : > { %v1050_v39 = vmul.f32 %v1043_v32, %v1035_v37  ;;  %v1051_v40 = vmul.f32 %v1047_v33, %v1036_v38 }
 0x2e3   : > { %v6735_v41 = vpop.eup %6734 }
 0x2e4   : > { %v1065_v42 = vadd.f32 %v1058_v35, %v1050_v39  ;;  %v1066_v43 = vadd.f32 %v1062_v36, %v1051_v40  ;;  %v1037_v44 = vmul.f32 %v6735_v41, %v1017_v14  ;;  %v1038_v45 = vmul.f32 %v6735_v41, %v1018_v15 }
 0x2e6   : > { %1069 = vst [vmem:[#allocation2 + $0x10] sm:$0xff] %v1065_v42  ;;  %1070 = vst [vmem:[#allocation2] sm:$0xff] %v1066_v43  ;;  %v1052_v46 = vmul.f32 %v1043_v32, %v1037_v44  ;;  %v1053_v47 = vmul.f32 %v1047_v33, %v1038_v45 }
 0x2e8   : > { %v1067_v48 = vadd.f32 %v1058_v35, %v1052_v46  ;;  %v1068_v49 = vadd.f32 %v1062_v36, %v1053_v47 }
 0x2ea   : > { %1071 = vst [vmem:[#allocation2 + $0x18] sm:$0xff] %v1067_v48  ;;  %1072 = vst [vmem:[#allocation2 + $0x8] sm:$0xff] %v1068_v49 }
 0x2eb PF: > { %v6736_v50 = vld [vmem:[%s8445_s17 + $0x2a4] ss:$48 sps:$4 sm:$0xff]   ;;  %v6738_v51 = vld [vmem:[%s8445_s17 + $0x2ac] ss:$48 sps:$4 sm:$0xff]   ;;  %v6740_v52 = vld [vmem:[%s8445_s17 + $0x2a0] ss:$48 sps:$4 sm:$0xff]  }
 0x2ec   : > { %2295 = vmatprep.subr.bf16.mxu0 %v6736_v50  ;;  %v6741_v53 = vld [vmem:[%s8445_s17 + $0x2a8] ss:$48 sps:$4 sm:$0xff]   ;;  %2338 = vmatprep.subr.bf16.mxu1 %v6738_v51  ;;  %v6742_v54 = vld [vmem:[%s8445_s17 + $0x244] ss:$48 sps:$4 sm:$0xff]   ;;  %v6744_v55 = vld [vmem:[%s8445_s17 + $0x24c] ss:$48 sps:$4 sm:$0xff]  }
 0x2ed   : > { %2296 = vmatpush1.bf16.msra.mxu0 %v6740_v52  ;;  %2339 = vmatpush1.bf16.msra.mxu1 %v6741_v53  ;;  %v6746_v56 = vld [vmem:[%s8445_s17 + $0x240] ss:$48 sps:$4 sm:$0xff]   ;;  %v6747_v57 = vld [vmem:[%s8445_s17 + $0x248] ss:$48 sps:$4 sm:$0xff]   ;;  %v6748_v58 = vld [vmem:[%s8445_s17 + $0x1e4] ss:$48 sps:$4 sm:$0xff]  }
 0x2ee   : > { %2297 = vmatprep.subr.bf16.mxu0 %v6742_v54  ;;  %2340 = vmatprep.subr.bf16.mxu1 %v6744_v55  ;;  %v6750_v59 = vld [vmem:[%s8445_s17 + $0x1ec] ss:$48 sps:$4 sm:$0xff]   ;;  %v6752_v60 = vld [vmem:[%s8445_s17 + $0x1e0] ss:$48 sps:$4 sm:$0xff]   ;;  %v6753_v61 = vld [vmem:[%s8445_s17 + $0x1e8] ss:$48 sps:$4 sm:$0xff]  }
 0x2ef   : > { %v6754_v62 = vld [vmem:[%s8445_s17 + $0x184] ss:$48 sps:$4 sm:$0xff]   ;;  %v6756_v63 = vld [vmem:[%s8445_s17 + $0x18c] ss:$48 sps:$4 sm:$0xff]   ;;  %v6758_v0 = vld [vmem:[%s8445_s17 + $0x180] ss:$48 sps:$4 sm:$0xff]  }
 0x2f0   : > { %v6759_v1 = vld [vmem:[%s8445_s17 + $0x188] ss:$48 sps:$4 sm:$0xff]   ;;  %v6760_v2 = vld [vmem:[%s8445_s17 + $0x124] ss:$48 sps:$4 sm:$0xff]   ;;  %v6762_v3 = vld [vmem:[%s8445_s17 + $0x12c] ss:$48 sps:$4 sm:$0xff]  }
 0x2f1   : > { %2298 = vmatpush1.bf16.msra.mxu0 %v6746_v56  ;;  %2341 = vmatpush1.bf16.msra.mxu1 %v6747_v57  ;;  %v6764_v4 = vld [vmem:[%s8445_s17 + $0x120] ss:$48 sps:$4 sm:$0xff]   ;;  %v6765_v5 = vld [vmem:[%s8445_s17 + $0x128] ss:$48 sps:$4 sm:$0xff]   ;;  %v6766_v6 = vld [vmem:[%s8445_s17 + $0xc4] ss:$48 sps:$4 sm:$0xff]  }
 0x2f2   : > { %2299 = vmatprep.subr.bf16.mxu0 %v6748_v58  ;;  %2342 = vmatprep.subr.bf16.mxu1 %v6750_v59  ;;  %v6768_v7 = vld [vmem:[%s8445_s17 + $0xcc] ss:$48 sps:$4 sm:$0xff]   ;;  %v6770_v8 = vld [vmem:[%s8445_s17 + $0xc0] ss:$48 sps:$4 sm:$0xff]   ;;  %v6771_v9 = vld [vmem:[%s8445_s17 + $0xc8] ss:$48 sps:$4 sm:$0xff]  }
 0x2f3   : > { %v6772_v10 = vld [vmem:[%s8445_s17 + $0x64] ss:$48 sps:$4 sm:$0xff]   ;;  %v6774_v11 = vld [vmem:[%s8445_s17 + $0x6c] ss:$48 sps:$4 sm:$0xff]   ;;  %v6776_v12 = vld [vmem:[%s8445_s17 + $0x60] ss:$48 sps:$4 sm:$0xff]  }
 0x2f4   : > { %v6777_v13 = vld [vmem:[%s8445_s17 + $0x68] ss:$48 sps:$4 sm:$0xff]   ;;  %v6778_v14 = vld [vmem:[%s8445_s17 + $0x4] ss:$48 sps:$4 sm:$0xff]   ;;  %v6780_v15 = vld [vmem:[%s8445_s17 + $0xc] ss:$48 sps:$4 sm:$0xff]  }
 0x2f5   : > { %2300 = vmatpush1.bf16.msra.mxu0 %v6752_v60  ;;  %2343 = vmatpush1.bf16.msra.mxu1 %v6753_v61  ;;  %v6782_v16 = vld [vmem:[%s8445_s17] ss:$48 sps:$4 sm:$0xff]   ;;  %v6783_v17 = vld [vmem:[%s8445_s17 + $0x8] ss:$48 sps:$4 sm:$0xff]   ;;  %v6784_v18 = vld [vmem:[%s8445_s17 + $0x5a4] ss:$48 sps:$4 sm:$0xff]  }
 0x2f6   : > { %2301 = vmatprep.subr.bf16.mxu0 %v6754_v62  ;;  %2344 = vmatprep.subr.bf16.mxu1 %v6756_v63  ;;  %v6786_v19 = vld [vmem:[%s8445_s17 + $0x5ac] ss:$48 sps:$4 sm:$0xff]   ;;  %v6788_v20 = vld [vmem:[%s8445_s17 + $0x5a0] ss:$48 sps:$4 sm:$0xff]   ;;  %v6789_v21 = vld [vmem:[%s8445_s17 + $0x5a8] ss:$48 sps:$4 sm:$0xff]  }
 0x2f7   : > { %v6790_v22 = vld [vmem:[%s8445_s17 + $0x544] ss:$48 sps:$4 sm:$0xff]   ;;  %v6792_v23 = vld [vmem:[%s8445_s17 + $0x54c] ss:$48 sps:$4 sm:$0xff]   ;;  %v6794_v24 = vld [vmem:[%s8445_s17 + $0x540] ss:$48 sps:$4 sm:$0xff]  }
 0x2f8   : > { %v6795_v25 = vld [vmem:[%s8445_s17 + $0x548] ss:$48 sps:$4 sm:$0xff]   ;;  %v6796_v26 = vld [vmem:[%s8445_s17 + $0x4e4] ss:$48 sps:$4 sm:$0xff]   ;;  %v6798_v27 = vld [vmem:[%s8445_s17 + $0x4ec] ss:$48 sps:$4 sm:$0xff]  }
 0x2f9   : > { %2302 = vmatpush1.bf16.msra.mxu0 %v6758_v0  ;;  %2345 = vmatpush1.bf16.msra.mxu1 %v6759_v1  ;;  %v6800_v28 = vld [vmem:[%s8445_s17 + $0x4e0] ss:$48 sps:$4 sm:$0xff]   ;;  %v6801_v29 = vld [vmem:[%s8445_s17 + $0x4e8] ss:$48 sps:$4 sm:$0xff]   ;;  %v6802_v30 = vld [vmem:[%s8445_s17 + $0x484] ss:$48 sps:$4 sm:$0xff]  }
 0x2fa   : > { %2303 = vmatprep.subr.bf16.mxu0 %v6760_v2  ;;  %2346 = vmatprep.subr.bf16.mxu1 %v6762_v3  ;;  %v6804_v31 = vld [vmem:[%s8445_s17 + $0x48c] ss:$48 sps:$4 sm:$0xff]   ;;  %v6806_v33 = vld [vmem:[%s8445_s17 + $0x480] ss:$48 sps:$4 sm:$0xff]   ;;  %v6807_v34 = vld [vmem:[%s8445_s17 + $0x488] ss:$48 sps:$4 sm:$0xff]  }
 0x2fb   : > { %v1074_v32 = vld [vmem:[#allocation2] sm:$0xff]  ;;  %v1076_v35 = vld [vmem:[#allocation2 + $0x8] sm:$0xff]  ;;  %v1073_v53 = vld [vmem:[#allocation2 + $0x10] sm:$0xff]  ;;  %vm7905_vm0 = vmmov 0   ;;  %vm2624_vm1 = vcmask 64512   ;;  %s9267_s26 = sld [smem:[#allocation30_spill]] }
 0x2fc   : > { %v6808_v36 = vld [vmem:[%s8445_s17 + $0x424] ss:$48 sps:$4 sm:$0xff]   ;;  %v8540_v37 = vpack.c.bf16 %v1076_v35, %v1074_v32  ;;  %v6810_v38 = vld [vmem:[%s8445_s17 + $0x42c] ss:$48 sps:$4 sm:$0xff]   ;;  %v6812_v39 = vld [vmem:[%s8445_s17 + $0x420] ss:$48 sps:$4 sm:$0xff]  }
 0x2fd   : > { %2304 = vmatpush1.bf16.msra.mxu0 %v6764_v4  ;;  %2347 = vmatpush1.bf16.msra.mxu1 %v6765_v5  ;;  %v6813_v40 = vld [vmem:[%s8445_s17 + $0x428] ss:$48 sps:$4 sm:$0xff]   ;;  %v6814_v41 = vld [vmem:[%s8445_s17 + $0x3c4] ss:$48 sps:$4 sm:$0xff]   ;;  %v6816_v42 = vld [vmem:[%s8445_s17 + $0x3cc] ss:$48 sps:$4 sm:$0xff]  }
 0x2fe   : > { %2305 = vmatprep.subr.bf16.mxu0 %v6766_v6  ;;  %2348 = vmatprep.subr.bf16.mxu1 %v6768_v7  ;;  %v6818_v43 = vld [vmem:[%s8445_s17 + $0x3c0] ss:$48 sps:$4 sm:$0xff]   ;;  %v6819_v44 = vld [vmem:[%s8445_s17 + $0x3c8] ss:$48 sps:$4 sm:$0xff]   ;;  %v6820_v45 = vld [vmem:[%s8445_s17 + $0x364] ss:$48 sps:$4 sm:$0xff]  }
 0x2ff   : > { %2327 = vmatprep.mubr.bf16.mxu0 %v8540_v37  ;;  %2370 = vmatprep.mubr.bf16.mxu1 %v8540_v37  ;;  %v6822_v46 = vld [vmem:[%s8445_s17 + $0x36c] ss:$48 sps:$4 sm:$0xff]   ;;  %v6824_v47 = vld [vmem:[%s8445_s17 + $0x360] ss:$48 sps:$4 sm:$0xff]   ;;  %v6825_v48 = vld [vmem:[%s8445_s17 + $0x368] ss:$48 sps:$4 sm:$0xff]  }
 0x300   : > { %v6826_v49 = vld [vmem:[%s8445_s17 + $0x304] ss:$48 sps:$4 sm:$0xff]   ;;  %v6828_v50 = vld [vmem:[%s8445_s17 + $0x30c] ss:$48 sps:$4 sm:$0xff]   ;;  %v6830_v51 = vld [vmem:[%s8445_s17 + $0x300] ss:$48 sps:$4 sm:$0xff]  }
 0x301   : > { %2306 = vmatpush1.bf16.msra.mxu0 %v6770_v8  ;;  %2349 = vmatpush1.bf16.msra.mxu1 %v6771_v9  ;;  %v6831_v52 = vld [vmem:[%s8445_s17 + $0x308] ss:$48 sps:$4 sm:$0xff]   ;;  %v6834_v55 = vld [vmem:[%s8445_s17 + $0x2b4] ss:$48 sps:$4 sm:$0xff]   ;;  %v6837_v56 = vld [vmem:[%s8445_s17 + $0x2bc] ss:$48 sps:$4 sm:$0xff]  }
 0x302   : > { %2307 = vmatprep.subr.bf16.mxu0 %v6772_v10  ;;  %2350 = vmatprep.subr.bf16.mxu1 %v6774_v11  ;;  %v1075_v54 = vld [vmem:[#allocation2 + $0x18] sm:$0xff]  ;;  %v6832_v58 = vld [vmem:[%s8445_s17 + $0x2b0] ss:$48 sps:$4 sm:$0xff]   ;;  %v6843_v61 = vld [vmem:[%s8445_s17 + $0x25c] ss:$48 sps:$4 sm:$0xff]   ;;  %p6417_p7 = scmp.ne.s32.totalorder %s9267_s26, 1 }
 0x303   : > { %v8561_v57 = vpack.c.bf16 %v1075_v54, %v1073_v53  ;;  %v6835_v59 = vld [vmem:[%s8445_s17 + $0x2b8] ss:$48 sps:$4 sm:$0xff]   ;;  %v6840_v60 = vld [vmem:[%s8445_s17 + $0x254] ss:$48 sps:$4 sm:$0xff]   ;;  %v6838_v62 = vld [vmem:[%s8445_s17 + $0x250] ss:$48 sps:$4 sm:$0xff]  }
 0x304   : > { %v6841_v63 = vld [vmem:[%s8445_s17 + $0x258] ss:$48 sps:$4 sm:$0xff]   ;;  %v6846_v0 = vld [vmem:[%s8445_s17 + $0x1f4] ss:$48 sps:$4 sm:$0xff]   ;;  %v6849_v1 = vld [vmem:[%s8445_s17 + $0x1fc] ss:$48 sps:$4 sm:$0xff]  }
 0x305   : > { %2308 = vmatpush1.bf16.msra.mxu0 %v6776_v12  ;;  %2351 = vmatpush1.bf16.msra.mxu1 %v6777_v13  ;;  %v6844_v2 = vld [vmem:[%s8445_s17 + $0x1f0] ss:$48 sps:$4 sm:$0xff]   ;;  %v6847_v3 = vld [vmem:[%s8445_s17 + $0x1f8] ss:$48 sps:$4 sm:$0xff]   ;;  %v6852_v4 = vld [vmem:[%s8445_s17 + $0x194] ss:$48 sps:$4 sm:$0xff]  }
 0x306   : > { %2309 = vmatprep.subr.bf16.mxu0 %v6778_v14  ;;  %2352 = vmatprep.subr.bf16.mxu1 %v6780_v15  ;;  %v6855_v5 = vld [vmem:[%s8445_s17 + $0x19c] ss:$48 sps:$4 sm:$0xff]   ;;  %v6850_v6 = vld [vmem:[%s8445_s17 + $0x190] ss:$48 sps:$4 sm:$0xff]   ;;  %v6853_v7 = vld [vmem:[%s8445_s17 + $0x198] ss:$48 sps:$4 sm:$0xff]  }
 0x307   : > { %v6858_v8 = vld [vmem:[%s8445_s17 + $0x134] ss:$48 sps:$4 sm:$0xff]   ;;  %v6861_v9 = vld [vmem:[%s8445_s17 + $0x13c] ss:$48 sps:$4 sm:$0xff]   ;;  %v6856_v10 = vld [vmem:[%s8445_s17 + $0x130] ss:$48 sps:$4 sm:$0xff]  }
 0x308   : > { %v6859_v11 = vld [vmem:[%s8445_s17 + $0x138] ss:$48 sps:$4 sm:$0xff]   ;;  %v6864_v12 = vld [vmem:[%s8445_s17 + $0xd4] ss:$48 sps:$4 sm:$0xff]   ;;  %v6867_v13 = vld [vmem:[%s8445_s17 + $0xdc] ss:$48 sps:$4 sm:$0xff]  }
 0x309   : > { %2310 = vmatpush1.bf16.msra.mxu0 %v6782_v16  ;;  %2353 = vmatpush1.bf16.msra.mxu1 %v6783_v17  ;;  %v6862_v14 = vld [vmem:[%s8445_s17 + $0xd0] ss:$48 sps:$4 sm:$0xff]   ;;  %v6865_v15 = vld [vmem:[%s8445_s17 + $0xd8] ss:$48 sps:$4 sm:$0xff]   ;;  %v6870_v16 = vld [vmem:[%s8445_s17 + $0x74] ss:$48 sps:$4 sm:$0xff]  }
 0x30a   : > { %2311 = vmatprep.subr.bf16.mxu0 %v6784_v18  ;;  %2354 = vmatprep.subr.bf16.mxu1 %v6786_v19  ;;  %v6873_v17 = vld [vmem:[%s8445_s17 + $0x7c] ss:$48 sps:$4 sm:$0xff]   ;;  %v6868_v18 = vld [vmem:[%s8445_s17 + $0x70] ss:$48 sps:$4 sm:$0xff]   ;;  %v6871_v19 = vld [vmem:[%s8445_s17 + $0x78] ss:$48 sps:$4 sm:$0xff]  }
 0x30b   : > { %v6894_v32 = vld [vmem:[%s8445_s17 + $0x4f4] ss:$48 sps:$4 sm:$0xff]   ;;  %v6895_v35 = vld [vmem:[%s8445_s17 + $0x4f8] ss:$48 sps:$4 sm:$0xff]   ;;  %v6927_v54 = vld [vmem:[%s8445_s17 + $0x31c] ss:$48 sps:$4 sm:$0xff]  }
 0x30c   : > { %v6924_v53 = vld [vmem:[%s8445_s17 + $0x314] ss:$48 sps:$4 sm:$0xff]  }
 0x30d   : > { %2312 = vmatpush2.bf16.msra.mxu0 %v6788_v20  ;;  %2355 = vmatpush2.bf16.msra.mxu1 %v6789_v21  ;;  %v6876_v20 = vld [vmem:[%s8445_s17 + $0x14] ss:$48 sps:$4 sm:$0xff]   ;;  %v6879_v21 = vld [vmem:[%s8445_s17 + $0x1c] ss:$48 sps:$4 sm:$0xff]  }
 0x30e   : > { %2313 = vmatprep.subr.bf16.mxu0 %v6790_v22  ;;  %2356 = vmatprep.subr.bf16.mxu1 %v6792_v23  ;;  %v6874_v22 = vld [vmem:[%s8445_s17 + $0x10] ss:$48 sps:$4 sm:$0xff]   ;;  %v6877_v23 = vld [vmem:[%s8445_s17 + $0x18] ss:$48 sps:$4 sm:$0xff]  }
 0x311   : > { %2314 = vmatpush2.bf16.msra.mxu0 %v6794_v24  ;;  %2357 = vmatpush2.bf16.msra.mxu1 %v6795_v25  ;;  %v6882_v24 = vld [vmem:[%s8445_s17 + $0x5b4] ss:$48 sps:$4 sm:$0xff]   ;;  %v6885_v25 = vld [vmem:[%s8445_s17 + $0x5bc] ss:$48 sps:$4 sm:$0xff]  }
 0x312   : > { %2315 = vmatprep.subr.bf16.mxu0 %v6796_v26  ;;  %2358 = vmatprep.subr.bf16.mxu1 %v6798_v27  ;;  %v6880_v26 = vld [vmem:[%s8445_s17 + $0x5b0] ss:$48 sps:$4 sm:$0xff]   ;;  %v6883_v27 = vld [vmem:[%s8445_s17 + $0x5b8] ss:$48 sps:$4 sm:$0xff]  }
 0x315   : > { %2316 = vmatpush2.bf16.msra.mxu0 %v6800_v28  ;;  %2359 = vmatpush2.bf16.msra.mxu1 %v6801_v29  ;;  %v6888_v28 = vld [vmem:[%s8445_s17 + $0x554] ss:$48 sps:$4 sm:$0xff]   ;;  %v6891_v29 = vld [vmem:[%s8445_s17 + $0x55c] ss:$48 sps:$4 sm:$0xff]  }
 0x316   : > { %2317 = vmatprep.subr.bf16.mxu0 %v6802_v30  ;;  %2360 = vmatprep.subr.bf16.mxu1 %v6804_v31  ;;  %v6886_v30 = vld [vmem:[%s8445_s17 + $0x550] ss:$48 sps:$4 sm:$0xff]   ;;  %v6889_v31 = vld [vmem:[%s8445_s17 + $0x558] ss:$48 sps:$4 sm:$0xff]  }
 0x319   : > { %2318 = vmatpush2.bf16.msra.mxu0 %v6806_v33  ;;  %2361 = vmatpush2.bf16.msra.mxu1 %v6807_v34  ;;  %v6897_v33 = vld [vmem:[%s8445_s17 + $0x4fc] ss:$48 sps:$4 sm:$0xff]   ;;  %v6892_v34 = vld [vmem:[%s8445_s17 + $0x4f0] ss:$48 sps:$4 sm:$0xff]  }
 0x31a   : > { %2319 = vmatprep.subr.bf16.mxu0 %v6808_v36  ;;  %2362 = vmatprep.subr.bf16.mxu1 %v6810_v38  ;;  %v6900_v36 = vld [vmem:[%s8445_s17 + $0x494] ss:$48 sps:$4 sm:$0xff]   ;;  %v6903_v38 = vld [vmem:[%s8445_s17 + $0x49c] ss:$48 sps:$4 sm:$0xff]  }
 0x31d   : > { %2320 = vmatpush2.bf16.msra.mxu0 %v6812_v39  ;;  %2363 = vmatpush2.bf16.msra.mxu1 %v6813_v40  ;;  %v6898_v39 = vld [vmem:[%s8445_s17 + $0x490] ss:$48 sps:$4 sm:$0xff]   ;;  %v6901_v40 = vld [vmem:[%s8445_s17 + $0x498] ss:$48 sps:$4 sm:$0xff]  }
 0x31e   : > { %2321 = vmatprep.subr.bf16.mxu0 %v6814_v41  ;;  %2364 = vmatprep.subr.bf16.mxu1 %v6816_v42  ;;  %v6906_v41 = vld [vmem:[%s8445_s17 + $0x434] ss:$48 sps:$4 sm:$0xff]   ;;  %v6909_v42 = vld [vmem:[%s8445_s17 + $0x43c] ss:$48 sps:$4 sm:$0xff]  }
 0x321   : > { %2322 = vmatpush2.bf16.msra.mxu0 %v6818_v43  ;;  %2365 = vmatpush2.bf16.msra.mxu1 %v6819_v44  ;;  %v6904_v43 = vld [vmem:[%s8445_s17 + $0x430] ss:$48 sps:$4 sm:$0xff]   ;;  %v6907_v44 = vld [vmem:[%s8445_s17 + $0x438] ss:$48 sps:$4 sm:$0xff]  }
 0x322   : > { %2323 = vmatprep.subr.bf16.mxu0 %v6820_v45  ;;  %2366 = vmatprep.subr.bf16.mxu1 %v6822_v46  ;;  %v6912_v45 = vld [vmem:[%s8445_s17 + $0x3d4] ss:$48 sps:$4 sm:$0xff]   ;;  %v6915_v46 = vld [vmem:[%s8445_s17 + $0x3dc] ss:$48 sps:$4 sm:$0xff]  }
 0x325   : > { %2324 = vmatpush2.bf16.msra.mxu0 %v6824_v47  ;;  %2367 = vmatpush2.bf16.msra.mxu1 %v6825_v48  ;;  %v6910_v47 = vld [vmem:[%s8445_s17 + $0x3d0] ss:$48 sps:$4 sm:$0xff]   ;;  %v6913_v48 = vld [vmem:[%s8445_s17 + $0x3d8] ss:$48 sps:$4 sm:$0xff]  }
 0x326   : > { %2325 = vmatprep.subr.bf16.mxu0 %v6826_v49  ;;  %2368 = vmatprep.subr.bf16.mxu1 %v6828_v50  ;;  %v6918_v49 = vld [vmem:[%s8445_s17 + $0x374] ss:$48 sps:$4 sm:$0xff]   ;;  %v6921_v50 = vld [vmem:[%s8445_s17 + $0x37c] ss:$48 sps:$4 sm:$0xff]  }
 0x329   : > { %2326 = vmatpush2.bf16.msra.mxu0 %v6830_v51  ;;  %2369 = vmatpush2.bf16.msra.mxu1 %v6831_v52  ;;  %v6916_v51 = vld [vmem:[%s8445_s17 + $0x370] ss:$48 sps:$4 sm:$0xff]   ;;  %v6919_v52 = vld [vmem:[%s8445_s17 + $0x378] ss:$48 sps:$4 sm:$0xff]  }
 0x32a   : > { %2381 = vmatprep.subr.bf16.mxu0 %v6834_v55  ;;  %2424 = vmatprep.subr.bf16.mxu1 %v6837_v56  ;;  %v6922_v55 = vld [vmem:[%s8445_s17 + $0x310] ss:$48 sps:$4 sm:$0xff]   ;;  %v6925_v56 = vld [vmem:[%s8445_s17 + $0x318] ss:$48 sps:$4 sm:$0xff]  }
 0x32c   : > { %2328 = vmatmul.mubr.bf16.vlgmr.msra.gmra.mxu0 %v8561_v57  ;;  %2371 = vmatmul.mubr.bf16.vlgmr.msra.gmra.mxu1 %v8561_v57 }
 0x32d   : > { %2382 = vmatpush1.bf16.msra.mxu0 %v6832_v58  ;;  %2425 = vmatpush1.bf16.msra.mxu1 %v6835_v59  ;;  %v6930_v58 = vld [vmem:[%s8445_s17 + $0x2c4] ss:$48 sps:$4 sm:$0xff]   ;;  %v6933_v59 = vld [vmem:[%s8445_s17 + $0x2cc] ss:$48 sps:$4 sm:$0xff]  }
 0x32e   : > { %2383 = vmatprep.subr.bf16.mxu0 %v6840_v60  ;;  %2426 = vmatprep.subr.bf16.mxu1 %v6843_v61  ;;  %v6928_v60 = vld [vmem:[%s8445_s17 + $0x2c0] ss:$48 sps:$4 sm:$0xff]   ;;  %v6931_v61 = vld [vmem:[%s8445_s17 + $0x2c8] ss:$48 sps:$4 sm:$0xff]  }
 0x32f   : > { %2413 = vmatprep.mubr.bf16.mxu0 %v8540_v37  ;;  %2456 = vmatprep.mubr.bf16.mxu1 %v8540_v37 }
 0x331   : > { %2384 = vmatpush1.bf16.msra.mxu0 %v6838_v62  ;;  %2427 = vmatpush1.bf16.msra.mxu1 %v6841_v63  ;;  %v6936_v62 = vld [vmem:[%s8445_s17 + $0x264] ss:$48 sps:$4 sm:$0xff]   ;;  %v6939_v63 = vld [vmem:[%s8445_s17 + $0x26c] ss:$48 sps:$4 sm:$0xff]  }
 0x332   : > { %2385 = vmatprep.subr.bf16.mxu0 %v6846_v0  ;;  %2428 = vmatprep.subr.bf16.mxu1 %v6849_v1  ;;  %v6934_v0 = vld [vmem:[%s8445_s17 + $0x260] ss:$48 sps:$4 sm:$0xff]   ;;  %v6937_v1 = vld [vmem:[%s8445_s17 + $0x268] ss:$48 sps:$4 sm:$0xff]  }
 0x335   : > { %2386 = vmatpush1.bf16.msra.mxu0 %v6844_v2  ;;  %2429 = vmatpush1.bf16.msra.mxu1 %v6847_v3  ;;  %v6942_v2 = vld [vmem:[%s8445_s17 + $0x204] ss:$48 sps:$4 sm:$0xff]   ;;  %v6945_v3 = vld [vmem:[%s8445_s17 + $0x20c] ss:$48 sps:$4 sm:$0xff]  }
 0x336   : > { %2387 = vmatprep.subr.bf16.mxu0 %v6852_v4  ;;  %2430 = vmatprep.subr.bf16.mxu1 %v6855_v5  ;;  %v6940_v4 = vld [vmem:[%s8445_s17 + $0x200] ss:$48 sps:$4 sm:$0xff]   ;;  %v6943_v5 = vld [vmem:[%s8445_s17 + $0x208] ss:$48 sps:$4 sm:$0xff]  }
 0x339   : > { %2388 = vmatpush1.bf16.msra.mxu0 %v6850_v6  ;;  %2431 = vmatpush1.bf16.msra.mxu1 %v6853_v7  ;;  %v6948_v6 = vld [vmem:[%s8445_s17 + $0x1a4] ss:$48 sps:$4 sm:$0xff]   ;;  %v6951_v7 = vld [vmem:[%s8445_s17 + $0x1ac] ss:$48 sps:$4 sm:$0xff]  }
 0x33a   : > { %2389 = vmatprep.subr.bf16.mxu0 %v6858_v8  ;;  %2432 = vmatprep.subr.bf16.mxu1 %v6861_v9  ;;  %v6946_v8 = vld [vmem:[%s8445_s17 + $0x1a0] ss:$48 sps:$4 sm:$0xff]   ;;  %v6949_v9 = vld [vmem:[%s8445_s17 + $0x1a8] ss:$48 sps:$4 sm:$0xff]  }
 0x33d   : > { %2390 = vmatpush1.bf16.msra.mxu0 %v6856_v10  ;;  %2433 = vmatpush1.bf16.msra.mxu1 %v6859_v11  ;;  %v6954_v10 = vld [vmem:[%s8445_s17 + $0x144] ss:$48 sps:$4 sm:$0xff]   ;;  %v6957_v11 = vld [vmem:[%s8445_s17 + $0x14c] ss:$48 sps:$4 sm:$0xff]  }
 0x33e   : > { %2391 = vmatprep.subr.bf16.mxu0 %v6864_v12  ;;  %2434 = vmatprep.subr.bf16.mxu1 %v6867_v13  ;;  %v6955_v12 = vld [vmem:[%s8445_s17 + $0x148] ss:$48 sps:$4 sm:$0xff]   ;;  %v6960_v13 = vld [vmem:[%s8445_s17 + $0xe4] ss:$48 sps:$4 sm:$0xff]  }
 0x341   : > { %2392 = vmatpush1.bf16.msra.mxu0 %v6862_v14  ;;  %2435 = vmatpush1.bf16.msra.mxu1 %v6865_v15  ;;  %v6963_v14 = vld [vmem:[%s8445_s17 + $0xec] ss:$48 sps:$4 sm:$0xff]   ;;  %v6958_v15 = vld [vmem:[%s8445_s17 + $0xe0] ss:$48 sps:$4 sm:$0xff]  }
 0x342   : > { %2393 = vmatprep.subr.bf16.mxu0 %v6870_v16  ;;  %2436 = vmatprep.subr.bf16.mxu1 %v6873_v17  ;;  %v6961_v16 = vld [vmem:[%s8445_s17 + $0xe8] ss:$48 sps:$4 sm:$0xff]   ;;  %v6966_v17 = vld [vmem:[%s8445_s17 + $0x84] ss:$48 sps:$4 sm:$0xff]  }
 0x345   : > { %2394 = vmatpush1.bf16.msra.mxu0 %v6868_v18  ;;  %2437 = vmatpush1.bf16.msra.mxu1 %v6871_v19  ;;  %v6969_v18 = vld [vmem:[%s8445_s17 + $0x8c] ss:$48 sps:$4 sm:$0xff]   ;;  %v6964_v19 = vld [vmem:[%s8445_s17 + $0x80] ss:$48 sps:$4 sm:$0xff]  }
 0x346   : > { %2395 = vmatprep.subr.bf16.mxu0 %v6876_v20  ;;  %2438 = vmatprep.subr.bf16.mxu1 %v6879_v21  ;;  %v6967_v20 = vld [vmem:[%s8445_s17 + $0x88] ss:$48 sps:$4 sm:$0xff]   ;;  %v6972_v21 = vld [vmem:[%s8445_s17 + $0x24] ss:$48 sps:$4 sm:$0xff]  }
 0x349   : > { %2396 = vmatpush1.bf16.msra.mxu0 %v6874_v22  ;;  %2439 = vmatpush1.bf16.msra.mxu1 %v6877_v23  ;;  %v6975_v22 = vld [vmem:[%s8445_s17 + $0x2c] ss:$48 sps:$4 sm:$0xff]   ;;  %v6970_v23 = vld [vmem:[%s8445_s17 + $0x20] ss:$48 sps:$4 sm:$0xff]  }
 0x34a   : > { %2397 = vmatprep.subr.bf16.mxu0 %v6882_v24  ;;  %2440 = vmatprep.subr.bf16.mxu1 %v6885_v25  ;;  %v6973_v24 = vld [vmem:[%s8445_s17 + $0x28] ss:$48 sps:$4 sm:$0xff]   ;;  %v6978_v25 = vld [vmem:[%s8445_s17 + $0x5c4] ss:$48 sps:$4 sm:$0xff]  }
 0x34d   : > { %2398 = vmatpush2.bf16.msra.mxu0 %v6880_v26  ;;  %2441 = vmatpush2.bf16.msra.mxu1 %v6883_v27  ;;  %v6981_v26 = vld [vmem:[%s8445_s17 + $0x5cc] ss:$48 sps:$4 sm:$0xff]   ;;  %v6976_v27 = vld [vmem:[%s8445_s17 + $0x5c0] ss:$48 sps:$4 sm:$0xff]  }
 0x34e   : > { %2399 = vmatprep.subr.bf16.mxu0 %v6888_v28  ;;  %2442 = vmatprep.subr.bf16.mxu1 %v6891_v29  ;;  %v6979_v28 = vld [vmem:[%s8445_s17 + $0x5c8] ss:$48 sps:$4 sm:$0xff]   ;;  %v6984_v29 = vld [vmem:[%s8445_s17 + $0x564] ss:$48 sps:$4 sm:$0xff]  }
 0x351   : > { %2400 = vmatpush2.bf16.msra.mxu0 %v6886_v30  ;;  %2443 = vmatpush2.bf16.msra.mxu1 %v6889_v31  ;;  %v6987_v30 = vld [vmem:[%s8445_s17 + $0x56c] ss:$48 sps:$4 sm:$0xff]   ;;  %v6982_v31 = vld [vmem:[%s8445_s17 + $0x560] ss:$48 sps:$4 sm:$0xff]  }
 0x352   : > { %2401 = vmatprep.subr.bf16.mxu0 %v6894_v32  ;;  %2444 = vmatprep.subr.bf16.mxu1 %v6897_v33  ;;  %v6985_v32 = vld [vmem:[%s8445_s17 + $0x568] ss:$48 sps:$4 sm:$0xff]   ;;  %v6990_v33 = vld [vmem:[%s8445_s17 + $0x504] ss:$48 sps:$4 sm:$0xff]  }
 0x355   : > { %2402 = vmatpush2.bf16.msra.mxu0 %v6892_v34  ;;  %2445 = vmatpush2.bf16.msra.mxu1 %v6895_v35  ;;  %v6993_v34 = vld [vmem:[%s8445_s17 + $0x50c] ss:$48 sps:$4 sm:$0xff]   ;;  %v6988_v35 = vld [vmem:[%s8445_s17 + $0x500] ss:$48 sps:$4 sm:$0xff]  }
 0x356   : > { %2403 = vmatprep.subr.bf16.mxu0 %v6900_v36  ;;  %2446 = vmatprep.subr.bf16.mxu1 %v6903_v38  ;;  %v6991_v36 = vld [vmem:[%s8445_s17 + $0x508] ss:$48 sps:$4 sm:$0xff]   ;;  %v6996_v38 = vld [vmem:[%s8445_s17 + $0x4a4] ss:$48 sps:$4 sm:$0xff]  }
 0x359   : > { %2404 = vmatpush2.bf16.msra.mxu0 %v6898_v39  ;;  %2447 = vmatpush2.bf16.msra.mxu1 %v6901_v40  ;;  %v6999_v39 = vld [vmem:[%s8445_s17 + $0x4ac] ss:$48 sps:$4 sm:$0xff]   ;;  %v6994_v40 = vld [vmem:[%s8445_s17 + $0x4a0] ss:$48 sps:$4 sm:$0xff]  }
 0x35a   : > { %2405 = vmatprep.subr.bf16.mxu0 %v6906_v41  ;;  %2448 = vmatprep.subr.bf16.mxu1 %v6909_v42  ;;  %v6997_v41 = vld [vmem:[%s8445_s17 + $0x4a8] ss:$48 sps:$4 sm:$0xff]   ;;  %v7002_v42 = vld [vmem:[%s8445_s17 + $0x444] ss:$48 sps:$4 sm:$0xff]  }
 0x35d   : > { %2406 = vmatpush2.bf16.msra.mxu0 %v6904_v43  ;;  %2449 = vmatpush2.bf16.msra.mxu1 %v6907_v44  ;;  %v7005_v43 = vld [vmem:[%s8445_s17 + $0x44c] ss:$48 sps:$4 sm:$0xff]   ;;  %v7000_v44 = vld [vmem:[%s8445_s17 + $0x440] ss:$48 sps:$4 sm:$0xff]  }
 0x35e   : > { %2407 = vmatprep.subr.bf16.mxu0 %v6912_v45  ;;  %2450 = vmatprep.subr.bf16.mxu1 %v6915_v46  ;;  %v7003_v45 = vld [vmem:[%s8445_s17 + $0x448] ss:$48 sps:$4 sm:$0xff]   ;;  %v7008_v46 = vld [vmem:[%s8445_s17 + $0x3e4] ss:$48 sps:$4 sm:$0xff]  }
 0x361   : > { %2408 = vmatpush2.bf16.msra.mxu0 %v6910_v47  ;;  %2451 = vmatpush2.bf16.msra.mxu1 %v6913_v48  ;;  %v7011_v47 = vld [vmem:[%s8445_s17 + $0x3ec] ss:$48 sps:$4 sm:$0xff]   ;;  %v7006_v48 = vld [vmem:[%s8445_s17 + $0x3e0] ss:$48 sps:$4 sm:$0xff]  }
 0x362   : > { %2409 = vmatprep.subr.bf16.mxu0 %v6918_v49  ;;  %2452 = vmatprep.subr.bf16.mxu1 %v6921_v50  ;;  %v7009_v49 = vld [vmem:[%s8445_s17 + $0x3e8] ss:$48 sps:$4 sm:$0xff]   ;;  %v7014_v50 = vld [vmem:[%s8445_s17 + $0x384] ss:$48 sps:$4 sm:$0xff]  }
 0x365   : > { %2410 = vmatpush2.bf16.msra.mxu0 %v6916_v51  ;;  %2453 = vmatpush2.bf16.msra.mxu1 %v6919_v52  ;;  %v7017_v51 = vld [vmem:[%s8445_s17 + $0x38c] ss:$48 sps:$4 sm:$0xff]   ;;  %v7012_v52 = vld [vmem:[%s8445_s17 + $0x380] ss:$48 sps:$4 sm:$0xff]  }
 0x366   : > { %2411 = vmatprep.subr.bf16.mxu0 %v6924_v53  ;;  %2454 = vmatprep.subr.bf16.mxu1 %v6927_v54  ;;  %v7015_v53 = vld [vmem:[%s8445_s17 + $0x388] ss:$48 sps:$4 sm:$0xff]   ;;  %v7020_v54 = vld [vmem:[%s8445_s17 + $0x324] ss:$48 sps:$4 sm:$0xff]  }
 0x369   : > { %2412 = vmatpush2.bf16.msra.mxu0 %v6922_v55  ;;  %2455 = vmatpush2.bf16.msra.mxu1 %v6925_v56  ;;  %v7023_v55 = vld [vmem:[%s8445_s17 + $0x32c] ss:$48 sps:$4 sm:$0xff]   ;;  %v7018_v56 = vld [vmem:[%s8445_s17 + $0x320] ss:$48 sps:$4 sm:$0xff]  }
 0x36a   : > { %2467 = vmatprep.subr.bf16.mxu0 %v6930_v58  ;;  %2510 = vmatprep.subr.bf16.mxu1 %v6933_v59  ;;  %v7021_v58 = vld [vmem:[%s8445_s17 + $0x328] ss:$48 sps:$4 sm:$0xff]   ;;  %v7904_v59 = vmov 0.0  }
 0x36c   : > { %2414 = vmatmul.mubr.bf16.vlgmr.msra.gmra.mxu0 %v8561_v57  ;;  %2457 = vmatmul.mubr.bf16.vlgmr.msra.gmra.mxu1 %v8561_v57 }
 0x36d   : > { %2468 = vmatpush1.bf16.msra.mxu0 %v6928_v60  ;;  %2511 = vmatpush1.bf16.msra.mxu1 %v6931_v61  ;;  %v1275_v60 = vlaneseq }
 0x36e   : > { %2469 = vmatprep.subr.bf16.mxu0 %v6936_v62  ;;  %2512 = vmatprep.subr.bf16.mxu1 %v6939_v63  ;;  %v8711_v63 = vld [vmem:[%s8453_s22] sm:$0xff] }
 0x36f   : > { %2499 = vmatprep.mubr.bf16.mxu0 %v8540_v37  ;;  %2542 = vmatprep.mubr.bf16.mxu1 %v8540_v37  ;;  %v6952_v37 = vld [vmem:[%s8445_s17 + $0x140] ss:$48 sps:$4 sm:$0xff]   ;;  %v8705_v61 = vshrl.u32 %v1275_v60, 7 }
 0x371   : > { %2470 = vmatpush1.bf16.msra.mxu0 %v6934_v0  ;;  %2513 = vmatpush1.bf16.msra.mxu1 %v6937_v1  ;;  %v8708_v62 = vsub.s32 2, %v8705_v61  ;;  %v8714_v0 = vsub.s32 1, %v8705_v61  ;;  %v8719_v1 = vsub.s32 0, %v8705_v61 }
 0x372   : > { %2471 = vmatprep.subr.bf16.mxu0 %v6942_v2  ;;  %2514 = vmatprep.subr.bf16.mxu1 %v6945_v3 }
 0x373   : > { %v1282_v2 = vrot.slane %v8711_v63, %v8714_v0 }
 0x375   : > { %2472 = vmatpush1.bf16.msra.mxu0 %v6940_v4  ;;  %2515 = vmatpush1.bf16.msra.mxu1 %v6943_v5 }
 0x376   : > { %2473 = vmatprep.subr.bf16.mxu0 %v6948_v6  ;;  %2516 = vmatprep.subr.bf16.mxu1 %v6951_v7  ;;  %v1278_v6 = vrot.slane %v8711_v63, %v8719_v1 }
 0x379   : > { %2474 = vmatpush1.bf16.msra.mxu0 %v6946_v8  ;;  %2517 = vmatpush1.bf16.msra.mxu1 %v6949_v9 }
 0x37a   : > { %2475 = vmatprep.subr.bf16.mxu0 %v6954_v10  ;;  %2518 = vmatprep.subr.bf16.mxu1 %v6957_v11 }
 0x37d   : > { %2476 = vmatpush1.bf16.msra.mxu0 %v6952_v37  ;;  %2519 = vmatpush1.bf16.msra.mxu1 %v6955_v12 }
 0x37e   : > { %2477 = vmatprep.subr.bf16.mxu0 %v6960_v13  ;;  %2520 = vmatprep.subr.bf16.mxu1 %v6963_v14 }
 0x381   : > { %2478 = vmatpush1.bf16.msra.mxu0 %v6958_v15  ;;  %2521 = vmatpush1.bf16.msra.mxu1 %v6961_v16  ;;  %v1293_v16 = vsub.s32 4, %v8705_v61 }
 0x382   : > { %2479 = vmatprep.subr.bf16.mxu0 %v6966_v17  ;;  %2522 = vmatprep.subr.bf16.mxu1 %v6969_v18  ;;  %v8736_v17 = vsub.s32 3, %v8705_v61 }
 0x383   : > { %v1294_v18 = vrot.slane %v8711_v63, %v1293_v16 }
 0x385   : > { %2480 = vmatpush1.bf16.msra.mxu0 %v6964_v19  ;;  %2523 = vmatpush1.bf16.msra.mxu1 %v6967_v20  ;;  %v1290_v20 = vrot.slane %v8711_v63, %v8736_v17 }
 0x386   : > { %2481 = vmatprep.subr.bf16.mxu0 %v6972_v21  ;;  %2524 = vmatprep.subr.bf16.mxu1 %v6975_v22 }
 0x389   : > { %2482 = vmatpush1.bf16.msra.mxu0 %v6970_v23  ;;  %2525 = vmatpush1.bf16.msra.mxu1 %v6973_v24  ;;  %v1305_v24 = vsub.s32 7, %v8705_v61 }
 0x38a   : > { %2483 = vmatprep.subr.bf16.mxu0 %v6978_v25  ;;  %2526 = vmatprep.subr.bf16.mxu1 %v6981_v26 }
 0x38d   : > { %2484 = vmatpush2.bf16.msra.mxu0 %v6976_v27  ;;  %2527 = vmatpush2.bf16.msra.mxu1 %v6979_v28  ;;  %v1301_v28 = vsub.s32 6, %v8705_v61 }
 0x38e   : > { %2485 = vmatprep.subr.bf16.mxu0 %v6984_v29  ;;  %2528 = vmatprep.subr.bf16.mxu1 %v6987_v30  ;;  %v1306_v30 = vrot.slane %v8711_v63, %v1305_v24 }
 0x391   : > { %2486 = vmatpush2.bf16.msra.mxu0 %v6982_v31  ;;  %2529 = vmatpush2.bf16.msra.mxu1 %v6985_v32 }
 0x392   : > { %2487 = vmatprep.subr.bf16.mxu0 %v6990_v33  ;;  %2530 = vmatprep.subr.bf16.mxu1 %v6993_v34  ;;  %v1302_v34 = vrot.slane %v8711_v63, %v1301_v28 }
 0x395   : > { %2488 = vmatpush2.bf16.msra.mxu0 %v6988_v35  ;;  %2531 = vmatpush2.bf16.msra.mxu1 %v6991_v36 }
 0x396   : > { %2489 = vmatprep.subr.bf16.mxu0 %v6996_v38  ;;  %2532 = vmatprep.subr.bf16.mxu1 %v6999_v39 }
 0x399   : > { %2490 = vmatpush2.bf16.msra.mxu0 %v6994_v40  ;;  %2533 = vmatpush2.bf16.msra.mxu1 %v6997_v41  ;;  %v1272_v41 = vld [vmem:[%s8453_s22 + $0x8] sm:$0xf]  ;;  %s9268_s22 = sld [smem:[#allocation46_spill]] (!%p6417_p7) }
 0x39a   : > { %2491 = vmatprep.subr.bf16.mxu0 %v7002_v42  ;;  %2534 = vmatprep.subr.bf16.mxu1 %v7005_v43  ;;  %v1310_v42 = vrot.slane %v1272_v41, %v8719_v1  ;;  %v1318_v43 = vrot.slane %v1272_v41, %v8708_v62 }
 0x39d   : > { %2492 = vmatpush2.bf16.msra.mxu0 %v7000_v44  ;;  %2535 = vmatpush2.bf16.msra.mxu1 %v7003_v45  ;;  %v1314_v45 = vrot.slane %v1272_v41, %v8714_v0 }
 0x39e   : > { %2493 = vmatprep.subr.bf16.mxu0 %v7008_v46  ;;  %2536 = vmatprep.subr.bf16.mxu1 %v7011_v47  ;;  %v8766_v46 = vrot.slane %v1272_v41, %v8736_v17 }
 0x3a1   : > { %2494 = vmatpush2.bf16.msra.mxu0 %v7006_v48  ;;  %2537 = vmatpush2.bf16.msra.mxu1 %v7009_v49 }
 0x3a2   : > { %2495 = vmatprep.subr.bf16.mxu0 %v7014_v50  ;;  %2538 = vmatprep.subr.bf16.mxu1 %v7017_v51 }
 0x3a5   : > { %2496 = vmatpush2.bf16.msra.mxu0 %v7012_v52  ;;  %2539 = vmatpush2.bf16.msra.mxu1 %v7015_v53 }
 0x3a6   : > { %2497 = vmatprep.subr.bf16.mxu0 %v7020_v54  ;;  %2540 = vmatprep.subr.bf16.mxu1 %v7023_v55 }
 0x3a9   : > { %2498 = vmatpush2.bf16.msra.mxu0 %v7018_v56  ;;  %2541 = vmatpush2.bf16.msra.mxu1 %v7021_v58 }
 0x3aa   : > { %6506 = vmatprep.subr.mxu1 %v7904_v59  ;;  %6501 = vmatprep.subr.mxu0 %v7904_v59 }
 0x3ac   : > { %2500 = vmatmul.mubr.bf16.vlgmr.msra.gmra.mxu0 %v8561_v57  ;;  %2543 = vmatmul.mubr.bf16.vlgmr.msra.gmra.mxu1 %v8561_v57  ;;  %v1286_v57 = vrot.slane %v8711_v63, %v8708_v62 }
 0x3ad   : > { %6503 = vmatprep.mubr.msk.f32.mxu0 %vm7905_vm0, %v7904_v59  ;;  %6508 = vmatprep.mubr.msk.f32.mxu1 %vm7905_vm0, %v7904_v59 }
 0x3ec   : > { %v2329_v3 = vpop.f32.mrf.mxu0  ;;  %v2372_v4 = vpop.f32.mrf.mxu1 }
 0x3ed   : > { %v2373_v5 = vadd.f32 %v2372_v4, %v1286_v57  ;;  %v2330_v12 = vadd.f32 %v2329_v3, %v1278_v6 }
 0x3ee   : > { %v2331_v7 = vpop.f32.mrf.mxu0  ;;  %v2374_v8 = vpop.f32.mrf.mxu1 }
 0x3ef   : > { %v2332_v9 = vadd.f32 %v2331_v7, %v1282_v2  ;;  %6507 = vmatpush3.msra.mxu1 %v2373_v5  ;;  %v2375_v27 = vadd.f32 %v2374_v8, %v1290_v20 }
 0x3f0   : > { %v2333_v10 = vpop.f32.mrf.mxu0  ;;  %v2376_v11 = vpop.f32.mrf.mxu1  ;;  %6516 = vmatprep.subr.mxu1 %v7904_v59 }
 0x3f1   : > { %v8726_v37 = vadd.f32 %v2376_v11, %v1286_v57  ;;  %6502 = vmatpush3.xpose.msra.mxu0 %v2332_v9  ;;  %v2334_v15 = vadd.f32 %v2333_v10, %v1278_v6 }
 0x3f2   : > { %v2335_v13 = vpop.f32.mrf.mxu0  ;;  %6511 = vmatprep.subr.mxu0 %v7904_v59  ;;  %v2378_v19 = vpop.f32.mrf.mxu1 }
 0x3f3   : > { %v2336_v14 = vadd.f32 %v2335_v13, %v1282_v2  ;;  %v2379_v33 = vadd.f32 %v2378_v19, %v1290_v20 }
 0x3f4   : > { %6504 = vmatmul.mubr.f32.vlgmr.msra.gmra.mxu0 %v2330_v12 }
 0x3f5   : > { %6512 = vmatpush3.xpose.msra.mxu0 %v2336_v14  ;;  %6513 = vmatprep.mubr.msk.f32.mxu0 %vm7905_vm0, %v7904_v59 }
 0x3f6   : > { %6521 = vmatprep.subr.mxu0 %v7904_v59 }
 0x3f8   : > { %6514 = vmatmul.mubr.f32.vlgmr.msra.gmra.mxu0 %v2334_v15 }
 0x3f9   : > { %6523 = vmatprep.mubr.msk.f32.mxu0 %vm7905_vm0, %v7904_v59 }
 0x42c   : > { %v2415_v21 = vpop.f32.mrf.mxu0  ;;  %v2458_v22 = vpop.f32.mrf.mxu1 }
 0x42d   : > { %v2416_v23 = vadd.f32 %v2415_v21, %v1294_v18  ;;  %v2459_v38 = vadd.f32 %v2458_v22, %v1302_v34 }
 0x42e   : > { %v8742_v25 = vpop.f32.mrf.mxu0  ;;  %v2460_v26 = vpop.f32.mrf.mxu1 }
 0x42f   : > { %6522 = vmatpush3.xpose.msra.mxu0 %v2416_v23  ;;  %v2461_v35 = vadd.f32 %v2460_v26, %v1306_v30 }
 0x430   : > { %v2419_v29 = vpop.f32.mrf.mxu0  ;;  %6531 = vmatprep.subr.mxu0 %v7904_v59  ;;  %v2462_v32 = vpop.f32.mrf.mxu1 }
 0x431   : > { %v2420_v31 = vadd.f32 %v2419_v29, %v1294_v18  ;;  %v2463_v40 = vadd.f32 %v2462_v32, %v1302_v34 }
 0x432   : > { %6524 = vmatmul.mubr.f32.vlgmr.msra.gmra.mxu0 %v2375_v27  ;;  %v2464_v36 = vpop.f32.mrf.mxu1  ;;  %v8762_v44 = vpop.f32.mrf.mxu0 }
 0x433   : > { %6532 = vmatpush3.xpose.msra.mxu0 %v2420_v31  ;;  %6533 = vmatprep.mubr.msk.f32.mxu0 %vm7905_vm0, %v7904_v59  ;;  %v2465_v39 = vadd.f32 %v2464_v36, %v1306_v30 }
 0x434   : > { %6541 = vmatprep.subr.mxu0 %v7904_v59 }
 0x436   : > { %6534 = vmatmul.mubr.f32.vlgmr.msra.gmra.mxu0 %v2379_v33 }
 0x437   : > { %6542 = vmatpush3.xpose.msra.mxu0 %v2461_v35  ;;  %6543 = vmatprep.mubr.msk.f32.mxu0 %vm7905_vm0, %v7904_v59 }
 0x438   : > { %6551 = vmatprep.subr.mxu0 %v7904_v59 }
 0x43a   : > { %6544 = vmatmul.mubr.f32.vlgmr.msra.gmra.mxu0 %v2459_v38 }
 0x43b   : > { %6552 = vmatpush3.xpose.msra.mxu0 %v2465_v39  ;;  %6553 = vmatprep.mubr.msk.f32.mxu0 %vm7905_vm0, %v7904_v59 }
 0x43c   : > { %6561 = vmatprep.subr.mxu0 %v7904_v59 }
 0x43e   : > { %6554 = vmatmul.mubr.f32.vlgmr.msra.gmra.mxu0 %v2463_v40 }
 0x43f   : > { %6563 = vmatprep.mubr.msk.f32.mxu0 %vm7905_vm0, %v7904_v59 }
 0x46c   : > { %v2501_v47 = vpop.f32.mrf.mxu0  ;;  %v2544_v48 = vpop.f32.mrf.mxu1 }
 0x46d   : > { %v8768_v49 = vadd.f32 %v2501_v47, %v1310_v42  ;;  %v2545_v50 = vadd.f32 %v2544_v48, %v1318_v43 }
 0x46e   : > { %v2503_v51 = vpop.f32.mrf.mxu0  ;;  %v2546_v52 = vpop.f32.mrf.mxu1 }
 0x46f   : > { %v2504_v53 = vadd.f32 %v2503_v51, %v1314_v45  ;;  %v8771_v54 = vadd.f32 %v2546_v52, %v8766_v46  ;;  %6562 = vmatpush3.xpose.msra.mxu0 %v2545_v50 }
 0x470   : > { %v2505_v55 = vpop.f32.mrf.mxu0  ;;  %v2548_v56 = vpop.f32.mrf.mxu1  ;;  %6571 = vmatprep.subr.mxu0 %v7904_v59 }
 0x471   : > { %v8774_v58 = vadd.f32 %v2505_v55, %v1310_v42  ;;  %v2549_v60 = vadd.f32 %v2548_v56, %v1318_v43 }
 0x472   : > { %v2507_v57 = vpop.f32.mrf.mxu0  ;;  %6564 = vmatmul.mubr.f32.vlgmr.msra.gmra.mxu0 %v2504_v53 }
 0x473   : > { %v2508_v2 = vadd.f32 %v2507_v57, %v1314_v45  ;;  %6572 = vmatpush3.xpose.msra.mxu0 %v2549_v60  ;;  %6573 = vmatprep.mubr.msk.f32.mxu0 %vm7905_vm0, %v7904_v59 }
 0x476   : > { %6574 = vmatmul.mubr.f32.vlgmr.msra.gmra.mxu0 %v2508_v2 }
 0x4b4   : > { %v2619_v3 = vpop.f32.mrf.mxu0 }
 0x4b5   : > { %v2623_v4 = vmul.f32 0.125, %v2619_v3 }
 0x4b6   : > { %v6505_v5 = vpop.f32.mrf.mxu0 }
 0x4b7   : > { %v2625_v6 = vsel %vm2624_vm1, %v2623_v4, -inf }
 0x4b8   : > { %2626 = vmax.xlane.f32.xlu0 %v2625_v6  ;;  %v2776_v7 = vpop.f32.mrf.mxu0 }
 0x4b9   : > { %v2780_v8 = vmul.f32 0.125, %v2776_v7 }
 0x4ba   : > { %v6515_v9 = vpop.f32.mrf.mxu0 }
 0x4bb   : > { %v2781_v10 = vsel %vm2624_vm1, %v2780_v8, -inf }
 0x4bc   : > { %2782 = vmax.xlane.f32.xlu0 %v2781_v10 }
 0x4f2   : > { %v2932_v11 = vpop.f32.mrf.mxu0 }
 0x4f3   : > { %v2936_v12 = vmul.f32 0.125, %v2932_v11 }
 0x4f4   : > { %v6525_v13 = vpop.f32.mrf.mxu0 }
 0x4f5   : > { %v2937_v14 = vsel %vm2624_vm1, %v2936_v12, -inf }
 0x4f6   : > { %2938 = vmax.xlane.f32.xlu1 %v2937_v14  ;;  %v3088_v15 = vpop.f32.mrf.mxu0 }
 0x4f7   : > { %v3092_v16 = vmul.f32 0.125, %v3088_v15 }
 0x4f8   : > { %v6535_v18 = vpop.f32.mrf.mxu0 }
 0x4f9   : > { %v3093_v19 = vsel %vm2624_vm1, %v3092_v16, -inf }
 0x4fa   : > { %3094 = vmax.xlane.f32.xlu1 %v3093_v19  ;;  %v3244_v20 = vpop.f32.mrf.mxu0 }
 0x4fb   : > { %v3248_v21 = vmul.f32 0.125, %v3244_v20 }
 0x4fc   : > { %v6545_v22 = vpop.f32.mrf.mxu0 }
 0x4fd   : > { %v3249_v23 = vsel %vm2624_vm1, %v3248_v21, -inf }
 0x4fe   : > { %3250 = vmax.xlane.f32.xlu0 %v3249_v23  ;;  %v3400_v24 = vpop.f32.mrf.mxu0 }
 0x4ff   : > { %v3404_v26 = vmul.f32 0.125, %v3400_v24 }
 0x500   : > { %v6555_v27 = vpop.f32.mrf.mxu0 }
 0x501   : > { %v3405_v28 = vsel %vm2624_vm1, %v3404_v26, -inf }
 0x502   : > { %3406 = vmax.xlane.f32.xlu1 %v3405_v28 }
 0x532   : > { %v3556_v29 = vpop.f32.mrf.mxu0 }
 0x533   : > { %v3560_v30 = vmul.f32 0.125, %v3556_v29  ;;  %v1297_v29 = vsub.s32 5, %v8705_v61 }
 0x534   : > { %v6565_v31 = vpop.f32.mrf.mxu0 }
 0x535   : > { %v3561_v32 = vsel %vm2624_vm1, %v3560_v30, -inf }
 0x536   : > { %3562 = vmax.xlane.f32.xlu0 %v3561_v32  ;;  %v3712_v33 = vpop.f32.mrf.mxu0  ;;  %v1298_v32 = vrot.slane %v8711_v63, %v1297_v29 }
 0x537   : > { %v3716_v34 = vmul.f32 0.125, %v3712_v33 }
 0x538   : > { %v6575_v35 = vpop.f32.mrf.mxu0 }
 0x539   : > { %v3717_v36 = vsel %vm2624_vm1, %v3716_v34, -inf  ;;  %v2418_v35 = vadd.f32 %v8742_v25, %v1298_v32  ;;  %v2422_v25 = vadd.f32 %v8762_v44, %v1298_v32  ;;  %v7072_v32 = vld [vmem:[%s8455_s20 + $0x170] ss:$8 sps:$4 sm:$0xff]  }
 0x53a   : > { %3718 = vmax.xlane.f32.xlu1 %v3717_v36 }
 0x541   : > { %v2627_v38 = vpop.xlane.xlu0 %2626 }
 0x542   : > { %v2628_v39 = vsub.f32 %v2623_v4, %v2627_v38 }
 0x544   : > { %v2629_v40 = vmul.f32 1.442695, %v2628_v39 }
 0x545   : > { %v2783_v41 = vpop.xlane.xlu0 %2782 }
 0x546   : > { %7312 = vpow2.f32 %v2629_v40  ;;  %v2784_v42 = vsub.f32 %v2780_v8, %v2783_v41 }
 0x548   : > { %v2785_v43 = vmul.f32 1.442695, %v2784_v42 }
 0x54a   : > { %7314 = vpow2.f32 %v2785_v43  ;;  %v7026_v43 = vld [vmem:[%s8455_s20 + $0x74] ss:$8 sps:$4 sm:$0xff]  }
 0x54b   : > { %4210 = vmatprep.subr.bf16.mxu0 %v7026_v43  ;;  %v7101_v43 = vld [vmem:[%s8455_s20 + $0x1e4] ss:$8 sps:$4 sm:$0xff]  }
 0x553   : > { %v7313_v45 = vpop.eup %7312 }
 0x554   : > { %v2631_v47 = vsel %vm2624_vm1, %v7313_v45, 0.0 }
 0x555   : > { %2632 = vadd.xlane.f32.xlu0 %v2631_v47  ;;  %v7029_v47 = vld [vmem:[%s8455_s20 + $0x64] ss:$8 sps:$4 sm:$0xff]  }
 0x557   : > { %v7315_v48 = vpop.eup %7314 }
 0x558   : > { %v2787_v50 = vsel %vm2624_vm1, %v7315_v48, 0.0 }
 0x559   : > { %2788 = vadd.xlane.f32.xlu1 %v2787_v50  ;;  %v7027_v50 = vld [vmem:[%s8455_s20 + $0x60] ss:$8 sps:$4 sm:$0xff]  }
 0x57f   : > { %v2939_v51 = vpop.xlane.xlu1 %2938 }
 0x580   : > { %v2940_v52 = vsub.f32 %v2936_v12, %v2939_v51  ;;  %v7032_v51 = vld [vmem:[%s8455_s20 + $0x54] ss:$8 sps:$4 sm:$0xff]  }
 0x582   : > { %v2941_v53 = vmul.f32 1.442695, %v2940_v52  ;;  %v7035_v52 = vld [vmem:[%s8455_s20 + $0x44] ss:$8 sps:$4 sm:$0xff]  }
 0x583   : > { %v3095_v55 = vpop.xlane.xlu1 %3094 }
 0x584   : > { %7316 = vpow2.f32 %v2941_v53  ;;  %v3096_v56 = vsub.f32 %v3092_v16, %v3095_v55  ;;  %v7033_v53 = vld [vmem:[%s8455_s20 + $0x40] ss:$8 sps:$4 sm:$0xff]   ;;  %v7038_v55 = vld [vmem:[%s8455_s20 + $0x34] ss:$8 sps:$4 sm:$0xff]  }
 0x586   : > { %v3097_v60 = vmul.f32 1.442695, %v3096_v56  ;;  %v7041_v56 = vld [vmem:[%s8455_s20 + $0x24] ss:$8 sps:$4 sm:$0xff]  }
 0x587   : > { %v3251_v57 = vpop.xlane.xlu0 %3250 }
 0x588   : > { %7318 = vpow2.f32 %v3097_v60  ;;  %v3252_v2 = vsub.f32 %v3248_v21, %v3251_v57  ;;  %v7039_v60 = vld [vmem:[%s8455_s20 + $0x20] ss:$8 sps:$4 sm:$0xff]   ;;  %v7044_v57 = vld [vmem:[%s8455_s20 + $0x14] ss:$8 sps:$4 sm:$0xff]  }
 0x58a   : > { %v3253_v3 = vmul.f32 1.442695, %v3252_v2  ;;  %v7042_v2 = vld [vmem:[%s8455_s20 + $0x10] ss:$8 sps:$4 sm:$0xff]  }
 0x58b   : > { %v3407_v4 = vpop.xlane.xlu1 %3406 }
 0x58c   : > { %7320 = vpow2.f32 %v3253_v3  ;;  %v3408_v5 = vsub.f32 %v3404_v26, %v3407_v4  ;;  %v7047_v3 = vld [vmem:[%s8455_s20 + $0x4] ss:$8 sps:$4 sm:$0xff]   ;;  %v7045_v4 = vld [vmem:[%s8455_s20] ss:$8 sps:$4 sm:$0xff]  }
 0x58e   : > { %v3409_v6 = vmul.f32 1.442695, %v3408_v5  ;;  %v7050_v5 = vld [vmem:[%s8455_s20 + $0xf4] ss:$8 sps:$4 sm:$0xff]  }
 0x590   : > { %7322 = vpow2.f32 %v3409_v6  ;;  %v7048_v6 = vld [vmem:[%s8455_s20 + $0xf0] ss:$8 sps:$4 sm:$0xff]  }
 0x591   : > { %v7317_v7 = vpop.eup %7316 }
 0x592   : > { %v2943_v8 = vsel %vm2624_vm1, %v7317_v7, 0.0 }
 0x593   : > { %2944 = vadd.xlane.f32.xlu0 %v2943_v8  ;;  %v7051_v8 = vld [vmem:[%s8455_s20 + $0xe0] ss:$8 sps:$4 sm:$0xff]  }
 0x595   : > { %v7319_v9 = vpop.eup %7318 }
 0x596   : > { %v3099_v10 = vsel %vm2624_vm1, %v7319_v9, 0.0 }
 0x597   : > { %3100 = vadd.xlane.f32.xlu1 %v3099_v10 }
 0x599   : > { %v7321_v11 = vpop.eup %7320 }
 0x59a   : > { %v3255_v12 = vsel %vm2624_vm1, %v7321_v11, 0.0 }
 0x59b   : > { %3256 = vadd.xlane.f32.xlu0 %v3255_v12  ;;  %v7059_v12 = vld [vmem:[%s8455_s20 + $0xc4] ss:$8 sps:$4 sm:$0xff]  }
 0x59d   : > { %v8791_v13 = vpop.eup %7322 }
 0x59e   : > { %v3411_v14 = vsel %vm2624_vm1, %v8791_v13, 0.0 }
 0x59f   : > { %3412 = vadd.xlane.f32.xlu1 %v3411_v14  ;;  %v7057_v14 = vld [vmem:[%s8455_s20 + $0xc0] ss:$8 sps:$4 sm:$0xff]  }
 0x5bf   : > { %v3563_v15 = vpop.xlane.xlu0 %3562 }
 0x5c0   : > { %v3564_v16 = vsub.f32 %v3560_v30, %v3563_v15  ;;  %v7062_v15 = vld [vmem:[%s8455_s20 + $0xb4] ss:$8 sps:$4 sm:$0xff]  }
 0x5c2   : > { %v3565_v18 = vmul.f32 1.442695, %v3564_v16  ;;  %v7060_v16 = vld [vmem:[%s8455_s20 + $0xb0] ss:$8 sps:$4 sm:$0xff]  }
 0x5c3   : > { %v3719_v19 = vpop.xlane.xlu1 %3718 }
 0x5c4   : > { %7324 = vpow2.f32 %v3565_v18  ;;  %v3720_v20 = vsub.f32 %v3716_v34, %v3719_v19  ;;  %v7065_v18 = vld [vmem:[%s8455_s20 + $0xa4] ss:$8 sps:$4 sm:$0xff]   ;;  %v7063_v19 = vld [vmem:[%s8455_s20 + $0xa0] ss:$8 sps:$4 sm:$0xff]  }
 0x5c6   : > { %v3721_v21 = vmul.f32 1.442695, %v3720_v20  ;;  %v2550_v20 = vpop.f32.mrf.mxu1 }
 0x5c8   : > { %7326 = vpow2.f32 %v3721_v21 }
 0x5d1   : > { %v8795_v22 = vpop.eup %7324 }
 0x5d2   : > { %v3567_v23 = vsel %vm2624_vm1, %v8795_v22, 0.0 }
 0x5d3   : > { %3568 = vadd.xlane.f32.xlu0 %v3567_v23 }
 0x5d5   : > { %v8799_v24 = vpop.eup %7326 }
 0x5d6   : > { %v3723_v26 = vsel %vm2624_vm1, %v8799_v24, 0.0 }
 0x5d7   : > { %3724 = vadd.xlane.f32.xlu1 %v3723_v26  ;;  %v2551_v26 = vadd.f32 %v2550_v20, %v8766_v46  ;;  %v7071_v46 = vld [vmem:[%s8455_s20 + $0x84] ss:$8 sps:$4 sm:$0xff]  }
 0x5de   : > { %v2633_v27 = vpop.xlane.xlu0 %2632 }
 0x5df   : > { %7328 = vrcp.f32 %v2633_v27  ;;  %v7068_v27 = vld [vmem:[%s8455_s20 + $0x94] ss:$8 sps:$4 sm:$0xff]  }
 0x5e2   : > { %v2789_v28 = vpop.xlane.xlu1 %2788 }
 0x5e3   : > { %7330 = vrcp.f32 %v2789_v28  ;;  %v7066_v28 = vld [vmem:[%s8455_s20 + $0x90] ss:$8 sps:$4 sm:$0xff]  }
 0x5ec   : > { %v7329_v30 = vpop.eup %7328 }
 0x5ed   : > { %v2635_v31 = vmul.f32 %v7329_v30, %v7313_v45  ;;  %v7024_v45 = vld [vmem:[%s8455_s20 + $0x70] ss:$8 sps:$4 sm:$0xff]  }
 0x5ee   : > { %4211 = vmatpush1.bf16.msra.mxu0 %v7024_v45  ;;  %v7099_v45 = vld [vmem:[%s8455_s20 + $0x1e0] ss:$8 sps:$4 sm:$0xff]  }
 0x5ef   : > { %6509 = vmatmul.mubr.msk.f32.vlgmr.msra.gmra.mxu1 %vm2624_vm1, %v2635_v31  ;;  %4212 = vmatprep.subr.bf16.mxu0 %v7029_v47  ;;  %v7074_v31 = vld [vmem:[%s8455_s20 + $0x174] ss:$8 sps:$4 sm:$0xff]  }
 0x5f0   : > { %v7331_v33 = vpop.eup %7330  ;;  %6517 = vmatpush3.msra.mxu1 %v8726_v37  ;;  %6518 = vmatprep.mubr.msk.f32.mxu1 %vm7905_vm0, %v7904_v59  ;;  %v7104_v47 = vld [vmem:[%s8455_s20 + $0x1d4] ss:$8 sps:$4 sm:$0xff]  }
 0x5f1   : > { %6526 = vmatprep.subr.mxu1 %v7904_v59  ;;  %v2791_v34 = vmul.f32 %v7331_v33, %v7315_v48  ;;  %v7078_v33 = vld [vmem:[%s8455_s20 + $0x150] ss:$8 sps:$4 sm:$0xff]  }
 0x5f2   : > { %4213 = vmatpush1.bf16.msra.mxu0 %v7027_v50  ;;  %v7105_v50 = vld [vmem:[%s8455_s20 + $0x1c0] ss:$8 sps:$4 sm:$0xff]  }
 0x5f3   : > { %6519 = vmatmul.mubr.msk.f32.vlgmr.msra.gmra.mxu1 %vm2624_vm1, %v2791_v34  ;;  %4214 = vmatprep.subr.bf16.mxu0 %v7032_v51  ;;  %v7080_v34 = vld [vmem:[%s8455_s20 + $0x154] ss:$8 sps:$4 sm:$0xff]  }
 0x5f4   : > { %6527 = vmatpush3.msra.mxu1 %v2418_v35  ;;  %6528 = vmatprep.mubr.msk.f32.mxu1 %vm7905_vm0, %v7904_v59  ;;  %v7083_v35 = vld [vmem:[%s8455_s20 + $0x144] ss:$8 sps:$4 sm:$0xff]   ;;  %v7110_v51 = vld [vmem:[%s8455_s20 + $0x1b4] ss:$8 sps:$4 sm:$0xff]  }
 0x5f5   : > { %6536 = vmatprep.subr.mxu1 %v7904_v59 }
 0x61c   : > { %v2945_v61 = vpop.xlane.xlu0 %2944 }
 0x61d   : > { %7332 = vrcp.f32 %v2945_v61  ;;  %v7081_v61 = vld [vmem:[%s8455_s20 + $0x140] ss:$8 sps:$4 sm:$0xff]  }
 0x620   : > { %v3101_v63 = vpop.xlane.xlu1 %3100 }
 0x621   : > { %7334 = vrcp.f32 %v3101_v63  ;;  %v7086_v63 = vld [vmem:[%s8455_s20 + $0x134] ss:$8 sps:$4 sm:$0xff]  }
 0x624   : > { %v3257_v37 = vpop.xlane.xlu0 %3256 }
 0x625   : > { %7336 = vrcp.f32 %v3257_v37  ;;  %v7084_v37 = vld [vmem:[%s8455_s20 + $0x130] ss:$8 sps:$4 sm:$0xff]  }
 0x628   : > { %v3413_v36 = vpop.xlane.xlu1 %3412 }
 0x629   : > { %7338 = vrcp.f32 %v3413_v36  ;;  %v7089_v36 = vld [vmem:[%s8455_s20 + $0x124] ss:$8 sps:$4 sm:$0xff]  }
 0x62a   : > { %v7333_v38 = vpop.eup %7332 }
 0x62b   : > { %v2947_v39 = vmul.f32 %v7333_v38, %v7317_v7  ;;  %v7053_v7 = vld [vmem:[%s8455_s20 + $0xe4] ss:$8 sps:$4 sm:$0xff]   ;;  %v7087_v38 = vld [vmem:[%s8455_s20 + $0x120] ss:$8 sps:$4 sm:$0xff]  }
 0x62d   : > { %6529 = vmatmul.mubr.msk.f32.vlgmr.msra.gmra.mxu1 %vm2624_vm1, %v2947_v39  ;;  %v7092_v39 = vld [vmem:[%s8455_s20 + $0x114] ss:$8 sps:$4 sm:$0xff]  }
 0x62e   : > { %v7335_v40 = vpop.eup %7334  ;;  %6537 = vmatpush3.msra.mxu1 %v2422_v25  ;;  %6538 = vmatprep.mubr.msk.f32.mxu1 %vm7905_vm0, %v7904_v59  ;;  %v7090_v25 = vld [vmem:[%s8455_s20 + $0x110] ss:$8 sps:$4 sm:$0xff]  }
 0x62f   : > { %6546 = vmatprep.subr.mxu1 %v7904_v59  ;;  %v3103_v41 = vmul.f32 %v7335_v40, %v7319_v9  ;;  %v7056_v9 = vld [vmem:[%s8455_s20 + $0xd4] ss:$8 sps:$4 sm:$0xff]   ;;  %v7095_v40 = vld [vmem:[%s8455_s20 + $0x104] ss:$8 sps:$4 sm:$0xff]  }
 0x631   : > { %6539 = vmatmul.mubr.msk.f32.vlgmr.msra.gmra.mxu1 %vm2624_vm1, %v3103_v41  ;;  %v7093_v41 = vld [vmem:[%s8455_s20 + $0x100] ss:$8 sps:$4 sm:$0xff]  }
 0x632   : > { %v7337_v42 = vpop.eup %7336  ;;  %6547 = vmatpush3.msra.mxu1 %v8768_v49  ;;  %6548 = vmatprep.mubr.msk.f32.mxu1 %vm7905_vm0, %v7904_v59 }
 0x633   : > { %6556 = vmatprep.subr.mxu1 %v7904_v59  ;;  %v3259_v44 = vmul.f32 %v7337_v42, %v7321_v11  ;;  %v7054_v11 = vld [vmem:[%s8455_s20 + $0xd0] ss:$8 sps:$4 sm:$0xff]   ;;  %v7098_v42 = vld [vmem:[%s8455_s20 + $0x1f4] ss:$8 sps:$4 sm:$0xff]  }
 0x635   : > { %6549 = vmatmul.mubr.msk.f32.vlgmr.msra.gmra.mxu1 %vm2624_vm1, %v3259_v44  ;;  %v7096_v44 = vld [vmem:[%s8455_s20 + $0x1f0] ss:$8 sps:$4 sm:$0xff]  }
 0x636   : > { %v7339_v48 = vpop.eup %7338  ;;  %6557 = vmatpush3.msra.mxu1 %v8774_v58  ;;  %6558 = vmatprep.mubr.msk.f32.mxu1 %vm7905_vm0, %v7904_v59  ;;  %v7030_v58 = vld [vmem:[%s8455_s20 + $0x50] ss:$8 sps:$4 sm:$0xff]  }
 0x637   : > { %6566 = vmatprep.subr.mxu1 %v7904_v59  ;;  %v3415_v49 = vmul.f32 %v7339_v48, %v8791_v13  ;;  %4215 = vmatpush1.bf16.msra.mxu0 %v7030_v58  ;;  %v7102_v48 = vld [vmem:[%s8455_s20 + $0x1d0] ss:$8 sps:$4 sm:$0xff]  }
 0x638   : > { %4216 = vmatprep.subr.bf16.mxu0 %v7035_v52  ;;  %v7108_v58 = vld [vmem:[%s8455_s20 + $0x1b0] ss:$8 sps:$4 sm:$0xff]   ;;  %v7113_v52 = vld [vmem:[%s8455_s20 + $0x1a4] ss:$8 sps:$4 sm:$0xff]  }
 0x639   : > { %6559 = vmatmul.mubr.msk.f32.vlgmr.msra.gmra.mxu1 %vm2624_vm1, %v3415_v49  ;;  %v7107_v49 = vld [vmem:[%s8455_s20 + $0x1c4] ss:$8 sps:$4 sm:$0xff]  }
 0x63a   : > { %6567 = vmatpush3.msra.mxu1 %v8771_v54  ;;  %6568 = vmatprep.mubr.msk.f32.mxu1 %vm7905_vm0, %v7904_v59  ;;  %v7036_v54 = vld [vmem:[%s8455_s20 + $0x30] ss:$8 sps:$4 sm:$0xff]  }
 0x63b   : > { %6576 = vmatprep.subr.mxu1 %v7904_v59  ;;  %4217 = vmatpush1.bf16.msra.mxu0 %v7033_v53  ;;  %v7111_v53 = vld [vmem:[%s8455_s20 + $0x1a0] ss:$8 sps:$4 sm:$0xff]  }
 0x63c   : > { %4218 = vmatprep.subr.bf16.mxu0 %v7038_v55  ;;  %v7116_v55 = vld [vmem:[%s8455_s20 + $0x194] ss:$8 sps:$4 sm:$0xff]  }
 0x63f   : > { %4219 = vmatpush1.bf16.msra.mxu0 %v7036_v54  ;;  %v7114_v54 = vld [vmem:[%s8455_s20 + $0x190] ss:$8 sps:$4 sm:$0xff]  }
 0x640   : > { %4220 = vmatprep.subr.bf16.mxu0 %v7041_v56 }
 0x643   : > { %4221 = vmatpush1.bf16.msra.mxu0 %v7039_v60  ;;  %v7119_v60 = vld [vmem:[%s8455_s20 + $0x184] ss:$8 sps:$4 sm:$0xff]  }
 0x644   : > { %4222 = vmatprep.subr.bf16.mxu0 %v7044_v57 }
 0x647   : > { %4223 = vmatpush1.bf16.msra.mxu0 %v7042_v2  ;;  %v7117_v2 = vld [vmem:[%s8455_s20 + $0x180] ss:$8 sps:$4 sm:$0xff]  }
 0x648   : > { %4224 = vmatprep.subr.bf16.mxu0 %v7047_v3 }
 0x64b   : > { %4225 = vmatpush1.bf16.msra.mxu0 %v7045_v4 }
 0x64c   : > { %4226 = vmatprep.subr.bf16.mxu0 %v7050_v5 }
 0x64f   : > { %4227 = vmatpush2.bf16.msra.mxu0 %v7048_v6 }
 0x650   : > { %4228 = vmatprep.subr.bf16.mxu0 %v7053_v7 }
 0x653   : > { %4229 = vmatpush2.bf16.msra.mxu0 %v7051_v8 }
 0x654   : > { %4230 = vmatprep.subr.bf16.mxu0 %v7056_v9 }
 0x657   : > { %4231 = vmatpush2.bf16.msra.mxu0 %v7054_v11 }
 0x658   : > { %4232 = vmatprep.subr.bf16.mxu0 %v7059_v12 }
 0x65b   : > { %4233 = vmatpush2.bf16.msra.mxu0 %v7057_v14 }
 0x65c   : > { %v3569_v10 = vpop.xlane.xlu0 %3568  ;;  %4234 = vmatprep.subr.bf16.mxu0 %v7062_v15 }
 0x65d   : > { %7340 = vrcp.f32 %v3569_v10 }
 0x65f   : > { %4235 = vmatpush2.bf16.msra.mxu0 %v7060_v16 }
 0x660   : > { %v3725_v13 = vpop.xlane.xlu1 %3724  ;;  %4236 = vmatprep.subr.bf16.mxu0 %v7065_v18 }
 0x661   : > { %7342 = vrcp.f32 %v3725_v13 }
 0x663   : > { %4237 = vmatpush2.bf16.msra.mxu0 %v7063_v19 }
 0x664   : > { %4238 = vmatprep.subr.bf16.mxu0 %v7068_v27 }
 0x667   : > { %4239 = vmatpush2.bf16.msra.mxu0 %v7066_v28 }
 0x668   : > { %4240 = vmatprep.subr.bf16.mxu0 %v7071_v46 }
 0x66a   : > { %v7341_v21 = vpop.eup %7340 }
 0x66b   : > { %v3571_v23 = vmul.f32 %v7341_v21, %v8795_v22  ;;  %v7069_v22 = vld [vmem:[%s8455_s20 + $0x80] ss:$8 sps:$4 sm:$0xff]  }
 0x66c   : > { %4241 = vmatpush2.bf16.msra.mxu0 %v7069_v22 }
 0x66d   : > { %6569 = vmatmul.mubr.msk.f32.vlgmr.msra.gmra.mxu1 %vm2624_vm1, %v3571_v23 }
 0x66e   : > { %v7343_v29 = vpop.eup %7342  ;;  %6577 = vmatpush3.msra.mxu1 %v2551_v26  ;;  %6578 = vmatprep.mubr.msk.f32.mxu1 %vm7905_vm0, %v7904_v59  ;;  %v7077_v59 = vld [vmem:[%s8455_s20 + $0x164] ss:$8 sps:$4 sm:$0xff]   ;;  %v3878_v26 = vld [vmem:[%s814_s25] sm:$0x3] }
 0x66f   : > { %v3727_v30 = vmul.f32 %v7343_v29, %v8799_v24  ;;  %4253 = vmatprep.subr.bf16.mxu1 %v7074_v31  ;;  %v7075_v24 = vld [vmem:[%s8455_s20 + $0x160] ss:$8 sps:$4 sm:$0xff]   ;;  %v3883_v28 = vrot.slane %v3878_v26, %v8719_v1  ;;  %v3887_v29 = vrot.slane %v3878_v26, %v8714_v0 }
 0x670   : > { %v7170_v26 = vld [vmem:[%s8460_s24 + $0x1e4] ss:$16 sps:$4 sm:$0xff]  }
 0x671   : > { %6579 = vmatmul.mubr.msk.f32.vlgmr.msra.gmra.mxu1 %vm2624_vm1, %v3727_v30 }
 0x672   : > { %4254 = vmatpush1.bf16.msra.mxu1 %v7072_v32 }
 0x673   : > { %4255 = vmatprep.subr.bf16.mxu1 %v7077_v59 }
 0x676   : > { %4256 = vmatpush1.bf16.msra.mxu1 %v7075_v24 }
 0x677   : > { %4257 = vmatprep.subr.bf16.mxu1 %v7080_v34 }
 0x67a   : > { %4258 = vmatpush1.bf16.msra.mxu1 %v7078_v33 }
 0x67b   : > { %4259 = vmatprep.subr.bf16.mxu1 %v7083_v35 }
 0x67e   : > { %4260 = vmatpush1.bf16.msra.mxu1 %v7081_v61 }
 0x67f   : > { %4261 = vmatprep.subr.bf16.mxu1 %v7086_v63  ;;  %v7368_v63 = vld [vmem:[#allocation2 + $0x10] sm:$0xff] }
 0x682   : > { %4262 = vmatpush1.bf16.msra.mxu1 %v7084_v37 }
 0x683   : > { %4263 = vmatprep.subr.bf16.mxu1 %v7089_v36  ;;  %v7369_v36 = vld [vmem:[#allocation2] sm:$0xff] }
 0x686   : > { %4264 = vmatpush1.bf16.msra.mxu1 %v7087_v38 }
 0x687   : > { %4265 = vmatprep.subr.bf16.mxu1 %v7092_v39 }
 0x68a   : > { %4266 = vmatpush1.bf16.msra.mxu1 %v7090_v25 }
 0x68b   : > { %4267 = vmatprep.subr.bf16.mxu1 %v7095_v40 }
 0x68e   : > { %4268 = vmatpush1.bf16.msra.mxu1 %v7093_v41 }
 0x68f   : > { %4269 = vmatprep.subr.bf16.mxu1 %v7098_v42  ;;  %v7370_v42 = vld [vmem:[#allocation2 + $0x18] sm:$0xff] }
 0x692   : > { %4270 = vmatpush2.bf16.msra.mxu1 %v7096_v44 }
 0x693   : > { %4271 = vmatprep.subr.bf16.mxu1 %v7101_v43  ;;  %v7371_v43 = vld [vmem:[#allocation2 + $0x8] sm:$0xff] }
 0x696   : > { %4272 = vmatpush2.bf16.msra.mxu1 %v7099_v45 }
 0x697   : > { %4273 = vmatprep.subr.bf16.mxu1 %v7104_v47 }
 0x69a   : > { %4274 = vmatpush2.bf16.msra.mxu1 %v7102_v48  ;;  %v7120_v48 = vld [vmem:[%s8460_s24 + $0xe0] ss:$16 sps:$4 sm:$0xff]  }
 0x69b   : > { %4275 = vmatprep.subr.bf16.mxu1 %v7107_v49  ;;  %v7122_v49 = vld [vmem:[%s8460_s24 + $0xe4] ss:$16 sps:$4 sm:$0xff]  }
 0x69c   : > { %4773 = vmatprep.subr.bf16.mxu0 %v7122_v49  ;;  %v7191_v49 = vld [vmem:[%s8460_s24 + $0x18c] ss:$16 sps:$4 sm:$0xff]  }
 0x69e   : > { %4276 = vmatpush2.bf16.msra.mxu1 %v7105_v50  ;;  %v7123_v50 = vld [vmem:[%s8460_s24 + $0xe8] ss:$16 sps:$4 sm:$0xff]  }
 0x69f   : > { %4277 = vmatprep.subr.bf16.mxu1 %v7110_v51  ;;  %v7125_v51 = vld [vmem:[%s8460_s24 + $0xec] ss:$16 sps:$4 sm:$0xff]  }
 0x6a2   : > { %4278 = vmatpush2.bf16.msra.mxu1 %v7108_v58  ;;  %v7128_v58 = vld [vmem:[%s8460_s24 + $0xc4] ss:$16 sps:$4 sm:$0xff]  }
 0x6a3   : > { %4279 = vmatprep.subr.bf16.mxu1 %v7113_v52  ;;  %v7131_v52 = vld [vmem:[%s8460_s24 + $0xcc] ss:$16 sps:$4 sm:$0xff]  }
 0x6a6   : > { %4280 = vmatpush2.bf16.msra.mxu1 %v7111_v53  ;;  %v7126_v53 = vld [vmem:[%s8460_s24 + $0xc0] ss:$16 sps:$4 sm:$0xff]  }
 0x6a7   : > { %4281 = vmatprep.subr.bf16.mxu1 %v7116_v55  ;;  %v7129_v55 = vld [vmem:[%s8460_s24 + $0xc8] ss:$16 sps:$4 sm:$0xff]  }
 0x6aa   : > { %4282 = vmatpush2.bf16.msra.mxu1 %v7114_v54  ;;  %v7134_v54 = vld [vmem:[%s8460_s24 + $0xa4] ss:$16 sps:$4 sm:$0xff]  }
 0x6ab   : > { %4283 = vmatprep.subr.bf16.mxu1 %v7119_v60  ;;  %v7132_v60 = vld [vmem:[%s8460_s24 + $0xa0] ss:$16 sps:$4 sm:$0xff]  }
 0x6ae   : > { %4284 = vmatpush2.bf16.msra.mxu1 %v7117_v2  ;;  %v7140_v2 = vld [vmem:[%s8460_s24 + $0x84] ss:$16 sps:$4 sm:$0xff]  }
 0x6af   : > { %v2705_v56 = vpop.f32.mrf.mxu1  ;;  %4816 = vmatprep.subr.bf16.mxu1 %v7125_v51  ;;  %v7197_v51 = vld [vmem:[%s8460_s24 + $0x16c] ss:$16 sps:$4 sm:$0xff]  }
 0x6b1   : > { %v6510_v57 = vpop.f32.mrf.mxu1 }
 0x6b2   : > { %v7135_v57 = vld [vmem:[%s8460_s24 + $0xa8] ss:$16 sps:$4 sm:$0xff]  }
 0x6b3   : > { %v2861_v3 = vpop.f32.mrf.mxu1 }
 0x6b4   : > { %v3810_v9 = vpack.c.bf16 %v2861_v3, %v2705_v56  ;;  %v7137_v56 = vld [vmem:[%s8460_s24 + $0xac] ss:$16 sps:$4 sm:$0xff]  }
 0x6b5   : > { %v6520_v4 = vpop.f32.mrf.mxu1  ;;  %v7143_v3 = vld [vmem:[%s8460_s24 + $0x8c] ss:$16 sps:$4 sm:$0xff]  }
 0x6b6   : > { %v7138_v4 = vld [vmem:[%s8460_s24 + $0x80] ss:$16 sps:$4 sm:$0xff]  }
 0x6ed   : > { %v3017_v5 = vpop.f32.mrf.mxu1 }
 0x6ef   : > { %v6530_v6 = vpop.f32.mrf.mxu1 }
 0x6f0   : > { %v7146_v6 = vld [vmem:[%s8460_s24 + $0x64] ss:$16 sps:$4 sm:$0xff]  }
 0x6f1   : > { %v3173_v7 = vpop.f32.mrf.mxu1 }
 0x6f2   : > { %v3811_v8 = vpack.c.bf16 %v3173_v7, %v3017_v5  ;;  %v7141_v5 = vld [vmem:[%s8460_s24 + $0x88] ss:$16 sps:$4 sm:$0xff]   ;;  %v7149_v7 = vld [vmem:[%s8460_s24 + $0x6c] ss:$16 sps:$4 sm:$0xff]  }
 0x6f3   : > { %v6540_v10 = vpop.f32.mrf.mxu1 }
 0x6f4   : > { %4242 = vmatprep.mubr.bf16.mxu0 %v3811_v8  ;;  %v7144_v8 = vld [vmem:[%s8460_s24 + $0x60] ss:$16 sps:$4 sm:$0xff]   ;;  %v7152_v10 = vld [vmem:[%s8460_s24 + $0x44] ss:$16 sps:$4 sm:$0xff]  }
 0x6f5   : > { %v3329_v11 = vpop.f32.mrf.mxu1  ;;  %4243 = vmatmul.mubr.bf16.vlgmr.msra.gmra.mxu0 %v3810_v9  ;;  %v7147_v9 = vld [vmem:[%s8460_s24 + $0x68] ss:$16 sps:$4 sm:$0xff]  }
 0x6f6   : > { %4774 = vmatpush1.bf16.msra.mxu0 %v7120_v48  ;;  %v7189_v48 = vld [vmem:[%s8460_s24 + $0x188] ss:$16 sps:$4 sm:$0xff]  }
 0x6f7   : > { %v6550_v12 = vpop.f32.mrf.mxu1  ;;  %4775 = vmatprep.subr.bf16.mxu0 %v7128_v58  ;;  %v7192_v58 = vld [vmem:[%s8460_s24 + $0x160] ss:$16 sps:$4 sm:$0xff]  }
 0x6f8   : > { %v7150_v12 = vld [vmem:[%s8460_s24 + $0x40] ss:$16 sps:$4 sm:$0xff]  }
 0x6f9   : > { %v3485_v13 = vpop.f32.mrf.mxu1 }
 0x6fa   : > { %v3812_v20 = vpack.c.bf16 %v3485_v13, %v3329_v11  ;;  %4776 = vmatpush1.bf16.msra.mxu0 %v7126_v53  ;;  %v7155_v11 = vld [vmem:[%s8460_s24 + $0x4c] ss:$16 sps:$4 sm:$0xff]   ;;  %v7153_v13 = vld [vmem:[%s8460_s24 + $0x48] ss:$16 sps:$4 sm:$0xff]   ;;  %v7200_v53 = vld [vmem:[%s8460_s24 + $0x144] ss:$16 sps:$4 sm:$0xff]  }
 0x6fb   : > { %v6560_v14 = vpop.f32.mrf.mxu1  ;;  %4777 = vmatprep.subr.bf16.mxu0 %v7134_v54  ;;  %v7198_v54 = vld [vmem:[%s8460_s24 + $0x140] ss:$16 sps:$4 sm:$0xff]  }
 0x6fc   : > { %v7158_v14 = vld [vmem:[%s8460_s24 + $0x24] ss:$16 sps:$4 sm:$0xff]  }
 0x6fe   : > { %4778 = vmatpush1.bf16.msra.mxu0 %v7132_v60  ;;  %v7206_v60 = vld [vmem:[%s8460_s24 + $0x124] ss:$16 sps:$4 sm:$0xff]  }
 0x6ff   : > { %4779 = vmatprep.subr.bf16.mxu0 %v7140_v2  ;;  %v7204_v2 = vld [vmem:[%s8460_s24 + $0x120] ss:$16 sps:$4 sm:$0xff]  }
 0x702   : > { %4780 = vmatpush1.bf16.msra.mxu0 %v7138_v4  ;;  %v7212_v4 = vld [vmem:[%s8460_s24 + $0x104] ss:$16 sps:$4 sm:$0xff]  }
 0x703   : > { %4781 = vmatprep.subr.bf16.mxu0 %v7146_v6  ;;  %v7210_v6 = vld [vmem:[%s8460_s24 + $0x100] ss:$16 sps:$4 sm:$0xff]  }
 0x706   : > { %4782 = vmatpush1.bf16.msra.mxu0 %v7144_v8  ;;  %v7218_v8 = vld [vmem:[%s8464_s13 + $0x74] ss:$8 sps:$4 sm:$0xff]  }
 0x707   : > { %4783 = vmatprep.subr.bf16.mxu0 %v7152_v10 }
 0x70a   : > { %4784 = vmatpush1.bf16.msra.mxu0 %v7150_v12 }
 0x70b   : > { %4785 = vmatprep.subr.bf16.mxu0 %v7158_v14 }
 0x72d   : > { %v3641_v15 = vpop.f32.mrf.mxu1 }
 0x72f   : > { %v6570_v16 = vpop.f32.mrf.mxu1 }
 0x730   : > { %v7156_v16 = vld [vmem:[%s8460_s24 + $0x20] ss:$16 sps:$4 sm:$0xff]  }
 0x731   : > { %v3797_v18 = vpop.f32.mrf.mxu1  ;;  %4786 = vmatpush1.bf16.msra.mxu0 %v7156_v16  ;;  %v4300_v16 = vld [vmem:[%s823_s18] sm:$0x3] }
 0x732   : > { %v3813_v19 = vpack.c.bf16 %v3797_v18, %v3641_v15  ;;  %v7161_v15 = vld [vmem:[%s8460_s24 + $0x2c] ss:$16 sps:$4 sm:$0xff]   ;;  %v7159_v18 = vld [vmem:[%s8460_s24 + $0x28] ss:$16 sps:$4 sm:$0xff]  }
 0x733   : > { %v6580_v21 = vpop.f32.mrf.mxu1 }
 0x734   : > { %4285 = vmatprep.mubr.bf16.mxu1 %v3813_v19  ;;  %v7164_v19 = vld [vmem:[%s8460_s24 + $0x4] ss:$16 sps:$4 sm:$0xff]   ;;  %v7162_v21 = vld [vmem:[%s8460_s24] ss:$16 sps:$4 sm:$0xff]  }
 0x735   : > { %4286 = vmatmul.mubr.bf16.vlgmr.msra.gmra.mxu1 %v3812_v20  ;;  %v7167_v20 = vld [vmem:[%s8460_s24 + $0xc] ss:$16 sps:$4 sm:$0xff]   ;;  %4787 = vmatprep.subr.bf16.mxu0 %v7164_v19 }
 0x736   : > { %4817 = vmatpush1.bf16.msra.mxu1 %v7123_v50  ;;  %4788 = vmatpush1.bf16.msra.mxu0 %v7162_v21  ;;  %v7194_v50 = vld [vmem:[%s8460_s24 + $0x164] ss:$16 sps:$4 sm:$0xff]   ;;  %v4301_v19 = vld [vmem:[%s832_s7] sm:$0x3]  ;;  %v4339_v21 = vrot.slane %v4300_v16, %v8719_v1 }
 0x737   : > { %4818 = vmatprep.subr.bf16.mxu1 %v7131_v52  ;;  %4789 = vmatprep.subr.bf16.mxu0 %v7170_v26  ;;  %v7195_v52 = vld [vmem:[%s8460_s24 + $0x168] ss:$16 sps:$4 sm:$0xff]  }
 0x73a   : > { %4819 = vmatpush1.bf16.msra.mxu1 %v7129_v55  ;;  %v7203_v55 = vld [vmem:[%s8460_s24 + $0x14c] ss:$16 sps:$4 sm:$0xff]  }
 0x73b   : > { %4820 = vmatprep.subr.bf16.mxu1 %v7137_v56  ;;  %v7201_v56 = vld [vmem:[%s8460_s24 + $0x148] ss:$16 sps:$4 sm:$0xff]  }
 0x73e   : > { %4821 = vmatpush1.bf16.msra.mxu1 %v7135_v57  ;;  %v7209_v57 = vld [vmem:[%s8460_s24 + $0x12c] ss:$16 sps:$4 sm:$0xff]  }
 0x73f   : > { %4822 = vmatprep.subr.bf16.mxu1 %v7143_v3  ;;  %v7207_v3 = vld [vmem:[%s8460_s24 + $0x128] ss:$16 sps:$4 sm:$0xff]  }
 0x742   : > { %4823 = vmatpush1.bf16.msra.mxu1 %v7141_v5  ;;  %v7215_v5 = vld [vmem:[%s8460_s24 + $0x10c] ss:$16 sps:$4 sm:$0xff]  }
 0x743   : > { %4824 = vmatprep.subr.bf16.mxu1 %v7149_v7  ;;  %v7213_v7 = vld [vmem:[%s8460_s24 + $0x108] ss:$16 sps:$4 sm:$0xff]  }
 0x746   : > { %4825 = vmatpush1.bf16.msra.mxu1 %v7147_v9  ;;  %v7221_v9 = vld [vmem:[%s8464_s13 + $0x174] ss:$8 sps:$4 sm:$0xff]  }
 0x747   : > { %4826 = vmatprep.subr.bf16.mxu1 %v7155_v11 }
 0x74a   : > { %4827 = vmatpush1.bf16.msra.mxu1 %v7153_v13 }
 0x74b   : > { %4828 = vmatprep.subr.bf16.mxu1 %v7161_v15 }
 0x74e   : > { %4829 = vmatpush1.bf16.msra.mxu1 %v7159_v18 }
 0x74f   : > { %4830 = vmatprep.subr.bf16.mxu1 %v7167_v20 }
 0x7b5   : > { %v4244_v23 = vpop.f32.mrf.mxu0 }
 0x7b6   : > { %v4245_v46 = vadd.f32 %v4244_v23, %v3883_v28  ;;  %v7165_v23 = vld [vmem:[%s8460_s24 + $0x8] ss:$16 sps:$4 sm:$0xff]  }
 0x7b7   : > { %v4246_v27 = vpop.f32.mrf.mxu0  ;;  %4831 = vmatpush1.bf16.msra.mxu1 %v7165_v23  ;;  %v4343_v23 = vrot.slane %v4300_v16, %v8714_v0  ;;  %v7278_v16 = vld [vmem:[%s8464_s13 + $0xd4] ss:$8 sps:$4 sm:$0xff]  }
 0x7b8   : > { %v4247_v31 = vadd.f32 %v4246_v27, %v3887_v29  ;;  %v7173_v27 = vld [vmem:[%s8460_s24 + $0x1ec] ss:$16 sps:$4 sm:$0xff]  }
 0x7b9   : > { %v4248_v30 = vpop.f32.mrf.mxu0  ;;  %4832 = vmatprep.subr.bf16.mxu1 %v7173_v27 }
 0x7ba   : > { %v4249_v33 = vadd.f32 %v4248_v30, %v3883_v28  ;;  %v7168_v28 = vld [vmem:[%s8460_s24 + $0x1e0] ss:$16 sps:$4 sm:$0xff]  }
 0x7bb   : > { %v4250_v59 = vpop.f32.mrf.mxu0  ;;  %4790 = vmatpush2.bf16.msra.mxu0 %v7168_v28  ;;  %v4354_v28 = vrot.slane %v4301_v19, %v8719_v1 }
 0x7bc   : > { %v4251_v61 = vadd.f32 %v4250_v59, %v3887_v29  ;;  %v7171_v29 = vld [vmem:[%s8460_s24 + $0x1e8] ss:$16 sps:$4 sm:$0xff]  }
 0x7bd   : > { %4833 = vmatpush2.bf16.msra.mxu1 %v7171_v29  ;;  %v4358_v29 = vrot.slane %v4301_v19, %v8714_v0  ;;  %v7276_v19 = vld [vmem:[%s8464_s13 + $0xd0] ss:$8 sps:$4 sm:$0xff]  }
 0x7f5   : > { %v4287_v22 = vpop.f32.mrf.mxu1 }
 0x7f6   : > { %v4288_v32 = vadd.f32 %v4287_v22, %v4245_v46 }
 0x7f7   : > { %v4289_v24 = vpop.f32.mrf.mxu1 }
 0x7f8   : > { %v4290_v34 = vadd.f32 %v4289_v24, %v4247_v31  ;;  %v8911_v37 = vadd.f32 %v7368_v63, %v4288_v32 }
 0x7f9   : > { %v4291_v35 = vpop.f32.mrf.mxu1 }
 0x7fa   : > { %v8913_v38 = vadd.f32 %v7369_v36, %v4290_v34  ;;  %v4292_v39 = vadd.f32 %v4291_v35, %v4249_v33 }
 0x7fb   : > { %v4293_v25 = vpop.f32.mrf.mxu1 }
 0x7fc   : > { %v4294_v40 = vadd.f32 %v4293_v25, %v4251_v61  ;;  %v4302_v41 = vadd.f32 %v8913_v38, %v8911_v37  ;;  %v8917_v44 = vadd.f32 %v7370_v42, %v4292_v39  ;;  %v7179_v39 = vld [vmem:[%s8460_s24 + $0x1cc] ss:$16 sps:$4 sm:$0xff]   ;;  %v7174_v25 = vld [vmem:[%s8460_s24 + $0x1c0] ss:$16 sps:$4 sm:$0xff]  }
 0x7fd   : > { %4834 = vmatprep.subr.bf16.mxu1 %v7179_v39  ;;  %v7185_v42 = vld [vmem:[%s8460_s24 + $0x1ac] ss:$16 sps:$4 sm:$0xff]  }
 0x7fe   : > { %v8919_v45 = vadd.f32 %v7371_v43, %v4294_v40  ;;  %4303 = vadd.xlane.f32.xlu0 %v4302_v41  ;;  %v7177_v40 = vld [vmem:[%s8460_s24 + $0x1c8] ss:$16 sps:$4 sm:$0xff]   ;;  %v7182_v41 = vld [vmem:[%s8460_s24 + $0x1a4] ss:$16 sps:$4 sm:$0xff]  }
 0x7ff   : > { %4835 = vmatpush2.bf16.msra.mxu1 %v7177_v40  ;;  %v7183_v43 = vld [vmem:[%s8460_s24 + $0x1a8] ss:$16 sps:$4 sm:$0xff]   ;;  %v7227_v39 = vld [vmem:[%s8464_s13 + $0x164] ss:$8 sps:$4 sm:$0xff]  }
 0x800   : > { %v4305_v47 = vadd.f32 %v8919_v45, %v8917_v44  ;;  %4836 = vmatprep.subr.bf16.mxu1 %v7185_v42  ;;  %v7225_v40 = vld [vmem:[%s8464_s13 + $0x160] ss:$8 sps:$4 sm:$0xff]   ;;  %v7233_v42 = vld [vmem:[%s8464_s13 + $0x154] ss:$8 sps:$4 sm:$0xff]  }
 0x802   : > { %4306 = vadd.xlane.f32.xlu1 %v4305_v47  ;;  %v7186_v47 = vld [vmem:[%s8460_s24 + $0x180] ss:$16 sps:$4 sm:$0xff]  }
 0x803   : > { %4837 = vmatpush2.bf16.msra.mxu1 %v7183_v43  ;;  %v7231_v43 = vld [vmem:[%s8464_s13 + $0x150] ss:$8 sps:$4 sm:$0xff]  }
 0x804   : > { %4838 = vmatprep.subr.bf16.mxu1 %v7191_v49  ;;  %v7237_v49 = vld [vmem:[%s8464_s13 + $0x140] ss:$8 sps:$4 sm:$0xff]  }
 0x807   : > { %4839 = vmatpush2.bf16.msra.mxu1 %v7189_v48  ;;  %v7234_v48 = vld [vmem:[%s8464_s13 + $0x40] ss:$8 sps:$4 sm:$0xff]  }
 0x808   : > { %4840 = vmatprep.subr.bf16.mxu1 %v7197_v51  ;;  %v7245_v51 = vld [vmem:[%s8464_s13 + $0x134] ss:$8 sps:$4 sm:$0xff]  }
 0x80b   : > { %4841 = vmatpush2.bf16.msra.mxu1 %v7195_v52  ;;  %v7243_v52 = vld [vmem:[%s8464_s13 + $0x130] ss:$8 sps:$4 sm:$0xff]  }
 0x80c   : > { %4842 = vmatprep.subr.bf16.mxu1 %v7203_v55  ;;  %v7251_v55 = vld [vmem:[%s8464_s13 + $0x124] ss:$8 sps:$4 sm:$0xff]  }
 0x80f   : > { %4843 = vmatpush2.bf16.msra.mxu1 %v7201_v56  ;;  %v7249_v56 = vld [vmem:[%s8464_s13 + $0x120] ss:$8 sps:$4 sm:$0xff]  }
 0x810   : > { %4844 = vmatprep.subr.bf16.mxu1 %v7209_v57  ;;  %v7257_v57 = vld [vmem:[%s8464_s13 + $0x114] ss:$8 sps:$4 sm:$0xff]  }
 0x813   : > { %4845 = vmatpush2.bf16.msra.mxu1 %v7207_v3  ;;  %v7255_v3 = vld [vmem:[%s8464_s13 + $0x110] ss:$8 sps:$4 sm:$0xff]  }
 0x814   : > { %4846 = vmatprep.subr.bf16.mxu1 %v7215_v5  ;;  %v7263_v5 = vld [vmem:[%s8464_s13 + $0x104] ss:$8 sps:$4 sm:$0xff]  }
 0x817   : > { %4847 = vmatpush2.bf16.msra.mxu1 %v7213_v7  ;;  %v7261_v7 = vld [vmem:[%s8464_s13 + $0x100] ss:$8 sps:$4 sm:$0xff]  }
 0x818   : > { %5374 = vmatprep.subr.bf16.mxu1 %v7221_v9  ;;  %v7269_v9 = vld [vmem:[%s8464_s13 + $0x1f4] ss:$8 sps:$4 sm:$0xff]  }
 0x887   : > { %v4304_v30 = vpop.xlane.xlu0 %4303 }
 0x888   : > { %v4309_v46 = vmul.f32 0.00390625, %v4304_v30 }
 0x88a   : > { %v8960_v22 = vsub.f32 %v8911_v37, %v4309_v46  ;;  %v8963_v31 = vsub.f32 %v8913_v38, %v4309_v46  ;;  %v7176_v38 = vld [vmem:[%s8460_s24 + $0x1c4] ss:$16 sps:$4 sm:$0xff]  }
 0x88b   : > { %v4307_v32 = vpop.xlane.xlu1 %4306  ;;  %4791 = vmatprep.subr.bf16.mxu0 %v7176_v38  ;;  %v7224_v38 = vld [vmem:[%s8464_s13 + $0x64] ss:$8 sps:$4 sm:$0xff]  }
 0x88c   : > { %v4310_v59 = vmul.f32 0.00390625, %v4307_v32  ;;  %v4315_v24 = vmul.f32 %v8960_v22, %v8960_v22  ;;  %v4316_v33 = vmul.f32 %v8963_v31, %v8963_v31  ;;  %4792 = vmatpush2.bf16.msra.mxu0 %v7174_v25  ;;  %v7222_v25 = vld [vmem:[%s8464_s13 + $0x60] ss:$8 sps:$4 sm:$0xff]  }
 0x88d   : > { %4793 = vmatprep.subr.bf16.mxu0 %v7182_v41  ;;  %v7230_v41 = vld [vmem:[%s8464_s13 + $0x54] ss:$8 sps:$4 sm:$0xff]  }
 0x88e   : > { %v8970_v34 = vsub.f32 %v8917_v44, %v4310_v59  ;;  %v8973_v35 = vsub.f32 %v8919_v45, %v4310_v59  ;;  %v4319_v61 = vadd.f32 %v4316_v33, %v4315_v24  ;;  %v7180_v44 = vld [vmem:[%s8460_s24 + $0x1a0] ss:$16 sps:$4 sm:$0xff]   ;;  %v7188_v45 = vld [vmem:[%s8460_s24 + $0x184] ss:$16 sps:$4 sm:$0xff]  }
 0x890   : > { %4320 = vadd.xlane.f32.xlu0 %v4319_v61  ;;  %v4317_v63 = vmul.f32 %v8970_v34, %v8970_v34  ;;  %v4318_v37 = vmul.f32 %v8973_v35, %v8973_v35  ;;  %4794 = vmatpush2.bf16.msra.mxu0 %v7180_v44  ;;  %v7228_v44 = vld [vmem:[%s8464_s13 + $0x50] ss:$8 sps:$4 sm:$0xff]  }
 0x891   : > { %4795 = vmatprep.subr.bf16.mxu0 %v7188_v45  ;;  %v7236_v45 = vld [vmem:[%s8464_s13 + $0x44] ss:$8 sps:$4 sm:$0xff]  }
 0x892   : > { %v4322_v36 = vadd.f32 %v4318_v37, %v4317_v63 }
 0x894   : > { %4323 = vadd.xlane.f32.xlu1 %v4322_v36  ;;  %4796 = vmatpush2.bf16.msra.mxu0 %v7186_v47  ;;  %v7219_v36 = vld [vmem:[%s8464_s13 + $0x170] ss:$8 sps:$4 sm:$0xff]   ;;  %v7239_v47 = vld [vmem:[%s8464_s13 + $0x144] ss:$8 sps:$4 sm:$0xff]  }
 0x895   : > { %4797 = vmatprep.subr.bf16.mxu0 %v7194_v50  ;;  %v7242_v50 = vld [vmem:[%s8464_s13 + $0x34] ss:$8 sps:$4 sm:$0xff]  }
 0x898   : > { %4798 = vmatpush2.bf16.msra.mxu0 %v7192_v58  ;;  %v7240_v58 = vld [vmem:[%s8464_s13 + $0x30] ss:$8 sps:$4 sm:$0xff]  }
 0x899   : > { %4799 = vmatprep.subr.bf16.mxu0 %v7200_v53  ;;  %v7248_v53 = vld [vmem:[%s8464_s13 + $0x24] ss:$8 sps:$4 sm:$0xff]  }
 0x89c   : > { %4800 = vmatpush2.bf16.msra.mxu0 %v7198_v54  ;;  %v7246_v54 = vld [vmem:[%s8464_s13 + $0x20] ss:$8 sps:$4 sm:$0xff]  }
 0x89d   : > { %4801 = vmatprep.subr.bf16.mxu0 %v7206_v60  ;;  %v7254_v60 = vld [vmem:[%s8464_s13 + $0x14] ss:$8 sps:$4 sm:$0xff]  }
 0x8a0   : > { %4802 = vmatpush2.bf16.msra.mxu0 %v7204_v2  ;;  %v7252_v2 = vld [vmem:[%s8464_s13 + $0x10] ss:$8 sps:$4 sm:$0xff]  }
 0x8a1   : > { %4803 = vmatprep.subr.bf16.mxu0 %v7212_v4  ;;  %v7260_v4 = vld [vmem:[%s8464_s13 + $0x4] ss:$8 sps:$4 sm:$0xff]  }
 0x8a4   : > { %4804 = vmatpush2.bf16.msra.mxu0 %v7210_v6  ;;  %v7258_v6 = vld [vmem:[%s8464_s13] ss:$8 sps:$4 sm:$0xff]  }
 0x8a5   : > { %5331 = vmatprep.subr.bf16.mxu0 %v7218_v8  ;;  %v7266_v8 = vld [vmem:[%s8464_s13 + $0xf4] ss:$8 sps:$4 sm:$0xff]  }
 0x919   : > { %v4321_v10 = vpop.xlane.xlu0 %4320 }
 0x91a   : > { %v4325_v11 = vmul.f32 0.00390625, %v4321_v10  ;;  %v7264_v10 = vld [vmem:[%s8464_s13 + $0xf0] ss:$8 sps:$4 sm:$0xff]  }
 0x91c   : > { %v4327_v12 = vadd.f32 1e-12, %v4325_v11  ;;  %v7267_v11 = vld [vmem:[%s8464_s13 + $0x1f0] ss:$8 sps:$4 sm:$0xff]  }
 0x91d   : > { %v4324_v13 = vpop.xlane.xlu1 %4323 }
 0x91e   : > { %7344 = vrsqrt.f32 %v4327_v12  ;;  %v4326_v14 = vmul.f32 0.00390625, %v4324_v13  ;;  %v7272_v12 = vld [vmem:[%s8464_s13 + $0xe4] ss:$8 sps:$4 sm:$0xff]  }
 0x91f   : > { %v7275_v13 = vld [vmem:[%s8464_s13 + $0x1e4] ss:$8 sps:$4 sm:$0xff]  }
 0x920   : > { %v4328_v15 = vadd.f32 1e-12, %v4326_v14  ;;  %v7270_v14 = vld [vmem:[%s8464_s13 + $0xe0] ss:$8 sps:$4 sm:$0xff]  }
 0x922   : > { %7346 = vrsqrt.f32 %v4328_v15  ;;  %v7273_v15 = vld [vmem:[%s8464_s13 + $0x1e0] ss:$8 sps:$4 sm:$0xff]  }
 0x92b   : > { %v7345_v18 = vpop.eup %7344 }
 0x92c   : > { %v4332_v20 = vmul.f32 %v7345_v18, %v8963_v31  ;;  %v4331_v26 = vmul.f32 %v7345_v18, %v8960_v22  ;;  %v7281_v18 = vld [vmem:[%s8464_s13 + $0x1d4] ss:$8 sps:$4 sm:$0xff]  }
 0x92e   : > { %v4347_v46 = vmul.f32 %v4343_v23, %v4332_v20  ;;  %v4346_v32 = vmul.f32 %v4339_v21, %v4331_v26  ;;  %v7279_v20 = vld [vmem:[%s8464_s13 + $0x1d0] ss:$8 sps:$4 sm:$0xff]   ;;  %v7285_v26 = vld [vmem:[%s8464_s13 + $0x1c0] ss:$8 sps:$4 sm:$0xff]  }
 0x92f   : > { %v7347_v27 = vpop.eup %7346 }
 0x930   : > { %v4334_v30 = vmul.f32 %v7347_v27, %v8973_v35  ;;  %v4333_v31 = vmul.f32 %v7347_v27, %v8970_v34  ;;  %v9021_v33 = vadd.f32 %v4358_v29, %v4347_v46  ;;  %v9025_v61 = vadd.f32 %v4354_v28, %v4346_v32  ;;  %v7216_v35 = vld [vmem:[%s8464_s13 + $0x70] ss:$8 sps:$4 sm:$0xff]   ;;  %v7287_v27 = vld [vmem:[%s8464_s13 + $0x1c4] ss:$8 sps:$4 sm:$0xff]  }
 0x931   : > { %v7291_v46 = vld [vmem:[%s8464_s13 + $0x1b0] ss:$8 sps:$4 sm:$0xff]   ;;  %v7299_v32 = vld [vmem:[%s8464_s13 + $0x1a4] ss:$8 sps:$4 sm:$0xff]  }
 0x932   : > { %v4349_v59 = vmul.f32 %v4343_v23, %v4334_v30  ;;  %v4348_v24 = vmul.f32 %v4339_v21, %v4333_v31  ;;  %v7282_v21 = vld [vmem:[%s8464_s13 + $0xc0] ss:$8 sps:$4 sm:$0xff]   ;;  %v7284_v23 = vld [vmem:[%s8464_s13 + $0xc4] ss:$8 sps:$4 sm:$0xff]   ;;  %v7288_v30 = vld [vmem:[%s8464_s13 + $0xb0] ss:$8 sps:$4 sm:$0xff]  }
 0x933   : > { %v7296_v31 = vld [vmem:[%s8464_s13 + $0xa4] ss:$8 sps:$4 sm:$0xff]  }
 0x934   : > { %v9023_v22 = vadd.f32 %v4358_v29, %v4349_v59  ;;  %v9027_v63 = vadd.f32 %v4354_v28, %v4348_v24  ;;  %v7290_v28 = vld [vmem:[%s8464_s13 + $0xb4] ss:$8 sps:$4 sm:$0xff]   ;;  %v7294_v59 = vld [vmem:[%s8464_s13 + $0xa0] ss:$8 sps:$4 sm:$0xff]  }
 0x935   : > { %v7293_v29 = vld [vmem:[%s8464_s13 + $0x1b4] ss:$8 sps:$4 sm:$0xff]   ;;  %v7297_v24 = vld [vmem:[%s8464_s13 + $0x1a0] ss:$8 sps:$4 sm:$0xff]  }
 0x936   : > { %v4366_v37 = vpack.c.bf16 %v9023_v22, %v9021_v33  ;;  %v4365_v34 = vpack.c.bf16 %v9027_v63, %v9025_v61 }
 0x938   : > { %4805 = vmatprep.mubr.bf16.mxu0 %v4366_v37  ;;  %4848 = vmatprep.mubr.bf16.mxu1 %v4366_v37  ;;  %v7302_v37 = vld [vmem:[%s8464_s13 + $0x94] ss:$8 sps:$4 sm:$0xff]  }
 0x939   : > { %4806 = vmatmul.mubr.bf16.vlgmr.msra.gmra.mxu0 %v4365_v34  ;;  %4849 = vmatmul.mubr.bf16.vlgmr.msra.gmra.mxu1 %v4365_v34  ;;  %v7305_v34 = vld [vmem:[%s8464_s13 + $0x194] ss:$8 sps:$4 sm:$0xff]  }
 0x93a   : > { %5332 = vmatpush1.bf16.msra.mxu0 %v7216_v35  ;;  %5375 = vmatpush1.bf16.msra.mxu1 %v7219_v36  ;;  %v7300_v35 = vld [vmem:[%s8464_s13 + $0x90] ss:$8 sps:$4 sm:$0xff]  }
 0x93b   : > { %5333 = vmatprep.subr.bf16.mxu0 %v7224_v38  ;;  %5376 = vmatprep.subr.bf16.mxu1 %v7227_v39  ;;  %v7303_v36 = vld [vmem:[%s8464_s13 + $0x190] ss:$8 sps:$4 sm:$0xff]   ;;  %v7308_v38 = vld [vmem:[%s8464_s13 + $0x84] ss:$8 sps:$4 sm:$0xff]  }
 0x93c   : > { %v7311_v39 = vld [vmem:[%s8464_s13 + $0x184] ss:$8 sps:$4 sm:$0xff]  }
 0x93e   : > { %5334 = vmatpush1.bf16.msra.mxu0 %v7222_v25  ;;  %5377 = vmatpush1.bf16.msra.mxu1 %v7225_v40  ;;  %v7306_v25 = vld [vmem:[%s8464_s13 + $0x80] ss:$8 sps:$4 sm:$0xff]  }
 0x93f   : > { %5335 = vmatprep.subr.bf16.mxu0 %v7230_v41  ;;  %5378 = vmatprep.subr.bf16.mxu1 %v7233_v42  ;;  %v7309_v40 = vld [vmem:[%s8464_s13 + $0x180] ss:$8 sps:$4 sm:$0xff]   ;;  %v4431_v41 = vld [vmem:[%s8462_s4] sm:$0xf] }
 0x940   : > { %v4436_v42 = vrot.slane %v4431_v41, %v8719_v1 }
 0x942   : > { %5336 = vmatpush1.bf16.msra.mxu0 %v7228_v44  ;;  %5379 = vmatpush1.bf16.msra.mxu1 %v7231_v43  ;;  %v4444_v44 = vrot.slane %v4431_v41, %v8708_v62  ;;  %v4440_v43 = vrot.slane %v4431_v41, %v8714_v0 }
 0x943   : > { %5337 = vmatprep.subr.bf16.mxu0 %v7236_v45  ;;  %5380 = vmatprep.subr.bf16.mxu1 %v7239_v47  ;;  %v4448_v45 = vrot.slane %v4431_v41, %v8736_v17 }
 0x946   : > { %5338 = vmatpush1.bf16.msra.mxu0 %v7234_v48  ;;  %5381 = vmatpush1.bf16.msra.mxu1 %v7237_v49 }
 0x947   : > { %5339 = vmatprep.subr.bf16.mxu0 %v7242_v50  ;;  %5382 = vmatprep.subr.bf16.mxu1 %v7245_v51 }
 0x94a   : > { %5340 = vmatpush1.bf16.msra.mxu0 %v7240_v58  ;;  %5383 = vmatpush1.bf16.msra.mxu1 %v7243_v52 }
 0x94b   : > { %5341 = vmatprep.subr.bf16.mxu0 %v7248_v53  ;;  %5384 = vmatprep.subr.bf16.mxu1 %v7251_v55 }
 0x94e   : > { %5342 = vmatpush1.bf16.msra.mxu0 %v7246_v54  ;;  %5385 = vmatpush1.bf16.msra.mxu1 %v7249_v56 }
 0x94f   : > { %5343 = vmatprep.subr.bf16.mxu0 %v7254_v60  ;;  %5386 = vmatprep.subr.bf16.mxu1 %v7257_v57 }
 0x952   : > { %5344 = vmatpush1.bf16.msra.mxu0 %v7252_v2  ;;  %5387 = vmatpush1.bf16.msra.mxu1 %v7255_v3 }
 0x953   : > { %5345 = vmatprep.subr.bf16.mxu0 %v7260_v4  ;;  %5388 = vmatprep.subr.bf16.mxu1 %v7263_v5 }
 0x956   : > { %5346 = vmatpush1.bf16.msra.mxu0 %v7258_v6  ;;  %5389 = vmatpush1.bf16.msra.mxu1 %v7261_v7 }
 0x957   : > { %5347 = vmatprep.subr.bf16.mxu0 %v7266_v8  ;;  %5390 = vmatprep.subr.bf16.mxu1 %v7269_v9 }
 0x95a   : > { %5348 = vmatpush2.bf16.msra.mxu0 %v7264_v10  ;;  %5391 = vmatpush2.bf16.msra.mxu1 %v7267_v11 }
 0x95b   : > { %5349 = vmatprep.subr.bf16.mxu0 %v7272_v12  ;;  %5392 = vmatprep.subr.bf16.mxu1 %v7275_v13 }
 0x95e   : > { %5350 = vmatpush2.bf16.msra.mxu0 %v7270_v14  ;;  %5393 = vmatpush2.bf16.msra.mxu1 %v7273_v15 }
 0x95f   : > { %5351 = vmatprep.subr.bf16.mxu0 %v7278_v16  ;;  %5394 = vmatprep.subr.bf16.mxu1 %v7281_v18 }
 0x962   : > { %5352 = vmatpush2.bf16.msra.mxu0 %v7276_v19  ;;  %5395 = vmatpush2.bf16.msra.mxu1 %v7279_v20 }
 0x963   : > { %5353 = vmatprep.subr.bf16.mxu0 %v7284_v23  ;;  %5396 = vmatprep.subr.bf16.mxu1 %v7287_v27 }
 0x966   : > { %5354 = vmatpush2.bf16.msra.mxu0 %v7282_v21  ;;  %5397 = vmatpush2.bf16.msra.mxu1 %v7285_v26 }
 0x967   : > { %5355 = vmatprep.subr.bf16.mxu0 %v7290_v28  ;;  %5398 = vmatprep.subr.bf16.mxu1 %v7293_v29 }
 0x96a   : > { %5356 = vmatpush2.bf16.msra.mxu0 %v7288_v30  ;;  %5399 = vmatpush2.bf16.msra.mxu1 %v7291_v46 }
 0x96b   : > { %5357 = vmatprep.subr.bf16.mxu0 %v7296_v31  ;;  %5400 = vmatprep.subr.bf16.mxu1 %v7299_v32 }
 0x96e   : > { %5358 = vmatpush2.bf16.msra.mxu0 %v7294_v59  ;;  %5401 = vmatpush2.bf16.msra.mxu1 %v7297_v24 }
 0x96f   : > { %5359 = vmatprep.subr.bf16.mxu0 %v7302_v37  ;;  %5402 = vmatprep.subr.bf16.mxu1 %v7305_v34 }
 0x972   : > { %5360 = vmatpush2.bf16.msra.mxu0 %v7300_v35  ;;  %5403 = vmatpush2.bf16.msra.mxu1 %v7303_v36 }
 0x973   : > { %5361 = vmatprep.subr.bf16.mxu0 %v7308_v38  ;;  %5404 = vmatprep.subr.bf16.mxu1 %v7311_v39 }
 0x976   : > { %5362 = vmatpush2.bf16.msra.mxu0 %v7306_v25  ;;  %5405 = vmatpush2.bf16.msra.mxu1 %v7309_v40 }
 0x9f9   : > { %v4807_v47 = vpop.f32.mrf.mxu0  ;;  %v4850_v48 = vpop.f32.mrf.mxu1 }
 0x9fa   : > { %v9100_v49 = vadd.f32 %v4807_v47, %v4436_v42  ;;  %v9102_v50 = vadd.f32 %v4850_v48, %v4444_v44 }
 0x9fb   : > { %v4809_v51 = vpop.f32.mrf.mxu0  ;;  %v4852_v58 = vpop.f32.mrf.mxu1 }
 0x9fc   : > { %v4867_v52 = vmul.f32 0.044715, %v9100_v49  ;;  %v4869_v53 = vmul.f32 0.044715, %v9102_v50  ;;  %v4810_v55 = vadd.f32 %v4809_v51, %v4440_v43  ;;  %v9106_v54 = vadd.f32 %v4852_v58, %v4448_v45 }
 0x9fd   : > { %v4811_v62 = vpop.f32.mrf.mxu0  ;;  %v4854_v56 = vpop.f32.mrf.mxu1 }
 0x9fe   : > { %v4875_v60 = vmul.f32 %v4867_v52, %v9100_v49  ;;  %v4877_v17 = vmul.f32 %v4869_v53, %v9102_v50  ;;  %v4868_v57 = vmul.f32 0.044715, %v4810_v55  ;;  %v4870_v2 = vmul.f32 0.044715, %v9106_v54 }
 0x9ff   : > { %v4812_v3 = vadd.f32 %v4811_v62, %v4436_v42  ;;  %v9111_v4 = vadd.f32 %v4854_v56, %v4444_v44  ;;  %v4813_v5 = vpop.f32.mrf.mxu0  ;;  %v4856_v6 = vpop.f32.mrf.mxu1  ;;  %v4860_v52 = vmul.f32 0.5, %v4810_v55  ;;  %v4859_v62 = vmul.f32 0.5, %v9100_v49 }
 0xa00   : > { %v4883_v7 = vmul.f32 %v4875_v60, %v9100_v49  ;;  %v4885_v8 = vmul.f32 %v4877_v17, %v9102_v50  ;;  %v4876_v9 = vmul.f32 %v4868_v57, %v4810_v55  ;;  %v4878_v10 = vmul.f32 %v4870_v2, %v9106_v54 }
 0xa01   : > { %v4871_v11 = vmul.f32 0.044715, %v4812_v3  ;;  %v4873_v12 = vmul.f32 0.044715, %v9111_v4  ;;  %v4814_v13 = vadd.f32 %v4813_v5, %v4440_v43  ;;  %v4857_v14 = vadd.f32 %v4856_v6, %v4448_v45 }
 0xa02   : > { %v4891_v15 = vadd.f32 %v4883_v7, %v9100_v49  ;;  %v4893_v16 = vadd.f32 %v4885_v8, %v9102_v50  ;;  %v4884_v18 = vmul.f32 %v4876_v9, %v4810_v55  ;;  %v4886_v19 = vmul.f32 %v4878_v10, %v9106_v54 }
 0xa03   : > { %v4879_v20 = vmul.f32 %v4871_v11, %v4812_v3  ;;  %v4881_v21 = vmul.f32 %v4873_v12, %v9111_v4  ;;  %v4872_v23 = vmul.f32 0.044715, %v4814_v13  ;;  %v4874_v26 = vmul.f32 0.044715, %v4857_v14 }
 0xa04   : > { %v4899_v27 = vmul.f32 0.7978846, %v4891_v15  ;;  %v4901_v28 = vmul.f32 0.7978846, %v4893_v16  ;;  %v4892_v29 = vadd.f32 %v4884_v18, %v4810_v55  ;;  %v4894_v24 = vadd.f32 %v4886_v19, %v9106_v54 }
 0xa05   : > { %v4887_v30 = vmul.f32 %v4879_v20, %v4812_v3  ;;  %v4889_v46 = vmul.f32 %v4881_v21, %v9111_v4  ;;  %v4880_v31 = vmul.f32 %v4872_v23, %v4814_v13  ;;  %v4882_v32 = vmul.f32 %v4874_v26, %v4857_v14 }
 0xa06   : > { %v4900_v59 = vmul.f32 0.7978846, %v4892_v29  ;;  %7348 = vtanh.f32 %v4899_v27  ;;  %v4902_v38 = vmul.f32 0.7978846, %v4894_v24  ;;  %v4863_v57 = vmul.f32 0.5, %v4812_v3 }
 0xa07   : > { %v4895_v37 = vadd.f32 %v4887_v30, %v4812_v3  ;;  %v4897_v34 = vadd.f32 %v4889_v46, %v9111_v4  ;;  %v4888_v35 = vmul.f32 %v4880_v31, %v4814_v13  ;;  %7350 = vtanh.f32 %v4901_v28 }
 0xa08   : > { %v4890_v36 = vmul.f32 %v4882_v32, %v4857_v14  ;;  %7352 = vtanh.f32 %v4900_v59  ;;  %v4864_v7 = vmul.f32 0.5, %v4814_v13  ;;  %v4865_v9 = vmul.f32 0.5, %v9111_v4 }
 0xa09   : > { %v4903_v39 = vmul.f32 0.7978846, %v4895_v37  ;;  %v4905_v25 = vmul.f32 0.7978846, %v4897_v34  ;;  %v4896_v40 = vadd.f32 %v4888_v35, %v4814_v13  ;;  %7354 = vtanh.f32 %v4902_v38 }
 0xa0a   : > { %v4898_v41 = vadd.f32 %v4890_v36, %v4857_v14  ;;  %v4862_v11 = vmul.f32 0.5, %v9106_v54  ;;  %v4866_v12 = vmul.f32 0.5, %v4857_v14  ;;  %v4861_v18 = vmul.f32 0.5, %v9102_v50  ;;  %v4999_v54 = vld [vmem:[%s868_s27] sm:$0x3] }
 0xa0b   : > { %7356 = vtanh.f32 %v4903_v39  ;;  %v4904_v42 = vmul.f32 0.7978846, %v4896_v40  ;;  %v5004_v14 = vrot.slane %v4999_v54, %v8719_v1  ;;  %v5008_v28 = vrot.slane %v4999_v54, %v8714_v0 }
 0xa0c   : > { %7358 = vtanh.f32 %v4905_v25  ;;  %v4906_v44 = vmul.f32 0.7978846, %v4898_v41 }
 0xa0d   : > { %7360 = vtanh.f32 %v4904_v42 }
 0xa0e   : > { %7362 = vtanh.f32 %v4906_v44 }
 0xa13   : > { %v7349_v43 = vpop.eup %7348 }
 0xa14   : > { %v7351_v45 = vpop.eup %7350  ;;  %v4915_v2 = vadd.f32 1.0, %v7349_v43 }
 0xa15   : > { %v7353_v47 = vpop.eup %7352  ;;  %v4917_v10 = vadd.f32 1.0, %v7351_v45 }
 0xa16   : > { %v7355_v48 = vpop.eup %7354  ;;  %v4916_v53 = vadd.f32 1.0, %v7353_v47  ;;  %v4923_v21 = vmul.f32 %v4915_v2, %v4859_v62 }
 0xa17   : > { %v4918_v17 = vadd.f32 1.0, %v7355_v48  ;;  %v4925_v13 = vmul.f32 %v4917_v10, %v4861_v18  ;;  %v5421_v10 = vld [vmem:[%s877_s30] sm:$0x3] }
 0xa18   : > { %v7357_v51 = vpop.eup %7356  ;;  %v4924_v16 = vmul.f32 %v4916_v53, %v4860_v52 }
 0xa19   : > { %v7359_v58 = vpop.eup %7358  ;;  %v4919_v56 = vadd.f32 1.0, %v7357_v51  ;;  %v4926_v3 = vmul.f32 %v4918_v17, %v4862_v11  ;;  %v5422_v11 = vld [vmem:[%s886_s3] sm:$0x3] }
 0xa1a   : > { %v7361_v60 = vpop.eup %7360  ;;  %v4921_v5 = vadd.f32 1.0, %v7359_v58 }
 0xa1b   : > { %v7363_v6 = vpop.eup %7362  ;;  %v4920_v8 = vadd.f32 1.0, %v7361_v60  ;;  %v4927_v55 = vmul.f32 %v4919_v56, %v4863_v57 }
 0xa1c   : > { %v4922_v15 = vadd.f32 1.0, %v7363_v6  ;;  %v4929_v19 = vmul.f32 %v4921_v5, %v4865_v9 }
 0xa1d   : > { %v4928_v49 = vmul.f32 %v4920_v8, %v4864_v7  ;;  %v4931_v27 = vpack.c.bf16 %v4927_v55, %v4923_v21 }
 0xa1e   : > { %v4930_v20 = vmul.f32 %v4922_v15, %v4866_v12  ;;  %v4933_v4 = vpack.c.bf16 %v4929_v19, %v4925_v13  ;;  %v5459_v12 = vrot.slane %v5421_v10, %v8719_v1  ;;  %v5463_v15 = vrot.slane %v5421_v10, %v8714_v0 }
 0xa1f   : > { %v4932_v23 = vpack.c.bf16 %v4928_v49, %v4924_v16  ;;  %v5474_v16 = vrot.slane %v5422_v11, %v8719_v1  ;;  %v5478_v49 = vrot.slane %v5422_v11, %v8714_v0 }
 0xa20   : > { %v4934_v26 = vpack.c.bf16 %v4930_v20, %v4926_v3 }
 0xa21   : > { %5363 = vmatprep.mubr.bf16.mxu0 %v4932_v23 }
 0xa22   : > { %5406 = vmatprep.mubr.bf16.mxu1 %v4934_v26  ;;  %5364 = vmatmul.mubr.bf16.vlgmr.msra.gmra.mxu0 %v4931_v27 }
 0xa23   : > { %5407 = vmatmul.mubr.bf16.vlgmr.msra.gmra.mxu1 %v4933_v4 }
 0xae2   : > { %v5365_v50 = vpop.f32.mrf.mxu0 }
 0xae3   : > { %v5366_v29 = vadd.f32 %v5365_v50, %v5004_v14  ;;  %v5408_v30 = vpop.f32.mrf.mxu1 }
 0xae4   : > { %v5367_v46 = vpop.f32.mrf.mxu0 }
 0xae5   : > { %v5409_v31 = vadd.f32 %v5408_v30, %v5366_v29  ;;  %v5368_v32 = vadd.f32 %v5367_v46, %v5008_v28  ;;  %v5410_v59 = vpop.f32.mrf.mxu1 }
 0xae6   : > { %v5369_v24 = vpop.f32.mrf.mxu0 }
 0xae7   : > { %v5411_v37 = vadd.f32 %v5410_v59, %v5368_v32  ;;  %v5370_v34 = vadd.f32 %v5369_v24, %v5004_v14  ;;  %v5412_v35 = vpop.f32.mrf.mxu1  ;;  %v5417_v38 = vadd.f32 %v5409_v31, %v9025_v61 }
 0xae8   : > { %v5371_v36 = vpop.f32.mrf.mxu0 }
 0xae9   : > { %v5418_v39 = vadd.f32 %v5411_v37, %v9021_v33  ;;  %v5413_v25 = vadd.f32 %v5412_v35, %v5370_v34  ;;  %v5372_v40 = vadd.f32 %v5371_v36, %v5008_v28  ;;  %v5414_v41 = vpop.f32.mrf.mxu1 }
 0xaeb   : > { %v5415_v42 = vadd.f32 %v5414_v41, %v5372_v40  ;;  %v5423_v44 = vadd.f32 %v5418_v39, %v5417_v38  ;;  %v5419_v43 = vadd.f32 %v5413_v25, %v9027_v63 }
 0xaed   : > { %v5420_v45 = vadd.f32 %v5415_v42, %v9023_v22  ;;  %5424 = vadd.xlane.f32.xlu0 %v5423_v44 }
 0xaef   : > { %v5426_v47 = vadd.f32 %v5420_v45, %v5419_v43 }
 0xaf1   : > { %5427 = vadd.xlane.f32.xlu1 %v5426_v47 }
 0xb76   : > { %v5425_v48 = vpop.xlane.xlu0 %5424 }
 0xb77   : > { %v5429_v51 = vmul.f32 0.00390625, %v5425_v48 }
 0xb79   : > { %v5431_v58 = vsub.f32 %v5417_v38, %v5429_v51  ;;  %v5432_v52 = vsub.f32 %v5418_v39, %v5429_v51 }
 0xb7a   : > { %v5428_v53 = vpop.xlane.xlu1 %5427 }
 0xb7b   : > { %v5430_v61 = vmul.f32 0.00390625, %v5428_v53  ;;  %v5435_v62 = vmul.f32 %v5431_v58, %v5431_v58  ;;  %v5436_v33 = vmul.f32 %v5432_v52, %v5432_v52 }
 0xb7d   : > { %v5433_v56 = vsub.f32 %v5419_v43, %v5430_v61  ;;  %v5434_v60 = vsub.f32 %v5420_v45, %v5430_v61  ;;  %v5439_v17 = vadd.f32 %v5436_v33, %v5435_v62 }
 0xb7f   : > { %5440 = vadd.xlane.f32.xlu0 %v5439_v17  ;;  %v5437_v63 = vmul.f32 %v5433_v56, %v5433_v56  ;;  %v5438_v57 = vmul.f32 %v5434_v60, %v5434_v60 }
 0xb81   : > { %v5442_v22 = vadd.f32 %v5438_v57, %v5437_v63 }
 0xb83   : > { %5443 = vadd.xlane.f32.xlu1 %v5442_v22 }
 0xc08   : > { %v5441_v2 = vpop.xlane.xlu0 %5440 }
 0xc09   : > { %v5445_v5 = vmul.f32 0.00390625, %v5441_v2 }
 0xc0b   : > { %v5447_v6 = vadd.f32 1e-12, %v5445_v5 }
 0xc0c   : > { %v5444_v7 = vpop.xlane.xlu1 %5443 }
 0xc0d   : > { %7364 = vrsqrt.f32 %v5447_v6  ;;  %v5446_v8 = vmul.f32 0.00390625, %v5444_v7 }
 0xc0f   : > { %v5448_v9 = vadd.f32 1e-12, %v5446_v8 }
 0xc11   : > { %7366 = vrsqrt.f32 %v5448_v9 }
 0xc1a   : > { %v7365_v55 = vpop.eup %7364 }
 0xc1b   : > { %v5451_v18 = vmul.f32 %v7365_v55, %v5431_v58  ;;  %v5452_v19 = vmul.f32 %v7365_v55, %v5432_v52 }
 0xc1d   : > { %v5466_v3 = vmul.f32 %v5459_v12, %v5451_v18  ;;  %v5467_v20 = vmul.f32 %v5463_v15, %v5452_v19 }
 0xc1e   : > { %v7367_v21 = vpop.eup %7366 }
 0xc1f   : > { %v5481_v23 = vadd.f32 %v5474_v16, %v5466_v3  ;;  %v5482_v13 = vadd.f32 %v5478_v49, %v5467_v20  ;;  %v5453_v26 = vmul.f32 %v7367_v21, %v5433_v56  ;;  %v5454_v27 = vmul.f32 %v7367_v21, %v5434_v60 }
 0xc21   : > { %5485 = vst [vmem:[#allocation2 + $0x10] sm:$0xff] %v5481_v23  ;;  %5486 = vst [vmem:[#allocation2] sm:$0xff] %v5482_v13  ;;  %v5468_v4 = vmul.f32 %v5459_v12, %v5453_v26  ;;  %v5469_v54 = vmul.f32 %v5463_v15, %v5454_v27  ;;  %5492 = sbr.rel (%p6417_p7) target bundleno = 3347 (0xd13), region = 160 }
 0xc23   : > { %v5483_v14 = vadd.f32 %v5474_v16, %v5468_v4  ;;  %v5484_v28 = vadd.f32 %v5478_v49, %v5469_v54 }
 0xc25   : > { %5487 = vst [vmem:[#allocation2 + $0x18] sm:$0xff] %v5483_v14  ;;  %5488 = vst [vmem:[#allocation2 + $0x8] sm:$0xff] %v5484_v28 }
 0xc26   : > { %v7372_v0 = vld [vmem:[#allocation20 + $0x78] sm:$0xff]   ;;  %v5494_v1 = vpack.c.bf16 %v5484_v28, %v5482_v13  ;;  %v7374_v29 = vld [vmem:[#allocation20 + $0x70] sm:$0xff]   ;;  %v7376_v46 = vld [vmem:[#allocation20 + $0x68] sm:$0xff]   ;;  %v5493_v40 = vpack.c.bf16 %v5483_v14, %v5481_v23 }
 0xc27   : > { %v7373_v50 = vld [vmem:[#allocation20 + $0x38] sm:$0xff]   ;;  %6479 = vmatprep.subr.bf16.mxu0 %v7372_v0  ;;  %v7375_v30 = vld [vmem:[#allocation20 + $0x30] sm:$0xff]   ;;  %v7377_v31 = vld [vmem:[#allocation20 + $0x28] sm:$0xff]  }
 0xc28   : > { %5662 = vmatprep.mubr.bf16.mxu0 %v5494_v1  ;;  %6480 = vmatpush3.bf16.msra.mxu0 %v7373_v50  ;;  %v7378_v32 = vld [vmem:[#allocation20 + $0x60] sm:$0xff]   ;;  %v7380_v24 = vld [vmem:[#allocation20 + $0x58] sm:$0xff]   ;;  %v7382_v34 = vld [vmem:[#allocation20 + $0x50] sm:$0xff]  }
 0xc29   : > { %6481 = vmatprep.subr.bf16.mxu0 %v7374_v29  ;;  %v7379_v59 = vld [vmem:[#allocation20 + $0x20] sm:$0xff]   ;;  %v7381_v37 = vld [vmem:[#allocation20 + $0x18] sm:$0xff]   ;;  %v7383_v35 = vld [vmem:[#allocation20 + $0x10] sm:$0xff]  }
 0xc2a   : > { %v7384_v36 = vld [vmem:[#allocation20 + $0x48] sm:$0xff]   ;;  %v7386_v39 = vld [vmem:[#allocation20 + $0x40] sm:$0xff]  }
 0xc2b   : > { %v7385_v38 = vld [vmem:[#allocation20 + $0x8] sm:$0xff]   ;;  %v7387_v25 = vld [vmem:[#allocation20] sm:$0xff]  }
 0xc2c   : > { %6482 = vmatpush3.bf16.msra.mxu0 %v7375_v30  ;;  %v6418_v42 = vld [vmem:[#allocation21] ss:$0 sm:$0xff] }
 0xc2d   : > { %6483 = vmatprep.subr.bf16.mxu0 %v7376_v46 }
 0xc30   : > { %6484 = vmatpush3.bf16.msra.mxu0 %v7377_v31 }
 0xc31   : > { %6485 = vmatprep.subr.bf16.mxu0 %v7378_v32 }
 0xc34   : > { %6486 = vmatpush3.bf16.msra.mxu0 %v7379_v59 }
 0xc35   : > { %6487 = vmatprep.subr.bf16.mxu0 %v7380_v24 }
 0xc38   : > { %6488 = vmatpush3.bf16.msra.mxu0 %v7381_v37 }
 0xc39   : > { %6489 = vmatprep.subr.bf16.mxu0 %v7382_v34 }
 0xc3c   : > { %6490 = vmatpush3.bf16.msra.mxu0 %v7383_v35 }
 0xc3d   : > { %6491 = vmatprep.subr.bf16.mxu0 %v7384_v36 }
 0xc40   : > { %6492 = vmatpush3.bf16.msra.mxu0 %v7385_v38 }
 0xc41   : > { %6493 = vmatprep.subr.bf16.mxu0 %v7386_v39 }
 0xc44   : > { %6494 = vmatpush3.bf16.msra.mxu0 %v7387_v25 }
 0xc47   : > { %5663 = vmatmul.mubr.bf16.vlgmr.msra.gmra.mxu0 %v5493_v40 }
 0xd07   : > { %v6495_v41 = vpop.f32.mrf.mxu0 }
 0xd09   : > { %v6496_v44 = vpop.f32.mrf.mxu0 }
 0xd0a   : > { %v6497_v43 = vadd.f32 %v6496_v44, %v6495_v41 }
 0xd0b   : > { %v6498_v45 = vpop.f32.mrf.mxu0 }
 0xd0c   : > { %v5665_v47 = vadd.f32 %v6497_v43, %v6418_v42 }
 0xd0d   : > { %v6499_v48 = vpop.f32.mrf.mxu0 }
 0xd0e   : > { %5671 = vst [vmem:[%s9268_s22] sm:$0xff] %v5665_v47  ;;  %v6500_v51 = vadd.f32 %v6499_v48, %v6498_v45 }
 0xd10   : > { %v5668_v58 = vadd.f32 %v6500_v51, %v6418_v42 }
 0xd12   : > { %5672 = vst [vmem:[%s9268_s22 + $0x8] sm:$0xff] %v5668_v58 }
 0xd13 PF: > { %s9269_s27 = sld [smem:[#allocation31_spill]] }
 0xd14   : > { %s9270_s24 = sld [smem:[#allocation28_spill]] }
 0xd15   : > { %s9271_s25 = sld [smem:[#allocation29_spill]] }
 0xd16   : > { %s9272_s26 = sld [smem:[#allocation32_spill]] }
 0xd19   : > { %p27_p11 = scmp.ge.s32.totalorder %s9269_s27, 4  }
 0xd1b   :  { %29 = sbr.rel (!%p27_p11) target bundleno = 17 (0x11), region = 268 }
 0xd20   :  { %5684 = vsyncpa [#allocation5], 1 }
 0xd21   :  { %5686 = vsyncpa [#allocation5 + $0x1], 1 }
 0xd22   :  { %5687 = vsyncpa [#allocation7], 1 }
 0xd23   :  { %5688 = vsyncpa [#allocation22], 1 }

</bundles_post_ra>
